<compile_context>
chip_gen: v6e
topology: v6e:2x2x1
jax: 0.10.0
libtpu: 0.0.40
codegen_flags: <defaults>
</compile_context>

<pallas_src>
import functools
import math

import numpy as np
import jax
import jax.numpy as jnp
from jax.experimental import pallas as pl
from jax.experimental.pallas import tpu as pltpu  # noqa: F401

KMAX = 7  # every scale kernel is zero-padded to 7 taps ('same' padding -> 3)


def _mm(a, b):
    """Small matmul; K == 1 contractions become a broadcast outer product."""
    if a.shape[-1] == 1:
        return a * b
    return jnp.dot(a, b, preferred_element_type=jnp.float32)


# ----------------------------------------------------------------------------
# Fused kernel: entire MSResnet forward for the whole batch.
#   inputs : x (B*L_in, Cin)  and  packed parameter buffer (rows, >=128)
#   output : logits padded to (B, 128)
# ----------------------------------------------------------------------------
def _msresnet_kernel(cfg, layout, x_ref, p_ref, o_ref):
    cin, B, L, S, Lc, Lh, n_blocks, out_len, nc_pad = cfg

    def par(name):                       # static-offset slice of the packed buffer
        off, r, c = layout[name]
        return p_ref[off:off + r, 0:c]

    x = x_ref[...]                       # (B*L_in, cin), channels-last

    # ---------------- input stem: Conv1d(k=7, s=2) + BN + ReLU + MaxPool(2) ----
    wst = par("stem_w")                  # (7*cin, cin), BN folded
    bst = par("stem_b")                  # (1, cin)
    h = jnp.zeros((Lh, cin), jnp.float32)
    for k in range(KMAX):                # stride-1 conv as sum over 7 taps
        h = h + _mm(x[k:k + Lh, :], wst[k * cin:(k + 1) * cin, :])
    h = h + bst                          # (Lh, cin)
    # stride-2 + maxpool(2) realised as two 0/1 selection matmuls + max; the
    # selected rows land directly in the zero-padded, batch-stacked slab.
    sa = par("sel_a")                    # (S, Lh)
    sc = par("sel_c")                    # (S, Lh)
    slab = jnp.maximum(jnp.maximum(_mm(sa, h), _mm(sc, h)), 0.0)   # (S, cin)

    # rows that must stay zero ('same' padding around / between batch items)
    rows = jax.lax.broadcasted_iota(jnp.int32, (S, 1), 0)
    valid = (rows >= 3) & (rows < S - 3) & (((rows - 3) % (L + 6)) < L)
    mask = jnp.where(valid, 1.0, 0.0)    # (S, 1) f32

    # ---------------- fused multi-scale residual blocks ----------------
    for d in range(n_blocks):
        w1 = par(f"w1_{d}"); b1 = par(f"b1_{d}")
        w2 = par(f"w2_{d}"); wd = par(f"wd_{d}"); b2 = par(f"b2_{d}")
        in_w = slab.shape[-1]
        out_w = b1.shape[-1]
        zpad = jnp.zeros((3, out_w), jnp.float32)

        # conv1 ('same', all scales fused block-diagonally, BN1 folded) + ReLU
        acc1 = jnp.zeros((Lc, out_w), jnp.float32)
        for k in range(KMAX):
            acc1 = acc1 + _mm(slab[k:k + Lc, :], w1[k * in_w:(k + 1) * in_w, :])
        h1 = jnp.maximum(acc1 + b1, 0.0)                               # (Lc, out_w)
        h1s = jnp.concatenate([zpad, h1, zpad], axis=0) * mask         # (S, out_w)

        # conv2 ('same') + 1x1 downsample; BN2 folded (applied after the add)
        acc2 = _mm(slab[3:3 + Lc, :], wd)
        for k in range(KMAX):
            acc2 = acc2 + _mm(h1s[k:k + Lc, :], w2[k * out_w:(k + 1) * out_w, :])
        g = jnp.maximum(acc2 + b2, 0.0)                                # (Lc, out_w)
        slab = jnp.concatenate([zpad, g, zpad], axis=0) * mask         # (S, out_w)

    # ---------------- AdaptiveAvgPool1d + flatten + Linear ----------------
    apool = par("apool")                 # (out_len*B, S) averaging matrix
    ps = _mm(apool, slab)                # (out_len*B, n_scales*C_final)
    cf3 = slab.shape[-1]
    wfc = par("wfc")                     # (out_len*cf3, nc_pad), pool-ordered
    bfc = par("bfc")                     # (1, nc_pad)
    logits = jnp.zeros((B, nc_pad), jnp.float32)
    for i in range(out_len):
        logits = logits + _mm(ps[i * B:(i + 1) * B, :],
                              wfc[i * cf3:(i + 1) * cf3, :])
    o_ref[...] = logits + bfc            # lane-dense (B, 128) store


# ----------------------------------------------------------------------------
# Wrapper: one grid-less pallas_call, 2 input DMAs, everything VMEM-resident.
# ----------------------------------------------------------------------------
def msresnet_forward(x_ncl, packed, layout, cfg, num_classes):
    cin, B, L, S, Lc, Lh, n_blocks, out_len, nc_pad = cfg
    Bx, Cx, L_in = x_ncl.shape
    x2d = jnp.transpose(x_ncl, (0, 2, 1)).reshape(Bx * L_in, Cx).astype(jnp.float32)
    kernel = functools.partial(_msresnet_kernel, cfg, layout)
    out = pl.pallas_call(
        kernel,
        out_shape=jax.ShapeDtypeStruct((B, nc_pad), jnp.float32),
    )(x2d, packed)
    return out[:, :num_classes]


# ----------------------------------------------------------------------------
# Deterministic parameter init (PyTorch-like), BN folded, scale branches fused
# (zero-padded to 7 taps, block-diagonal), everything packed into ONE buffer.
# ----------------------------------------------------------------------------
def build_msresnet(key, *, in_channels, out_len, num_classes, batch, feat_len,
                   n_blocks=3, scales=(3, 5, 7), nc_pad=128):
    assert num_classes <= nc_pad
    cin, B, L_in = in_channels, batch, feat_len
    n_scales = len(scales)
    L_conv = (L_in - 7) // 2 + 1            # Conv1d(k=7, s=2, p=0)
    L = L_conv // 2                          # MaxPool1d(2)
    S = B * (L + 6)                          # batch-stacked zero-padded slab rows
    Lc = S - 6                               # 'same'-conv output rows over the slab
    Lh = B * L_in - 6                        # stride-1 stem conv rows (stacked)

    key_holder = [key]

    def nk():
        key_holder[0], sub = jax.random.split(key_holder[0])
        return sub

    def uniform(shape, bound):
        return np.asarray(jax.random.uniform(nk(), shape, jnp.float32, -bound, bound))

    def conv_init(cout, cin_, ksz):
        bound = 1.0 / math.sqrt(cin_ * ksz)
        return uniform((cout, cin_, ksz), bound), uniform((cout,), bound)

    def bn_fold(c, eps=1e-5):
        gamma = 1.0 + 0.1 * np.asarray(jax.random.normal(nk(), (c,), jnp.float32))
        beta = 0.1 * np.asarray(jax.random.normal(nk(), (c,), jnp.float32))
        mean = 0.1 * np.asarray(jax.random.normal(nk(), (c,), jnp.float32))
        var = 1.0 + 0.1 * np.asarray(jax.random.uniform(nk(), (c,), jnp.float32))
        scale = gamma / np.sqrt(var + eps)
        return scale, beta - mean * scale

    entries = []

    # ---- stem: Conv1d(cin, cin, 7, stride=2) with BN folded ----
    w_s, b_s = conv_init(cin, cin, 7)
    s_s, t_s = bn_fold(cin)
    stem_w = np.zeros((KMAX * cin, cin), np.float32)
    for k in range(KMAX):
        stem_w[k * cin:(k + 1) * cin, :] = (w_s[:, :, k] * s_s[:, None]).T
    entries.append(("stem_w", stem_w))
    entries.append(("stem_b", (b_s * s_s + t_s).reshape(1, cin).astype(np.float32)))

    # ---- stride-2 + maxpool 0/1 selection matrices, already in slab layout ----
    sel_a = np.zeros((S, Lh), np.float32)
    sel_c = np.zeros((S, Lh), np.float32)
    for b in range(B):
        for i in range(L):
            r = b * (L + 6) + 3 + i
            p = b * L_in + 4 * i
            sel_a[r, p] = 1.0
            sel_c[r, p + 2] = 1.0
    entries += [("sel_a", sel_a), ("sel_c", sel_c)]

    # ---- residual blocks: per depth, fuse the 3 scale branches ----
    c_blk = cin
    for d in range(n_blocks):
        c_out = 2 * c_blk
        in_w = c_blk if d == 0 else n_scales * c_blk
        out_w = n_scales * c_out
        W1 = np.zeros((KMAX * in_w, out_w), np.float32)
        W2 = np.zeros((KMAX * out_w, out_w), np.float32)
        Wd = np.zeros((in_w, out_w), np.float32)
        B1 = np.zeros((1, out_w), np.float32)
        B2 = np.zeros((1, out_w), np.float32)
        for si, ks in enumerate(scales):
            off = (KMAX - ks) // 2
            w1, b1 = conv_init(c_out, c_blk, ks)
            s1, t1 = bn_fold(c_out)
            w2, b2 = conv_init(c_out, c_out, ks)
            wdn, bdn = conv_init(c_out, c_blk, 1)
            s2, t2 = bn_fold(c_out)
            oc = slice(si * c_out, (si + 1) * c_out)
            i0 = 0 if d == 0 else si * c_blk
            for kk in range(ks):
                k = off + kk
                W1[k * in_w + i0:k * in_w + i0 + c_blk, oc] = (w1[:, :, kk] * s1[:, None]).T
                W2[k * out_w + si * c_out:k * out_w + (si + 1) * c_out, oc] = \
                    (w2[:, :, kk] * s2[:, None]).T
            Wd[i0:i0 + c_blk, oc] = (wdn[:, :, 0] * s2[:, None]).T
            B1[0, oc] = b1 * s1 + t1
            B2[0, oc] = (b2 + bdn) * s2 + t2          # BN2 after the residual add
        entries += [(f"w1_{d}", W1), (f"b1_{d}", B1),
                    (f"w2_{d}", W2), (f"wd_{d}", Wd), (f"b2_{d}", B2)]
        c_blk = c_out

    # ---- AdaptiveAvgPool1d as an averaging matrix over slab rows ----
    apool = np.zeros((out_len * B, S), np.float32)
    for i in range(out_len):
        s0 = (i * L) // out_len
        e0 = -(-((i + 1) * L) // out_len)
        for b in range(B):
            r0 = b * (L + 6) + 3
            apool[i * B + b, r0 + s0:r0 + e0] = 1.0 / (e0 - s0)
    entries.append(("apool", apool))

    # ---- final Linear, rearranged to (pool position, channel) order and
    #      zero-padded to nc_pad lanes so the output store is lane-dense ----
    c_final = c_blk
    cf3 = n_scales * c_final
    feat_dim = cf3 * out_len                  # == torch fcn in_features iff cin == 1
    bound = 1.0 / math.sqrt(feat_dim)
    w_fc = uniform((num_classes, feat_dim), bound)
    b_fc = uniform((num_classes,), bound)
    wfc = np.zeros((out_len * cf3, nc_pad), np.float32)
    for i in range(out_len):
        for ch in range(cf3):
            wfc[i * cf3 + ch, :num_classes] = w_fc[:, ch * out_len + i]
    bfc = np.zeros((1, nc_pad), np.float32)
    bfc[0, :num_classes] = b_fc
    entries += [("wfc", wfc), ("bfc", bfc)]

    # ---- pack everything into one lane-padded f32 buffer (single DMA) ----
    max_c = max(a.shape[1] for _, a in entries)
    width = max(128, ((max_c + 127) // 128) * 128)
    layout, rows_np, off = {}, [], 0
    for name, arr in entries:
        r, c = arr.shape
        layout[name] = (off, r, c)
        buf = np.zeros((r, width), np.float32)
        buf[:, :c] = arr
        rows_np.append(buf)
        off += r
    pad_r = (-off) % 8
    if pad_r:
        rows_np.append(np.zeros((pad_r, width), np.float32))
    packed = jnp.asarray(np.concatenate(rows_np, axis=0))
    cfg = (cin, B, L, S, Lc, Lh, n_blocks, out_len, nc_pad)
    return packed, layout, cfg


if __name__ == "__main__":
    key = jax.random.PRNGKey(0)
    kx, kp = jax.random.split(key)

    # fcn in_features matches the produced features only when in_channels == 1
    B, C_IN, F_LEN = 2, 1, 64
    OUT_LEN, NUM_CLASSES, N_BLOCKS = 4, 5, 3
    SCALES = (3, 5, 7)

    x = jax.random.normal(kx, (B, C_IN, F_LEN), dtype=jnp.float32)
    packed, layout, cfg = build_msresnet(
        kp, in_channels=C_IN, out_len=OUT_LEN, num_classes=NUM_CLASSES,
        batch=B, feat_len=F_LEN, n_blocks=N_BLOCKS, scales=SCALES)

    forward = jax.jit(
        lambda xx, pp: msresnet_forward(xx, pp, layout, cfg, NUM_CLASSES))
    logits = jax.block_until_ready(forward(x, packed))
    assert logits.shape == (B, NUM_CLASSES)
    print("KERNEL_OK")
</pallas_src>

<mosaic_0001>
module attributes {stable_mosaic.version = 11 : i64} {
  func.func @_msresnet_kernel(%arg0: memref<128x1xf32, #tpu.memory_space<vmem>>, %arg1: memref<648x128xf32, #tpu.memory_space<vmem>>, %arg2: memref<2x128xf32, #tpu.memory_space<vmem>>) attributes {dimension_semantics = [], scalar_prefetch = 0 : i64, scratch_operands = 0 : i64, tpu.core_type = #tpu.core_type<tc>} {
    %c0 = arith.constant 0 : index
    %c0_0 = arith.constant 0 : index
    %0 = vector.load %arg0[%c0, %c0_0] : memref<128x1xf32, #tpu.memory_space<vmem>>, vector<128x1xf32>
    %c0_1 = arith.constant 0 : index
    %c0_2 = arith.constant 0 : index
    %1 = vector.load %arg1[%c0_1, %c0_2] : memref<648x128xf32, #tpu.memory_space<vmem>>, vector<7x1xf32>
    %c7 = arith.constant 7 : index
    %c0_3 = arith.constant 0 : index
    %2 = vector.load %arg1[%c7, %c0_3] : memref<648x128xf32, #tpu.memory_space<vmem>>, vector<1x1xf32>
    %cst = arith.constant 0.000000e+00 : f32
    %3 = vector.broadcast %cst : f32 to vector<122x1xf32>
    %4 = vector.extract_strided_slice %0 {offsets = [0, 0], sizes = [122, 1], strides = [1, 1]} : vector<128x1xf32> to vector<122x1xf32>
    %5 = vector.extract_strided_slice %1 {offsets = [0, 0], sizes = [1, 1], strides = [1, 1]} : vector<7x1xf32> to vector<1x1xf32>
    %6 = vector.broadcast %5 : vector<1x1xf32> to vector<122x1xf32>
    %7 = arith.mulf %4, %6 : vector<122x1xf32>
    %8 = arith.addf %3, %7 : vector<122x1xf32>
    %9 = vector.extract_strided_slice %0 {offsets = [1, 0], sizes = [122, 1], strides = [1, 1]} : vector<128x1xf32> to vector<122x1xf32>
    %10 = vector.extract_strided_slice %1 {offsets = [1, 0], sizes = [1, 1], strides = [1, 1]} : vector<7x1xf32> to vector<1x1xf32>
    %11 = vector.broadcast %10 : vector<1x1xf32> to vector<122x1xf32>
    %12 = arith.mulf %9, %11 : vector<122x1xf32>
    %13 = arith.addf %8, %12 : vector<122x1xf32>
    %14 = vector.extract_strided_slice %0 {offsets = [2, 0], sizes = [122, 1], strides = [1, 1]} : vector<128x1xf32> to vector<122x1xf32>
    %15 = vector.extract_strided_slice %1 {offsets = [2, 0], sizes = [1, 1], strides = [1, 1]} : vector<7x1xf32> to vector<1x1xf32>
    %16 = vector.broadcast %15 : vector<1x1xf32> to vector<122x1xf32>
    %17 = arith.mulf %14, %16 : vector<122x1xf32>
    %18 = arith.addf %13, %17 : vector<122x1xf32>
    %19 = vector.extract_strided_slice %0 {offsets = [3, 0], sizes = [122, 1], strides = [1, 1]} : vector<128x1xf32> to vector<122x1xf32>
    %20 = vector.extract_strided_slice %1 {offsets = [3, 0], sizes = [1, 1], strides = [1, 1]} : vector<7x1xf32> to vector<1x1xf32>
    %21 = vector.broadcast %20 : vector<1x1xf32> to vector<122x1xf32>
    %22 = arith.mulf %19, %21 : vector<122x1xf32>
    %23 = arith.addf %18, %22 : vector<122x1xf32>
    %24 = vector.extract_strided_slice %0 {offsets = [4, 0], sizes = [122, 1], strides = [1, 1]} : vector<128x1xf32> to vector<122x1xf32>
    %25 = vector.extract_strided_slice %1 {offsets = [4, 0], sizes = [1, 1], strides = [1, 1]} : vector<7x1xf32> to vector<1x1xf32>
    %26 = vector.broadcast %25 : vector<1x1xf32> to vector<122x1xf32>
    %27 = arith.mulf %24, %26 : vector<122x1xf32>
    %28 = arith.addf %23, %27 : vector<122x1xf32>
    %29 = vector.extract_strided_slice %0 {offsets = [5, 0], sizes = [122, 1], strides = [1, 1]} : vector<128x1xf32> to vector<122x1xf32>
    %30 = vector.extract_strided_slice %1 {offsets = [5, 0], sizes = [1, 1], strides = [1, 1]} : vector<7x1xf32> to vector<1x1xf32>
    %31 = vector.broadcast %30 : vector<1x1xf32> to vector<122x1xf32>
    %32 = arith.mulf %29, %31 : vector<122x1xf32>
    %33 = arith.addf %28, %32 : vector<122x1xf32>
    %34 = vector.extract_strided_slice %0 {offsets = [6, 0], sizes = [122, 1], strides = [1, 1]} : vector<128x1xf32> to vector<122x1xf32>
    %35 = vector.extract_strided_slice %1 {offsets = [6, 0], sizes = [1, 1], strides = [1, 1]} : vector<7x1xf32> to vector<1x1xf32>
    %36 = vector.broadcast %35 : vector<1x1xf32> to vector<122x1xf32>
    %37 = arith.mulf %34, %36 : vector<122x1xf32>
    %38 = arith.addf %33, %37 : vector<122x1xf32>
    %39 = vector.broadcast %2 : vector<1x1xf32> to vector<122x1xf32>
    %40 = arith.addf %38, %39 : vector<122x1xf32>
    %c8 = arith.constant 8 : index
    %c0_4 = arith.constant 0 : index
    %41 = vector.load %arg1[%c8, %c0_4] : memref<648x128xf32, #tpu.memory_space<vmem>>, vector<40x122xf32>
    %c48 = arith.constant 48 : index
    %c0_5 = arith.constant 0 : index
    %42 = vector.load %arg1[%c48, %c0_5] : memref<648x128xf32, #tpu.memory_space<vmem>>, vector<40x122xf32>
    %cst_6 = arith.constant dense<0.000000e+00> : vector<40x1xf32>
    %43 = tpu.matmul %41, %40, %cst_6 {dimension_numbers = #tpu.dot_dimension_numbers<[1], [0], [0], [1], [0, 0, 1, 1], [], []>} : vector<40x122xf32>, vector<122x1xf32>, vector<40x1xf32> -> vector<40x1xf32>
    %cst_7 = arith.constant dense<0.000000e+00> : vector<40x1xf32>
    %44 = tpu.matmul %42, %40, %cst_7 {dimension_numbers = #tpu.dot_dimension_numbers<[1], [0], [0], [1], [0, 0, 1, 1], [], []>} : vector<40x122xf32>, vector<122x1xf32>, vector<40x1xf32> -> vector<40x1xf32>
    %45 = arith.maximumf %43, %44 : vector<40x1xf32>
    %cst_8 = arith.constant 0.000000e+00 : f32
    %46 = vector.broadcast %cst_8 : f32 to vector<40x1xf32>
    %47 = arith.maximumf %45, %46 : vector<40x1xf32>
    %48 = tpu.iota {dimensions = array<i32: 0>} : vector<40x1xi32>
    %c3_i32 = arith.constant 3 : i32
    %49 = vector.broadcast %c3_i32 : i32 to vector<40x1xi32>
    %50 = arith.cmpi sge, %48, %49 : vector<40x1xi32>
    %c37_i32 = arith.constant 37 : i32
    %51 = vector.broadcast %c37_i32 : i32 to vector<40x1xi32>
    %52 = arith.cmpi slt, %48, %51 : vector<40x1xi32>
    %53 = arith.andi %50, %52 : vector<40x1xi1>
    %c3_i32_9 = arith.constant 3 : i32
    %54 = vector.broadcast %c3_i32_9 : i32 to vector<40x1xi32>
    %55 = arith.subi %48, %54 : vector<40x1xi32>
    %c20_i32 = arith.constant 20 : i32
    %c0_i32 = arith.constant 0 : i32
    %56 = arith.cmpi eq, %c20_i32, %c0_i32 : i32
    %c1_i32 = arith.constant 1 : i32
    %57 = arith.select %56, %c1_i32, %c20_i32 : i32
    %58 = vector.broadcast %57 : i32 to vector<40x1xi32>
    %59 = arith.remsi %55, %58 : vector<40x1xi32>
    %c0_i32_10 = arith.constant 0 : i32
    %60 = vector.broadcast %c0_i32_10 : i32 to vector<40x1xi32>
    %61 = arith.cmpi ne, %59, %60 : vector<40x1xi32>
    %c0_i32_11 = arith.constant 0 : i32
    %62 = vector.broadcast %c0_i32_11 : i32 to vector<40x1xi32>
    %63 = arith.cmpi slt, %59, %62 : vector<40x1xi32>
    %c0_i32_12 = arith.constant 0 : i32
    %64 = arith.cmpi slt, %57, %c0_i32_12 : i32
    %65 = vector.broadcast %64 : i1 to vector<40x1xi1>
    %66 = vector.broadcast %65 : vector<40x1xi1> to vector<40x1xi1>
    %67 = arith.xori %63, %66 : vector<40x1xi1>
    %68 = arith.andi %67, %61 : vector<40x1xi1>
    %69 = vector.broadcast %57 : i32 to vector<40x1xi32>
    %70 = arith.addi %59, %69 : vector<40x1xi32>
    %71 = arith.select %68, %70, %59 : vector<40x1xi1>, vector<40x1xi32>
    %c14_i32 = arith.constant 14 : i32
    %72 = vector.broadcast %c14_i32 : i32 to vector<40x1xi32>
    %73 = arith.cmpi slt, %71, %72 : vector<40x1xi32>
    %74 = arith.andi %53, %73 : vector<40x1xi1>
    %cst_13 = arith.constant 1.000000e+00 : f32
    %cst_14 = arith.constant 0.000000e+00 : f32
    %75 = vector.broadcast %cst_13 : f32 to vector<40x1xf32>
    %76 = vector.broadcast %cst_14 : f32 to vector<40x1xf32>
    %77 = arith.select %74, %75, %76 : vector<40x1xi1>, vector<40x1xf32>
    %c88 = arith.constant 88 : index
    %c0_15 = arith.constant 0 : index
    %78 = vector.load %arg1[%c88, %c0_15] : memref<648x128xf32, #tpu.memory_space<vmem>>, vector<7x6xf32>
    %c95 = arith.constant 95 : index
    %c0_16 = arith.constant 0 : index
    %79 = vector.load %arg1[%c95, %c0_16] : memref<648x128xf32, #tpu.memory_space<vmem>>, vector<1x6xf32>
    %c96 = arith.constant 96 : index
    %c0_17 = arith.constant 0 : index
    %80 = vector.load %arg1[%c96, %c0_17] : memref<648x128xf32, #tpu.memory_space<vmem>>, vector<42x6xf32>
    %c138 = arith.constant 138 : index
    %c0_18 = arith.constant 0 : index
    %81 = vector.load %arg1[%c138, %c0_18] : memref<648x128xf32, #tpu.memory_space<vmem>>, vector<1x6xf32>
    %c139 = arith.constant 139 : index
    %c0_19 = arith.constant 0 : index
    %82 = vector.load %arg1[%c139, %c0_19] : memref<648x128xf32, #tpu.memory_space<vmem>>, vector<1x6xf32>
    %cst_20 = arith.constant 0.000000e+00 : f32
    %83 = vector.broadcast %cst_20 : f32 to vector<3x6xf32>
    %cst_21 = arith.constant 0.000000e+00 : f32
    %84 = vector.broadcast %cst_21 : f32 to vector<34x6xf32>
    %85 = vector.extract_strided_slice %47 {offsets = [0, 0], sizes = [34, 1], strides = [1, 1]} : vector<40x1xf32> to vector<34x1xf32>
    %86 = vector.extract_strided_slice %78 {offsets = [0, 0], sizes = [1, 6], strides = [1, 1]} : vector<7x6xf32> to vector<1x6xf32>
    %87 = vector.broadcast %85 : vector<34x1xf32> to vector<34x6xf32>
    %88 = vector.broadcast %86 : vector<1x6xf32> to vector<34x6xf32>
    %89 = arith.mulf %87, %88 : vector<34x6xf32>
    %90 = arith.addf %84, %89 : vector<34x6xf32>
    %91 = vector.extract_strided_slice %47 {offsets = [1, 0], sizes = [34, 1], strides = [1, 1]} : vector<40x1xf32> to vector<34x1xf32>
    %92 = vector.extract_strided_slice %78 {offsets = [1, 0], sizes = [1, 6], strides = [1, 1]} : vector<7x6xf32> to vector<1x6xf32>
    %93 = vector.broadcast %91 : vector<34x1xf32> to vector<34x6xf32>
    %94 = vector.broadcast %92 : vector<1x6xf32> to vector<34x6xf32>
    %95 = arith.mulf %93, %94 : vector<34x6xf32>
    %96 = arith.addf %90, %95 : vector<34x6xf32>
    %97 = vector.extract_strided_slice %47 {offsets = [2, 0], sizes = [34, 1], strides = [1, 1]} : vector<40x1xf32> to vector<34x1xf32>
    %98 = vector.extract_strided_slice %78 {offsets = [2, 0], sizes = [1, 6], strides = [1, 1]} : vector<7x6xf32> to vector<1x6xf32>
    %99 = vector.broadcast %97 : vector<34x1xf32> to vector<34x6xf32>
    %100 = vector.broadcast %98 : vector<1x6xf32> to vector<34x6xf32>
    %101 = arith.mulf %99, %100 : vector<34x6xf32>
    %102 = arith.addf %96, %101 : vector<34x6xf32>
    %103 = vector.extract_strided_slice %47 {offsets = [3, 0], sizes = [34, 1], strides = [1, 1]} : vector<40x1xf32> to vector<34x1xf32>
    %104 = vector.extract_strided_slice %78 {offsets = [3, 0], sizes = [1, 6], strides = [1, 1]} : vector<7x6xf32> to vector<1x6xf32>
    %105 = vector.broadcast %103 : vector<34x1xf32> to vector<34x6xf32>
    %106 = vector.broadcast %104 : vector<1x6xf32> to vector<34x6xf32>
    %107 = arith.mulf %105, %106 : vector<34x6xf32>
    %108 = arith.addf %102, %107 : vector<34x6xf32>
    %109 = vector.extract_strided_slice %47 {offsets = [4, 0], sizes = [34, 1], strides = [1, 1]} : vector<40x1xf32> to vector<34x1xf32>
    %110 = vector.extract_strided_slice %78 {offsets = [4, 0], sizes = [1, 6], strides = [1, 1]} : vector<7x6xf32> to vector<1x6xf32>
    %111 = vector.broadcast %109 : vector<34x1xf32> to vector<34x6xf32>
    %112 = vector.broadcast %110 : vector<1x6xf32> to vector<34x6xf32>
    %113 = arith.mulf %111, %112 : vector<34x6xf32>
    %114 = arith.addf %108, %113 : vector<34x6xf32>
    %115 = vector.extract_strided_slice %47 {offsets = [5, 0], sizes = [34, 1], strides = [1, 1]} : vector<40x1xf32> to vector<34x1xf32>
    %116 = vector.extract_strided_slice %78 {offsets = [5, 0], sizes = [1, 6], strides = [1, 1]} : vector<7x6xf32> to vector<1x6xf32>
    %117 = vector.broadcast %115 : vector<34x1xf32> to vector<34x6xf32>
    %118 = vector.broadcast %116 : vector<1x6xf32> to vector<34x6xf32>
    %119 = arith.mulf %117, %118 : vector<34x6xf32>
    %120 = arith.addf %114, %119 : vector<34x6xf32>
    %121 = vector.extract_strided_slice %47 {offsets = [6, 0], sizes = [34, 1], strides = [1, 1]} : vector<40x1xf32> to vector<34x1xf32>
    %122 = vector.extract_strided_slice %78 {offsets = [6, 0], sizes = [1, 6], strides = [1, 1]} : vector<7x6xf32> to vector<1x6xf32>
    %123 = vector.broadcast %121 : vector<34x1xf32> to vector<34x6xf32>
    %124 = vector.broadcast %122 : vector<1x6xf32> to vector<34x6xf32>
    %125 = arith.mulf %123, %124 : vector<34x6xf32>
    %126 = arith.addf %120, %125 : vector<34x6xf32>
    %127 = vector.broadcast %79 : vector<1x6xf32> to vector<34x6xf32>
    %128 = arith.addf %126, %127 : vector<34x6xf32>
    %cst_22 = arith.constant 0.000000e+00 : f32
    %129 = vector.broadcast %cst_22 : f32 to vector<34x6xf32>
    %130 = arith.maximumf %128, %129 : vector<34x6xf32>
    %131 = tpu.concatenate %83, %130, %83 in 0 : vector<3x6xf32>, vector<34x6xf32>, vector<3x6xf32> -> vector<40x6xf32>
    %132 = vector.broadcast %77 : vector<40x1xf32> to vector<40x6xf32>
    %133 = arith.mulf %131, %132 : vector<40x6xf32>
    %134 = vector.extract_strided_slice %47 {offsets = [3, 0], sizes = [34, 1], strides = [1, 1]} : vector<40x1xf32> to vector<34x1xf32>
    %135 = vector.broadcast %134 : vector<34x1xf32> to vector<34x6xf32>
    %136 = vector.broadcast %81 : vector<1x6xf32> to vector<34x6xf32>
    %137 = arith.mulf %135, %136 : vector<34x6xf32>
    %138 = vector.extract_strided_slice %133 {offsets = [0, 0], sizes = [34, 6], strides = [1, 1]} : vector<40x6xf32> to vector<34x6xf32>
    %139 = vector.extract_strided_slice %80 {offsets = [0, 0], sizes = [6, 6], strides = [1, 1]} : vector<42x6xf32> to vector<6x6xf32>
    %cst_23 = arith.constant dense<0.000000e+00> : vector<34x6xf32>
    %140 = tpu.matmul %138, %139, %cst_23 {dimension_numbers = #tpu.dot_dimension_numbers<[1], [0], [0], [1], [0, 0, 1, 1], [], []>} : vector<34x6xf32>, vector<6x6xf32>, vector<34x6xf32> -> vector<34x6xf32>
    %141 = arith.addf %137, %140 : vector<34x6xf32>
    %142 = vector.extract_strided_slice %133 {offsets = [1, 0], sizes = [34, 6], strides = [1, 1]} : vector<40x6xf32> to vector<34x6xf32>
    %143 = vector.extract_strided_slice %80 {offsets = [6, 0], sizes = [6, 6], strides = [1, 1]} : vector<42x6xf32> to vector<6x6xf32>
    %cst_24 = arith.constant dense<0.000000e+00> : vector<34x6xf32>
    %144 = tpu.matmul %142, %143, %cst_24 {dimension_numbers = #tpu.dot_dimension_numbers<[1], [0], [0], [1], [0, 0, 1, 1], [], []>} : vector<34x6xf32>, vector<6x6xf32>, vector<34x6xf32> -> vector<34x6xf32>
    %145 = arith.addf %141, %144 : vector<34x6xf32>
    %146 = vector.extract_strided_slice %133 {offsets = [2, 0], sizes = [34, 6], strides = [1, 1]} : vector<40x6xf32> to vector<34x6xf32>
    %147 = vector.extract_strided_slice %80 {offsets = [12, 0], sizes = [6, 6], strides = [1, 1]} : vector<42x6xf32> to vector<6x6xf32>
    %cst_25 = arith.constant dense<0.000000e+00> : vector<34x6xf32>
    %148 = tpu.matmul %146, %147, %cst_25 {dimension_numbers = #tpu.dot_dimension_numbers<[1], [0], [0], [1], [0, 0, 1, 1], [], []>} : vector<34x6xf32>, vector<6x6xf32>, vector<34x6xf32> -> vector<34x6xf32>
    %149 = arith.addf %145, %148 : vector<34x6xf32>
    %150 = vector.extract_strided_slice %133 {offsets = [3, 0], sizes = [34, 6], strides = [1, 1]} : vector<40x6xf32> to vector<34x6xf32>
    %151 = vector.extract_strided_slice %80 {offsets = [18, 0], sizes = [6, 6], strides = [1, 1]} : vector<42x6xf32> to vector<6x6xf32>
    %cst_26 = arith.constant dense<0.000000e+00> : vector<34x6xf32>
    %152 = tpu.matmul %150, %151, %cst_26 {dimension_numbers = #tpu.dot_dimension_numbers<[1], [0], [0], [1], [0, 0, 1, 1], [], []>} : vector<34x6xf32>, vector<6x6xf32>, vector<34x6xf32> -> vector<34x6xf32>
    %153 = arith.addf %149, %152 : vector<34x6xf32>
    %154 = vector.extract_strided_slice %133 {offsets = [4, 0], sizes = [34, 6], strides = [1, 1]} : vector<40x6xf32> to vector<34x6xf32>
    %155 = vector.extract_strided_slice %80 {offsets = [24, 0], sizes = [6, 6], strides = [1, 1]} : vector<42x6xf32> to vector<6x6xf32>
    %cst_27 = arith.constant dense<0.000000e+00> : vector<34x6xf32>
    %156 = tpu.matmul %154, %155, %cst_27 {dimension_numbers = #tpu.dot_dimension_numbers<[1], [0], [0], [1], [0, 0, 1, 1], [], []>} : vector<34x6xf32>, vector<6x6xf32>, vector<34x6xf32> -> vector<34x6xf32>
    %157 = arith.addf %153, %156 : vector<34x6xf32>
    %158 = vector.extract_strided_slice %133 {offsets = [5, 0], sizes = [34, 6], strides = [1, 1]} : vector<40x6xf32> to vector<34x6xf32>
    %159 = vector.extract_strided_slice %80 {offsets = [30, 0], sizes = [6, 6], strides = [1, 1]} : vector<42x6xf32> to vector<6x6xf32>
    %cst_28 = arith.constant dense<0.000000e+00> : vector<34x6xf32>
    %160 = tpu.matmul %158, %159, %cst_28 {dimension_numbers = #tpu.dot_dimension_numbers<[1], [0], [0], [1], [0, 0, 1, 1], [], []>} : vector<34x6xf32>, vector<6x6xf32>, vector<34x6xf32> -> vector<34x6xf32>
    %161 = arith.addf %157, %160 : vector<34x6xf32>
    %162 = vector.extract_strided_slice %133 {offsets = [6, 0], sizes = [34, 6], strides = [1, 1]} : vector<40x6xf32> to vector<34x6xf32>
    %163 = vector.extract_strided_slice %80 {offsets = [36, 0], sizes = [6, 6], strides = [1, 1]} : vector<42x6xf32> to vector<6x6xf32>
    %cst_29 = arith.constant dense<0.000000e+00> : vector<34x6xf32>
    %164 = tpu.matmul %162, %163, %cst_29 {dimension_numbers = #tpu.dot_dimension_numbers<[1], [0], [0], [1], [0, 0, 1, 1], [], []>} : vector<34x6xf32>, vector<6x6xf32>, vector<34x6xf32> -> vector<34x6xf32>
    %165 = arith.addf %161, %164 : vector<34x6xf32>
    %166 = vector.broadcast %82 : vector<1x6xf32> to vector<34x6xf32>
    %167 = arith.addf %165, %166 : vector<34x6xf32>
    %cst_30 = arith.constant 0.000000e+00 : f32
    %168 = vector.broadcast %cst_30 : f32 to vector<34x6xf32>
    %169 = arith.maximumf %167, %168 : vector<34x6xf32>
    %170 = tpu.concatenate %83, %169, %83 in 0 : vector<3x6xf32>, vector<34x6xf32>, vector<3x6xf32> -> vector<40x6xf32>
    %171 = vector.broadcast %77 : vector<40x1xf32> to vector<40x6xf32>
    %172 = arith.mulf %170, %171 : vector<40x6xf32>
    %c140 = arith.constant 140 : index
    %c0_31 = arith.constant 0 : index
    %173 = vector.load %arg1[%c140, %c0_31] : memref<648x128xf32, #tpu.memory_space<vmem>>, vector<42x12xf32>
    %c182 = arith.constant 182 : index
    %c0_32 = arith.constant 0 : index
    %174 = vector.load %arg1[%c182, %c0_32] : memref<648x128xf32, #tpu.memory_space<vmem>>, vector<1x12xf32>
    %c183 = arith.constant 183 : index
    %c0_33 = arith.constant 0 : index
    %175 = vector.load %arg1[%c183, %c0_33] : memref<648x128xf32, #tpu.memory_space<vmem>>, vector<84x12xf32>
    %c267 = arith.constant 267 : index
    %c0_34 = arith.constant 0 : index
    %176 = vector.load %arg1[%c267, %c0_34] : memref<648x128xf32, #tpu.memory_space<vmem>>, vector<6x12xf32>
    %c273 = arith.constant 273 : index
    %c0_35 = arith.constant 0 : index
    %177 = vector.load %arg1[%c273, %c0_35] : memref<648x128xf32, #tpu.memory_space<vmem>>, vector<1x12xf32>
    %cst_36 = arith.constant 0.000000e+00 : f32
    %178 = vector.broadcast %cst_36 : f32 to vector<3x12xf32>
    %cst_37 = arith.constant 0.000000e+00 : f32
    %179 = vector.broadcast %cst_37 : f32 to vector<34x12xf32>
    %180 = vector.extract_strided_slice %172 {offsets = [0, 0], sizes = [34, 6], strides = [1, 1]} : vector<40x6xf32> to vector<34x6xf32>
    %181 = vector.extract_strided_slice %173 {offsets = [0, 0], sizes = [6, 12], strides = [1, 1]} : vector<42x12xf32> to vector<6x12xf32>
    %cst_38 = arith.constant dense<0.000000e+00> : vector<34x12xf32>
    %182 = tpu.matmul %180, %181, %cst_38 {dimension_numbers = #tpu.dot_dimension_numbers<[1], [0], [0], [1], [0, 0, 1, 1], [], []>} : vector<34x6xf32>, vector<6x12xf32>, vector<34x12xf32> -> vector<34x12xf32>
    %183 = arith.addf %179, %182 : vector<34x12xf32>
    %184 = vector.extract_strided_slice %172 {offsets = [1, 0], sizes = [34, 6], strides = [1, 1]} : vector<40x6xf32> to vector<34x6xf32>
    %185 = vector.extract_strided_slice %173 {offsets = [6, 0], sizes = [6, 12], strides = [1, 1]} : vector<42x12xf32> to vector<6x12xf32>
    %cst_39 = arith.constant dense<0.000000e+00> : vector<34x12xf32>
    %186 = tpu.matmul %184, %185, %cst_39 {dimension_numbers = #tpu.dot_dimension_numbers<[1], [0], [0], [1], [0, 0, 1, 1], [], []>} : vector<34x6xf32>, vector<6x12xf32>, vector<34x12xf32> -> vector<34x12xf32>
    %187 = arith.addf %183, %186 : vector<34x12xf32>
    %188 = vector.extract_strided_slice %172 {offsets = [2, 0], sizes = [34, 6], strides = [1, 1]} : vector<40x6xf32> to vector<34x6xf32>
    %189 = vector.extract_strided_slice %173 {offsets = [12, 0], sizes = [6, 12], strides = [1, 1]} : vector<42x12xf32> to vector<6x12xf32>
    %cst_40 = arith.constant dense<0.000000e+00> : vector<34x12xf32>
    %190 = tpu.matmul %188, %189, %cst_40 {dimension_numbers = #tpu.dot_dimension_numbers<[1], [0], [0], [1], [0, 0, 1, 1], [], []>} : vector<34x6xf32>, vector<6x12xf32>, vector<34x12xf32> -> vector<34x12xf32>
    %191 = arith.addf %187, %190 : vector<34x12xf32>
    %192 = vector.extract_strided_slice %172 {offsets = [3, 0], sizes = [34, 6], strides = [1, 1]} : vector<40x6xf32> to vector<34x6xf32>
    %193 = vector.extract_strided_slice %173 {offsets = [18, 0], sizes = [6, 12], strides = [1, 1]} : vector<42x12xf32> to vector<6x12xf32>
    %cst_41 = arith.constant dense<0.000000e+00> : vector<34x12xf32>
    %194 = tpu.matmul %192, %193, %cst_41 {dimension_numbers = #tpu.dot_dimension_numbers<[1], [0], [0], [1], [0, 0, 1, 1], [], []>} : vector<34x6xf32>, vector<6x12xf32>, vector<34x12xf32> -> vector<34x12xf32>
    %195 = arith.addf %191, %194 : vector<34x12xf32>
    %196 = vector.extract_strided_slice %172 {offsets = [4, 0], sizes = [34, 6], strides = [1, 1]} : vector<40x6xf32> to vector<34x6xf32>
    %197 = vector.extract_strided_slice %173 {offsets = [24, 0], sizes = [6, 12], strides = [1, 1]} : vector<42x12xf32> to vector<6x12xf32>
    %cst_42 = arith.constant dense<0.000000e+00> : vector<34x12xf32>
    %198 = tpu.matmul %196, %197, %cst_42 {dimension_numbers = #tpu.dot_dimension_numbers<[1], [0], [0], [1], [0, 0, 1, 1], [], []>} : vector<34x6xf32>, vector<6x12xf32>, vector<34x12xf32> -> vector<34x12xf32>
    %199 = arith.addf %195, %198 : vector<34x12xf32>
    %200 = vector.extract_strided_slice %172 {offsets = [5, 0], sizes = [34, 6], strides = [1, 1]} : vector<40x6xf32> to vector<34x6xf32>
    %201 = vector.extract_strided_slice %173 {offsets = [30, 0], sizes = [6, 12], strides = [1, 1]} : vector<42x12xf32> to vector<6x12xf32>
    %cst_43 = arith.constant dense<0.000000e+00> : vector<34x12xf32>
    %202 = tpu.matmul %200, %201, %cst_43 {dimension_numbers = #tpu.dot_dimension_numbers<[1], [0], [0], [1], [0, 0, 1, 1], [], []>} : vector<34x6xf32>, vector<6x12xf32>, vector<34x12xf32> -> vector<34x12xf32>
    %203 = arith.addf %199, %202 : vector<34x12xf32>
    %204 = vector.extract_strided_slice %172 {offsets = [6, 0], sizes = [34, 6], strides = [1, 1]} : vector<40x6xf32> to vector<34x6xf32>
    %205 = vector.extract_strided_slice %173 {offsets = [36, 0], sizes = [6, 12], strides = [1, 1]} : vector<42x12xf32> to vector<6x12xf32>
    %cst_44 = arith.constant dense<0.000000e+00> : vector<34x12xf32>
    %206 = tpu.matmul %204, %205, %cst_44 {dimension_numbers = #tpu.dot_dimension_numbers<[1], [0], [0], [1], [0, 0, 1, 1], [], []>} : vector<34x6xf32>, vector<6x12xf32>, vector<34x12xf32> -> vector<34x12xf32>
    %207 = arith.addf %203, %206 : vector<34x12xf32>
    %208 = vector.broadcast %174 : vector<1x12xf32> to vector<34x12xf32>
    %209 = arith.addf %207, %208 : vector<34x12xf32>
    %cst_45 = arith.constant 0.000000e+00 : f32
    %210 = vector.broadcast %cst_45 : f32 to vector<34x12xf32>
    %211 = arith.maximumf %209, %210 : vector<34x12xf32>
    %212 = tpu.concatenate %178, %211, %178 in 0 : vector<3x12xf32>, vector<34x12xf32>, vector<3x12xf32> -> vector<40x12xf32>
    %213 = vector.broadcast %77 : vector<40x1xf32> to vector<40x12xf32>
    %214 = arith.mulf %212, %213 : vector<40x12xf32>
    %215 = vector.extract_strided_slice %172 {offsets = [3, 0], sizes = [34, 6], strides = [1, 1]} : vector<40x6xf32> to vector<34x6xf32>
    %cst_46 = arith.constant dense<0.000000e+00> : vector<34x12xf32>
    %216 = tpu.matmul %215, %176, %cst_46 {dimension_numbers = #tpu.dot_dimension_numbers<[1], [0], [0], [1], [0, 0, 1, 1], [], []>} : vector<34x6xf32>, vector<6x12xf32>, vector<34x12xf32> -> vector<34x12xf32>
    %217 = vector.extract_strided_slice %214 {offsets = [0, 0], sizes = [34, 12], strides = [1, 1]} : vector<40x12xf32> to vector<34x12xf32>
    %218 = vector.extract_strided_slice %175 {offsets = [0, 0], sizes = [12, 12], strides = [1, 1]} : vector<84x12xf32> to vector<12x12xf32>
    %cst_47 = arith.constant dense<0.000000e+00> : vector<34x12xf32>
    %219 = tpu.matmul %217, %218, %cst_47 {dimension_numbers = #tpu.dot_dimension_numbers<[1], [0], [0], [1], [0, 0, 1, 1], [], []>} : vector<34x12xf32>, vector<12x12xf32>, vector<34x12xf32> -> vector<34x12xf32>
    %220 = arith.addf %216, %219 : vector<34x12xf32>
    %221 = vector.extract_strided_slice %214 {offsets = [1, 0], sizes = [34, 12], strides = [1, 1]} : vector<40x12xf32> to vector<34x12xf32>
    %222 = vector.extract_strided_slice %175 {offsets = [12, 0], sizes = [12, 12], strides = [1, 1]} : vector<84x12xf32> to vector<12x12xf32>
    %cst_48 = arith.constant dense<0.000000e+00> : vector<34x12xf32>
    %223 = tpu.matmul %221, %222, %cst_48 {dimension_numbers = #tpu.dot_dimension_numbers<[1], [0], [0], [1], [0, 0, 1, 1], [], []>} : vector<34x12xf32>, vector<12x12xf32>, vector<34x12xf32> -> vector<34x12xf32>
    %224 = arith.addf %220, %223 : vector<34x12xf32>
    %225 = vector.extract_strided_slice %214 {offsets = [2, 0], sizes = [34, 12], strides = [1, 1]} : vector<40x12xf32> to vector<34x12xf32>
    %226 = vector.extract_strided_slice %175 {offsets = [24, 0], sizes = [12, 12], strides = [1, 1]} : vector<84x12xf32> to vector<12x12xf32>
    %cst_49 = arith.constant dense<0.000000e+00> : vector<34x12xf32>
    %227 = tpu.matmul %225, %226, %cst_49 {dimension_numbers = #tpu.dot_dimension_numbers<[1], [0], [0], [1], [0, 0, 1, 1], [], []>} : vector<34x12xf32>, vector<12x12xf32>, vector<34x12xf32> -> vector<34x12xf32>
    %228 = arith.addf %224, %227 : vector<34x12xf32>
    %229 = vector.extract_strided_slice %214 {offsets = [3, 0], sizes = [34, 12], strides = [1, 1]} : vector<40x12xf32> to vector<34x12xf32>
    %230 = vector.extract_strided_slice %175 {offsets = [36, 0], sizes = [12, 12], strides = [1, 1]} : vector<84x12xf32> to vector<12x12xf32>
    %cst_50 = arith.constant dense<0.000000e+00> : vector<34x12xf32>
    %231 = tpu.matmul %229, %230, %cst_50 {dimension_numbers = #tpu.dot_dimension_numbers<[1], [0], [0], [1], [0, 0, 1, 1], [], []>} : vector<34x12xf32>, vector<12x12xf32>, vector<34x12xf32> -> vector<34x12xf32>
    %232 = arith.addf %228, %231 : vector<34x12xf32>
    %233 = vector.extract_strided_slice %214 {offsets = [4, 0], sizes = [34, 12], strides = [1, 1]} : vector<40x12xf32> to vector<34x12xf32>
    %234 = vector.extract_strided_slice %175 {offsets = [48, 0], sizes = [12, 12], strides = [1, 1]} : vector<84x12xf32> to vector<12x12xf32>
    %cst_51 = arith.constant dense<0.000000e+00> : vector<34x12xf32>
    %235 = tpu.matmul %233, %234, %cst_51 {dimension_numbers = #tpu.dot_dimension_numbers<[1], [0], [0], [1], [0, 0, 1, 1], [], []>} : vector<34x12xf32>, vector<12x12xf32>, vector<34x12xf32> -> vector<34x12xf32>
    %236 = arith.addf %232, %235 : vector<34x12xf32>
    %237 = vector.extract_strided_slice %214 {offsets = [5, 0], sizes = [34, 12], strides = [1, 1]} : vector<40x12xf32> to vector<34x12xf32>
    %238 = vector.extract_strided_slice %175 {offsets = [60, 0], sizes = [12, 12], strides = [1, 1]} : vector<84x12xf32> to vector<12x12xf32>
    %cst_52 = arith.constant dense<0.000000e+00> : vector<34x12xf32>
    %239 = tpu.matmul %237, %238, %cst_52 {dimension_numbers = #tpu.dot_dimension_numbers<[1], [0], [0], [1], [0, 0, 1, 1], [], []>} : vector<34x12xf32>, vector<12x12xf32>, vector<34x12xf32> -> vector<34x12xf32>
    %240 = arith.addf %236, %239 : vector<34x12xf32>
    %241 = vector.extract_strided_slice %214 {offsets = [6, 0], sizes = [34, 12], strides = [1, 1]} : vector<40x12xf32> to vector<34x12xf32>
    %242 = vector.extract_strided_slice %175 {offsets = [72, 0], sizes = [12, 12], strides = [1, 1]} : vector<84x12xf32> to vector<12x12xf32>
    %cst_53 = arith.constant dense<0.000000e+00> : vector<34x12xf32>
    %243 = tpu.matmul %241, %242, %cst_53 {dimension_numbers = #tpu.dot_dimension_numbers<[1], [0], [0], [1], [0, 0, 1, 1], [], []>} : vector<34x12xf32>, vector<12x12xf32>, vector<34x12xf32> -> vector<34x12xf32>
    %244 = arith.addf %240, %243 : vector<34x12xf32>
    %245 = vector.broadcast %177 : vector<1x12xf32> to vector<34x12xf32>
    %246 = arith.addf %244, %245 : vector<34x12xf32>
    %cst_54 = arith.constant 0.000000e+00 : f32
    %247 = vector.broadcast %cst_54 : f32 to vector<34x12xf32>
    %248 = arith.maximumf %246, %247 : vector<34x12xf32>
    %249 = tpu.concatenate %178, %248, %178 in 0 : vector<3x12xf32>, vector<34x12xf32>, vector<3x12xf32> -> vector<40x12xf32>
    %250 = vector.broadcast %77 : vector<40x1xf32> to vector<40x12xf32>
    %251 = arith.mulf %249, %250 : vector<40x12xf32>
    %c274 = arith.constant 274 : index
    %c0_55 = arith.constant 0 : index
    %252 = vector.load %arg1[%c274, %c0_55] : memref<648x128xf32, #tpu.memory_space<vmem>>, vector<84x24xf32>
    %c358 = arith.constant 358 : index
    %c0_56 = arith.constant 0 : index
    %253 = vector.load %arg1[%c358, %c0_56] : memref<648x128xf32, #tpu.memory_space<vmem>>, vector<1x24xf32>
    %c359 = arith.constant 359 : index
    %c0_57 = arith.constant 0 : index
    %254 = vector.load %arg1[%c359, %c0_57] : memref<648x128xf32, #tpu.memory_space<vmem>>, vector<168x24xf32>
    %c527 = arith.constant 527 : index
    %c0_58 = arith.constant 0 : index
    %255 = vector.load %arg1[%c527, %c0_58] : memref<648x128xf32, #tpu.memory_space<vmem>>, vector<12x24xf32>
    %c539 = arith.constant 539 : index
    %c0_59 = arith.constant 0 : index
    %256 = vector.load %arg1[%c539, %c0_59] : memref<648x128xf32, #tpu.memory_space<vmem>>, vector<1x24xf32>
    %cst_60 = arith.constant 0.000000e+00 : f32
    %257 = vector.broadcast %cst_60 : f32 to vector<3x24xf32>
    %cst_61 = arith.constant 0.000000e+00 : f32
    %258 = vector.broadcast %cst_61 : f32 to vector<34x24xf32>
    %259 = vector.extract_strided_slice %251 {offsets = [0, 0], sizes = [34, 12], strides = [1, 1]} : vector<40x12xf32> to vector<34x12xf32>
    %260 = vector.extract_strided_slice %252 {offsets = [0, 0], sizes = [12, 24], strides = [1, 1]} : vector<84x24xf32> to vector<12x24xf32>
    %cst_62 = arith.constant dense<0.000000e+00> : vector<34x24xf32>
    %261 = tpu.matmul %259, %260, %cst_62 {dimension_numbers = #tpu.dot_dimension_numbers<[1], [0], [0], [1], [0, 0, 1, 1], [], []>} : vector<34x12xf32>, vector<12x24xf32>, vector<34x24xf32> -> vector<34x24xf32>
    %262 = arith.addf %258, %261 : vector<34x24xf32>
    %263 = vector.extract_strided_slice %251 {offsets = [1, 0], sizes = [34, 12], strides = [1, 1]} : vector<40x12xf32> to vector<34x12xf32>
    %264 = vector.extract_strided_slice %252 {offsets = [12, 0], sizes = [12, 24], strides = [1, 1]} : vector<84x24xf32> to vector<12x24xf32>
    %cst_63 = arith.constant dense<0.000000e+00> : vector<34x24xf32>
    %265 = tpu.matmul %263, %264, %cst_63 {dimension_numbers = #tpu.dot_dimension_numbers<[1], [0], [0], [1], [0, 0, 1, 1], [], []>} : vector<34x12xf32>, vector<12x24xf32>, vector<34x24xf32> -> vector<34x24xf32>
    %266 = arith.addf %262, %265 : vector<34x24xf32>
    %267 = vector.extract_strided_slice %251 {offsets = [2, 0], sizes = [34, 12], strides = [1, 1]} : vector<40x12xf32> to vector<34x12xf32>
    %268 = vector.extract_strided_slice %252 {offsets = [24, 0], sizes = [12, 24], strides = [1, 1]} : vector<84x24xf32> to vector<12x24xf32>
    %cst_64 = arith.constant dense<0.000000e+00> : vector<34x24xf32>
    %269 = tpu.matmul %267, %268, %cst_64 {dimension_numbers = #tpu.dot_dimension_numbers<[1], [0], [0], [1], [0, 0, 1, 1], [], []>} : vector<34x12xf32>, vector<12x24xf32>, vector<34x24xf32> -> vector<34x24xf32>
    %270 = arith.addf %266, %269 : vector<34x24xf32>
    %271 = vector.extract_strided_slice %251 {offsets = [3, 0], sizes = [34, 12], strides = [1, 1]} : vector<40x12xf32> to vector<34x12xf32>
    %272 = vector.extract_strided_slice %252 {offsets = [36, 0], sizes = [12, 24], strides = [1, 1]} : vector<84x24xf32> to vector<12x24xf32>
    %cst_65 = arith.constant dense<0.000000e+00> : vector<34x24xf32>
    %273 = tpu.matmul %271, %272, %cst_65 {dimension_numbers = #tpu.dot_dimension_numbers<[1], [0], [0], [1], [0, 0, 1, 1], [], []>} : vector<34x12xf32>, vector<12x24xf32>, vector<34x24xf32> -> vector<34x24xf32>
    %274 = arith.addf %270, %273 : vector<34x24xf32>
    %275 = vector.extract_strided_slice %251 {offsets = [4, 0], sizes = [34, 12], strides = [1, 1]} : vector<40x12xf32> to vector<34x12xf32>
    %276 = vector.extract_strided_slice %252 {offsets = [48, 0], sizes = [12, 24], strides = [1, 1]} : vector<84x24xf32> to vector<12x24xf32>
    %cst_66 = arith.constant dense<0.000000e+00> : vector<34x24xf32>
    %277 = tpu.matmul %275, %276, %cst_66 {dimension_numbers = #tpu.dot_dimension_numbers<[1], [0], [0], [1], [0, 0, 1, 1], [], []>} : vector<34x12xf32>, vector<12x24xf32>, vector<34x24xf32> -> vector<34x24xf32>
    %278 = arith.addf %274, %277 : vector<34x24xf32>
    %279 = vector.extract_strided_slice %251 {offsets = [5, 0], sizes = [34, 12], strides = [1, 1]} : vector<40x12xf32> to vector<34x12xf32>
    %280 = vector.extract_strided_slice %252 {offsets = [60, 0], sizes = [12, 24], strides = [1, 1]} : vector<84x24xf32> to vector<12x24xf32>
    %cst_67 = arith.constant dense<0.000000e+00> : vector<34x24xf32>
    %281 = tpu.matmul %279, %280, %cst_67 {dimension_numbers = #tpu.dot_dimension_numbers<[1], [0], [0], [1], [0, 0, 1, 1], [], []>} : vector<34x12xf32>, vector<12x24xf32>, vector<34x24xf32> -> vector<34x24xf32>
    %282 = arith.addf %278, %281 : vector<34x24xf32>
    %283 = vector.extract_strided_slice %251 {offsets = [6, 0], sizes = [34, 12], strides = [1, 1]} : vector<40x12xf32> to vector<34x12xf32>
    %284 = vector.extract_strided_slice %252 {offsets = [72, 0], sizes = [12, 24], strides = [1, 1]} : vector<84x24xf32> to vector<12x24xf32>
    %cst_68 = arith.constant dense<0.000000e+00> : vector<34x24xf32>
    %285 = tpu.matmul %283, %284, %cst_68 {dimension_numbers = #tpu.dot_dimension_numbers<[1], [0], [0], [1], [0, 0, 1, 1], [], []>} : vector<34x12xf32>, vector<12x24xf32>, vector<34x24xf32> -> vector<34x24xf32>
    %286 = arith.addf %282, %285 : vector<34x24xf32>
    %287 = vector.broadcast %253 : vector<1x24xf32> to vector<34x24xf32>
    %288 = arith.addf %286, %287 : vector<34x24xf32>
    %cst_69 = arith.constant 0.000000e+00 : f32
    %289 = vector.broadcast %cst_69 : f32 to vector<34x24xf32>
    %290 = arith.maximumf %288, %289 : vector<34x24xf32>
    %291 = tpu.concatenate %257, %290, %257 in 0 : vector<3x24xf32>, vector<34x24xf32>, vector<3x24xf32> -> vector<40x24xf32>
    %292 = vector.broadcast %77 : vector<40x1xf32> to vector<40x24xf32>
    %293 = arith.mulf %291, %292 : vector<40x24xf32>
    %294 = vector.extract_strided_slice %251 {offsets = [3, 0], sizes = [34, 12], strides = [1, 1]} : vector<40x12xf32> to vector<34x12xf32>
    %cst_70 = arith.constant dense<0.000000e+00> : vector<34x24xf32>
    %295 = tpu.matmul %294, %255, %cst_70 {dimension_numbers = #tpu.dot_dimension_numbers<[1], [0], [0], [1], [0, 0, 1, 1], [], []>} : vector<34x12xf32>, vector<12x24xf32>, vector<34x24xf32> -> vector<34x24xf32>
    %296 = vector.extract_strided_slice %293 {offsets = [0, 0], sizes = [34, 24], strides = [1, 1]} : vector<40x24xf32> to vector<34x24xf32>
    %297 = vector.extract_strided_slice %254 {offsets = [0, 0], sizes = [24, 24], strides = [1, 1]} : vector<168x24xf32> to vector<24x24xf32>
    %cst_71 = arith.constant dense<0.000000e+00> : vector<34x24xf32>
    %298 = tpu.matmul %296, %297, %cst_71 {dimension_numbers = #tpu.dot_dimension_numbers<[1], [0], [0], [1], [0, 0, 1, 1], [], []>} : vector<34x24xf32>, vector<24x24xf32>, vector<34x24xf32> -> vector<34x24xf32>
    %299 = arith.addf %295, %298 : vector<34x24xf32>
    %300 = vector.extract_strided_slice %293 {offsets = [1, 0], sizes = [34, 24], strides = [1, 1]} : vector<40x24xf32> to vector<34x24xf32>
    %301 = vector.extract_strided_slice %254 {offsets = [24, 0], sizes = [24, 24], strides = [1, 1]} : vector<168x24xf32> to vector<24x24xf32>
    %cst_72 = arith.constant dense<0.000000e+00> : vector<34x24xf32>
    %302 = tpu.matmul %300, %301, %cst_72 {dimension_numbers = #tpu.dot_dimension_numbers<[1], [0], [0], [1], [0, 0, 1, 1], [], []>} : vector<34x24xf32>, vector<24x24xf32>, vector<34x24xf32> -> vector<34x24xf32>
    %303 = arith.addf %299, %302 : vector<34x24xf32>
    %304 = vector.extract_strided_slice %293 {offsets = [2, 0], sizes = [34, 24], strides = [1, 1]} : vector<40x24xf32> to vector<34x24xf32>
    %305 = vector.extract_strided_slice %254 {offsets = [48, 0], sizes = [24, 24], strides = [1, 1]} : vector<168x24xf32> to vector<24x24xf32>
    %cst_73 = arith.constant dense<0.000000e+00> : vector<34x24xf32>
    %306 = tpu.matmul %304, %305, %cst_73 {dimension_numbers = #tpu.dot_dimension_numbers<[1], [0], [0], [1], [0, 0, 1, 1], [], []>} : vector<34x24xf32>, vector<24x24xf32>, vector<34x24xf32> -> vector<34x24xf32>
    %307 = arith.addf %303, %306 : vector<34x24xf32>
    %308 = vector.extract_strided_slice %293 {offsets = [3, 0], sizes = [34, 24], strides = [1, 1]} : vector<40x24xf32> to vector<34x24xf32>
    %309 = vector.extract_strided_slice %254 {offsets = [72, 0], sizes = [24, 24], strides = [1, 1]} : vector<168x24xf32> to vector<24x24xf32>
    %cst_74 = arith.constant dense<0.000000e+00> : vector<34x24xf32>
    %310 = tpu.matmul %308, %309, %cst_74 {dimension_numbers = #tpu.dot_dimension_numbers<[1], [0], [0], [1], [0, 0, 1, 1], [], []>} : vector<34x24xf32>, vector<24x24xf32>, vector<34x24xf32> -> vector<34x24xf32>
    %311 = arith.addf %307, %310 : vector<34x24xf32>
    %312 = vector.extract_strided_slice %293 {offsets = [4, 0], sizes = [34, 24], strides = [1, 1]} : vector<40x24xf32> to vector<34x24xf32>
    %313 = vector.extract_strided_slice %254 {offsets = [96, 0], sizes = [24, 24], strides = [1, 1]} : vector<168x24xf32> to vector<24x24xf32>
    %cst_75 = arith.constant dense<0.000000e+00> : vector<34x24xf32>
    %314 = tpu.matmul %312, %313, %cst_75 {dimension_numbers = #tpu.dot_dimension_numbers<[1], [0], [0], [1], [0, 0, 1, 1], [], []>} : vector<34x24xf32>, vector<24x24xf32>, vector<34x24xf32> -> vector<34x24xf32>
    %315 = arith.addf %311, %314 : vector<34x24xf32>
    %316 = vector.extract_strided_slice %293 {offsets = [5, 0], sizes = [34, 24], strides = [1, 1]} : vector<40x24xf32> to vector<34x24xf32>
    %317 = vector.extract_strided_slice %254 {offsets = [120, 0], sizes = [24, 24], strides = [1, 1]} : vector<168x24xf32> to vector<24x24xf32>
    %cst_76 = arith.constant dense<0.000000e+00> : vector<34x24xf32>
    %318 = tpu.matmul %316, %317, %cst_76 {dimension_numbers = #tpu.dot_dimension_numbers<[1], [0], [0], [1], [0, 0, 1, 1], [], []>} : vector<34x24xf32>, vector<24x24xf32>, vector<34x24xf32> -> vector<34x24xf32>
    %319 = arith.addf %315, %318 : vector<34x24xf32>
    %320 = vector.extract_strided_slice %293 {offsets = [6, 0], sizes = [34, 24], strides = [1, 1]} : vector<40x24xf32> to vector<34x24xf32>
    %321 = vector.extract_strided_slice %254 {offsets = [144, 0], sizes = [24, 24], strides = [1, 1]} : vector<168x24xf32> to vector<24x24xf32>
    %cst_77 = arith.constant dense<0.000000e+00> : vector<34x24xf32>
    %322 = tpu.matmul %320, %321, %cst_77 {dimension_numbers = #tpu.dot_dimension_numbers<[1], [0], [0], [1], [0, 0, 1, 1], [], []>} : vector<34x24xf32>, vector<24x24xf32>, vector<34x24xf32> -> vector<34x24xf32>
    %323 = arith.addf %319, %322 : vector<34x24xf32>
    %324 = vector.broadcast %256 : vector<1x24xf32> to vector<34x24xf32>
    %325 = arith.addf %323, %324 : vector<34x24xf32>
    %cst_78 = arith.constant 0.000000e+00 : f32
    %326 = vector.broadcast %cst_78 : f32 to vector<34x24xf32>
    %327 = arith.maximumf %325, %326 : vector<34x24xf32>
    %328 = tpu.concatenate %257, %327, %257 in 0 : vector<3x24xf32>, vector<34x24xf32>, vector<3x24xf32> -> vector<40x24xf32>
    %329 = vector.broadcast %77 : vector<40x1xf32> to vector<40x24xf32>
    %330 = arith.mulf %328, %329 : vector<40x24xf32>
    %c540 = arith.constant 540 : index
    %c0_79 = arith.constant 0 : index
    %331 = vector.load %arg1[%c540, %c0_79] : memref<648x128xf32, #tpu.memory_space<vmem>>, vector<8x40xf32>
    %cst_80 = arith.constant dense<0.000000e+00> : vector<8x24xf32>
    %332 = tpu.matmul %331, %330, %cst_80 {dimension_numbers = #tpu.dot_dimension_numbers<[1], [0], [0], [1], [0, 0, 1, 1], [], []>} : vector<8x40xf32>, vector<40x24xf32>, vector<8x24xf32> -> vector<8x24xf32>
    %c548 = arith.constant 548 : index
    %c0_81 = arith.constant 0 : index
    %333 = vector.load %arg1[%c548, %c0_81] : memref<648x128xf32, #tpu.memory_space<vmem>>, vector<96x128xf32>
    %c644 = arith.constant 644 : index
    %c0_82 = arith.constant 0 : index
    %334 = vector.load %arg1[%c644, %c0_82] : memref<648x128xf32, #tpu.memory_space<vmem>>, vector<1x128xf32>
    %cst_83 = arith.constant 0.000000e+00 : f32
    %335 = vector.broadcast %cst_83 : f32 to vector<2x128xf32>
    %336 = vector.extract_strided_slice %332 {offsets = [0, 0], sizes = [2, 24], strides = [1, 1]} : vector<8x24xf32> to vector<2x24xf32>
    %337 = vector.extract_strided_slice %333 {offsets = [0, 0], sizes = [24, 128], strides = [1, 1]} : vector<96x128xf32> to vector<24x128xf32>
    %cst_84 = arith.constant dense<0.000000e+00> : vector<2x128xf32>
    %338 = tpu.matmul %336, %337, %cst_84 {dimension_numbers = #tpu.dot_dimension_numbers<[1], [0], [0], [1], [0, 0, 1, 1], [], []>} : vector<2x24xf32>, vector<24x128xf32>, vector<2x128xf32> -> vector<2x128xf32>
    %339 = arith.addf %335, %338 : vector<2x128xf32>
    %340 = vector.extract_strided_slice %332 {offsets = [2, 0], sizes = [2, 24], strides = [1, 1]} : vector<8x24xf32> to vector<2x24xf32>
    %341 = vector.extract_strided_slice %333 {offsets = [24, 0], sizes = [24, 128], strides = [1, 1]} : vector<96x128xf32> to vector<24x128xf32>
    %cst_85 = arith.constant dense<0.000000e+00> : vector<2x128xf32>
    %342 = tpu.matmul %340, %341, %cst_85 {dimension_numbers = #tpu.dot_dimension_numbers<[1], [0], [0], [1], [0, 0, 1, 1], [], []>} : vector<2x24xf32>, vector<24x128xf32>, vector<2x128xf32> -> vector<2x128xf32>
    %343 = arith.addf %339, %342 : vector<2x128xf32>
    %344 = vector.extract_strided_slice %332 {offsets = [4, 0], sizes = [2, 24], strides = [1, 1]} : vector<8x24xf32> to vector<2x24xf32>
    %345 = vector.extract_strided_slice %333 {offsets = [48, 0], sizes = [24, 128], strides = [1, 1]} : vector<96x128xf32> to vector<24x128xf32>
    %cst_86 = arith.constant dense<0.000000e+00> : vector<2x128xf32>
    %346 = tpu.matmul %344, %345, %cst_86 {dimension_numbers = #tpu.dot_dimension_numbers<[1], [0], [0], [1], [0, 0, 1, 1], [], []>} : vector<2x24xf32>, vector<24x128xf32>, vector<2x128xf32> -> vector<2x128xf32>
    %347 = arith.addf %343, %346 : vector<2x128xf32>
    %348 = vector.extract_strided_slice %332 {offsets = [6, 0], sizes = [2, 24], strides = [1, 1]} : vector<8x24xf32> to vector<2x24xf32>
    %349 = vector.extract_strided_slice %333 {offsets = [72, 0], sizes = [24, 128], strides = [1, 1]} : vector<96x128xf32> to vector<24x128xf32>
    %cst_87 = arith.constant dense<0.000000e+00> : vector<2x128xf32>
    %350 = tpu.matmul %348, %349, %cst_87 {dimension_numbers = #tpu.dot_dimension_numbers<[1], [0], [0], [1], [0, 0, 1, 1], [], []>} : vector<2x24xf32>, vector<24x128xf32>, vector<2x128xf32> -> vector<2x128xf32>
    %351 = arith.addf %347, %350 : vector<2x128xf32>
    %352 = vector.broadcast %334 : vector<1x128xf32> to vector<2x128xf32>
    %353 = arith.addf %351, %352 : vector<2x128xf32>
    %c0_88 = arith.constant 0 : index
    %c0_89 = arith.constant 0 : index
    %354 = vector.load %arg2[%c0_88, %c0_89] : memref<2x128xf32, #tpu.memory_space<vmem>>, vector<2x128xf32>
    tpu.vector_store %arg2[%c0_88, %c0_89], %353 {strides = array<i32>} : memref<2x128xf32, #tpu.memory_space<vmem>>, vector<2x128xf32>,
    return
  }
}

</mosaic_0001>

<bundles_post_ra>
// kernel: _lambda_.1
= control target key start
LH: loop header
LB: loop body
LE: loop exit
PB: predicated region body
PF: predicated region fallthrough
CT: control target
= control target key end

     0   :  { %7 = vsyncpa [#allocation3], 0  ;;  %s10009_s0 = inlined_call_operand.vmem [shape: f32[128,1], index: 0, kind: input, shape index: {}]   ;;  %s10010_s1 = inlined_call_operand.hbm [shape: f32[648,128], index: 1, kind: input, shape index: {}]   ;;  %s10011_s2 = inlined_call_operand.hbm [shape: f32[2,128], index: 2, kind: output, shape index: {}]  }
   0x1   :  { %8 = vsyncpa [#allocation4], 0  ;;  %s7840_s9 = smov [#allocation2]  }
   0x2   :  { %s16_s10 = sshll.u32 %s7840_s9, 4  ;;  %s17_s10 = int_to_ptr.vmem [resolvable:$true] %s16_s10 }
   0x3   :  { %s7804_s11 = scalar_lea.vmem %s17_s10, 10368  ;;  %p7809_p1 = scmp.lt.s32.totalorder %s17_s10, %s17_s10 }
   0x4   :  { %p7805_p0 = scmp.ne.s32.totalorder %s17_s10, %s7804_s11  ;;  %p7810_p2 = scmp.lt.s32.totalorder %s7804_s11, %s7804_s11 }
   0x6   :  { %p7811_p3 = por %p7810_p2, %p7809_p1 }
   0x8   :  { %p7812_p4 = pnand %p7811_p3, %p7805_p0 }
   0xa   :  { %7815 = shalt.err (!%p7812_p4)
}
   0xb   :  { %s7841_s12 = smov 128   ;;  %s7842_s13 = smov 8  }
   0xc   :  { %22 = dma.hbm_to_vmem [thread:$0]  %s10010_s1, 10368, %s17_s10, [#allocation3], %s7841_s12, %s7841_s12, %s7842_s13  }
   0xd   :  { %7836 = dma.done.wait [#allocation3], 10368  }
   0xe   :  { %7837 = vsyncadd [#allocation3], 4294956928  ;;  %v44_v0 = vlaneseq  ;;  %v7843_v1 = vmov 0.0   ;;  %vm7844_vm0 = vmmov 0   ;;  %v41_v10 = vld [vmem:[%s10009_s0 + $0x78] sm:$0xff]  ;;  %vm116_vm1 = vcmask 1046528  }
   0xf   :  { %6947 = vmatprep.subr.mxu0 %v7843_v1  ;;  %6994 = vmatprep.subr.mxu1 %v7843_v1  ;;  %v42_v11 = vld [vmem:[#allocation2] sm:$0x7f]  ;;  %vm216_vm2 = vcmask 1045504   ;;  %vm316_vm3 = vcmask 1044480   ;;  %v40_v19 = vld [vmem:[%s10009_s0 + $0x70] sm:$0xff]  ;;  %vm416_vm4 = vcmask 1043456  }
  0x10   :  { %v7867_v2 = vshrl.u32 %v44_v0, 7  ;;  %6979 = vmatprep.mubr.msk.f32.mxu0 %vm7844_vm0, %v7843_v1  ;;  %7026 = vmatprep.mubr.msk.f32.mxu1 %vm7844_vm0, %v7843_v1  ;;  %vm516_vm5 = vcmask 1042432   ;;  %vm616_vm6 = vcmask 1041408   ;;  %v39_v43 = vld [vmem:[%s10009_s0 + $0x68] sm:$0xff]  ;;  %vm710_vm7 = vcmask 998400  }
  0x12   :  { %v46_v3 = vsub.s32 0, %v7867_v2  ;;  %v82_v4 = vsub.s32 1, %v7867_v2  ;;  %v182_v5 = vsub.s32 2, %v7867_v2  ;;  %v282_v6 = vsub.s32 3, %v7867_v2 }
  0x13   :  { %v382_v7 = vsub.s32 4, %v7867_v2  ;;  %v482_v8 = vsub.s32 5, %v7867_v2  ;;  %v582_v9 = vsub.s32 6, %v7867_v2  ;;  %vm940_vm15 = vcmp.ge.s32.totalorder %v7867_v2, 3 }
  0x14   :  { %v7885_v12 = vrot.slane %v42_v11, %v46_v3  ;;  %v7889_v13 = vrot.slane %v42_v11, %v82_v4  ;;  %v7893_v14 = vrot.slane %v42_v11, %v182_v5  ;;  %v7897_v15 = vrot.slane %v42_v11, %v282_v6 }
  0x15   :  { %v7901_v16 = vrot.slane %v42_v11, %v382_v7  ;;  %v7905_v17 = vrot.slane %v42_v11, %v482_v8  ;;  %v7909_v18 = vrot.slane %v42_v11, %v582_v9 }
  0x16   :  { %v63_v20 = vmul.f32 %v7885_v12, %v41_v10  ;;  %v99_v21 = vmul.f32 %v7889_v13, %v41_v10  ;;  %v199_v22 = vmul.f32 %v7893_v14, %v41_v10  ;;  %v299_v23 = vmul.f32 %v7897_v15, %v41_v10 }
  0x17   :  { %v399_v24 = vmul.f32 %v7901_v16, %v41_v10  ;;  %v499_v25 = vmul.f32 %v7905_v17, %v41_v10  ;;  %v599_v26 = vmul.f32 %v7909_v18, %v41_v10  ;;  %v62_v29 = vmul.f32 %v7885_v12, %v40_v19 }
  0x18   :  { %v146_v27 = vrot.slane %v99_v21, 1  ;;  %v246_v28 = vrot.slane %v199_v22, 2  ;;  %v98_v30 = vmul.f32 %v7889_v13, %v40_v19  ;;  %v346_v31 = vrot.slane %v299_v23, 3 }
  0x19   :  { %v446_v32 = vrot.slane %v399_v24, 4  ;;  %v546_v33 = vrot.slane %v499_v25, 5  ;;  %v198_v34 = vmul.f32 %v7893_v14, %v40_v19  ;;  %v298_v37 = vmul.f32 %v7897_v15, %v40_v19  ;;  %v7951_v24 = vld [vmem:[#allocation2 + $0x7] ss:$0 sm:$0xff] }
  0x1a   :  { %v179_v35 = vadd.f32 %v146_v27, %v63_v20  ;;  %v144_v36 = vrot.slane %v98_v30, 1  ;;  %v398_v38 = vmul.f32 %v7901_v16, %v40_v19  ;;  %v646_v39 = vrot.slane %v599_v26, 6 }
  0x1b   :  { %v244_v40 = vrot.slane %v198_v34, 2  ;;  %v498_v41 = vmul.f32 %v7905_v17, %v40_v19  ;;  %v7928_v42 = vmul.f32 %v7909_v18, %v40_v19  ;;  %v344_v46 = vrot.slane %v298_v37, 3 }
  0x1c   :  { %v279_v44 = vadd.f32 %v246_v28, %v179_v35  ;;  %v147_v45 = vsel %vm116_vm1, %v144_v36, %v146_v27  ;;  %v444_v47 = vrot.slane %v398_v38, 4  ;;  %v61_v51 = vmul.f32 %v7885_v12, %v39_v43 }
  0x1d   :  { %v178_v48 = vadd.f32 %v147_v45, %v62_v29  ;;  %v247_v49 = vsel %vm216_vm2, %v244_v40, %v246_v28  ;;  %v544_v50 = vrot.slane %v498_v41, 5  ;;  %v347_v53 = vsel %vm316_vm3, %v344_v46, %v346_v31  ;;  %v38_v29 = vld [vmem:[%s10009_s0 + $0x60] sm:$0xff] }
  0x1e   :  { %v379_v52 = vadd.f32 %v346_v31, %v279_v44  ;;  %v644_v54 = vrot.slane %v7928_v42, 6  ;;  %v97_v55 = vmul.f32 %v7889_v13, %v39_v43  ;;  %v447_v57 = vsel %vm416_vm4, %v444_v47, %v446_v32 }
  0x1f   :  { %v278_v56 = vadd.f32 %v247_v49, %v178_v48  ;;  %v547_v58 = vsel %vm516_vm5, %v544_v50, %v546_v33  ;;  %v197_v59 = vmul.f32 %v7893_v14, %v39_v43  ;;  %v297_v62 = vmul.f32 %v7897_v15, %v39_v43 }
  0x20   :  { %v479_v60 = vadd.f32 %v446_v32, %v379_v52  ;;  %v142_v61 = vrot.slane %v97_v55, 1  ;;  %v397_v63 = vmul.f32 %v7901_v16, %v39_v43  ;;  %v7945_v11 = vmul.f32 %v7905_v17, %v39_v43 }
  0x21   :  { %v378_v0 = vadd.f32 %v347_v53, %v278_v56  ;;  %v242_v10 = vrot.slane %v197_v59, 2  ;;  %v7948_v19 = vmul.f32 %v7909_v18, %v39_v43  ;;  %v342_v22 = vrot.slane %v297_v62, 3 }
  0x22   :  { %v579_v20 = vadd.f32 %v546_v33, %v479_v60  ;;  %v145_v21 = vsel %vm116_vm1, %v142_v61, %v144_v36  ;;  %v442_v23 = vrot.slane %v397_v63, 4  ;;  %v542_v28 = vrot.slane %v7945_v11, 5 }
  0x23   :  { %v478_v25 = vadd.f32 %v447_v57, %v378_v0  ;;  %v177_v26 = vadd.f32 %v145_v21, %v61_v51  ;;  %v245_v27 = vsel %vm216_vm2, %v242_v10, %v244_v40  ;;  %v647_v31 = vsel %vm616_vm6, %v644_v54, %v646_v39 }
  0x24   :  { %v679_v30 = vadd.f32 %v646_v39, %v579_v20  ;;  %v345_v32 = vsel %vm316_vm3, %v342_v22, %v344_v46  ;;  %v445_v33 = vsel %vm416_vm4, %v442_v23, %v444_v47  ;;  %v545_v36 = vsel %vm516_vm5, %v542_v28, %v544_v50 }
  0x25   :  { %v578_v34 = vadd.f32 %v547_v58, %v478_v25  ;;  %v277_v35 = vadd.f32 %v245_v27, %v177_v26  ;;  %v642_v37 = vrot.slane %v7948_v19, 6  ;;  %v60_v40 = vmul.f32 %v7885_v12, %v38_v29  ;;  %v37_v58 = vld [vmem:[%s10009_s0 + $0x58] sm:$0xff] }
  0x26   :  { %v699_v38 = vadd.f32 %v7951_v24, %v679_v30  ;;  %v96_v41 = vmul.f32 %v7889_v13, %v38_v29  ;;  %v196_v42 = vmul.f32 %v7893_v14, %v38_v29  ;;  %v296_v44 = vmul.f32 %v7897_v15, %v38_v29 }
  0x27   :  { %v678_v43 = vadd.f32 %v647_v31, %v578_v34  ;;  %v377_v39 = vadd.f32 %v345_v32, %v277_v35  ;;  %v396_v45 = vmul.f32 %v7901_v16, %v38_v29  ;;  %v7972_v48 = vmul.f32 %v7905_v17, %v38_v29 }
  0x28   :  { %6948 = vmatpush3.msk.msra.mxu0 %vm616_vm6, %v699_v38  ;;  %6995 = vmatpush3.msk.msra.mxu1 %vm616_vm6, %v699_v38  ;;  %v140_v46 = vrot.slane %v96_v41, 1  ;;  %v240_v47 = vrot.slane %v196_v42, 2  ;;  %v7975_v49 = vmul.f32 %v7909_v18, %v38_v29  ;;  %v340_v52 = vrot.slane %v296_v44, 3  ;;  %v36_v38 = vld [vmem:[%s10009_s0 + $0x50] sm:$0xff] }
  0x29   :  { %6949 = vmatprep.subr.mxu0 %v7843_v1  ;;  %6996 = vmatprep.subr.mxu1 %v7843_v1  ;;  %v698_v50 = vadd.f32 %v7951_v24, %v678_v43  ;;  %v477_v51 = vadd.f32 %v445_v33, %v377_v39  ;;  %v440_v53 = vrot.slane %v396_v45, 4  ;;  %v645_v55 = vsel %vm616_vm6, %v642_v37, %v644_v54 }
  0x2a   :  { %v143_v56 = vsel %vm116_vm1, %v140_v46, %v142_v61  ;;  %v243_v57 = vsel %vm216_vm2, %v240_v47, %v242_v10  ;;  %v343_v62 = vsel %vm316_vm3, %v340_v52, %v342_v22  ;;  %v540_v61 = vrot.slane %v7972_v48, 5 }
  0x2b   :  { %6950 = vmatpush3.msra.mxu0 %v698_v50  ;;  %6997 = vmatpush3.msra.mxu1 %v698_v50  ;;  %v577_v59 = vadd.f32 %v545_v36, %v477_v51  ;;  %v176_v60 = vadd.f32 %v143_v56, %v60_v40  ;;  %v443_v54 = vsel %vm416_vm4, %v440_v53, %v442_v23  ;;  %v640_v63 = vrot.slane %v7975_v49, 6 }
  0x2c   :  { %6951 = vmatprep.subr.mxu0 %v7843_v1  ;;  %6998 = vmatprep.subr.mxu1 %v7843_v1  ;;  %v59_v11 = vmul.f32 %v7885_v12, %v37_v58  ;;  %v95_v19 = vmul.f32 %v7889_v13, %v37_v58  ;;  %v195_v20 = vmul.f32 %v7893_v14, %v37_v58 }
  0x2d   :  { %v677_v0 = vadd.f32 %v645_v55, %v577_v59  ;;  %v276_v10 = vadd.f32 %v243_v57, %v176_v60  ;;  %v295_v21 = vmul.f32 %v7897_v15, %v37_v58  ;;  %v395_v25 = vmul.f32 %v7901_v16, %v37_v58 }
  0x2e   :  { %v7998_v22 = vmul.f32 %v7905_v17, %v37_v58  ;;  %v138_v27 = vrot.slane %v95_v19, 1  ;;  %v8002_v29 = vmul.f32 %v7909_v18, %v37_v58  ;;  %v543_v30 = vsel %vm516_vm5, %v540_v61, %v542_v28 }
  0x2f   :  { %v697_v23 = vadd.f32 %v7951_v24, %v677_v0  ;;  %v376_v26 = vadd.f32 %v343_v62, %v276_v10  ;;  %v238_v31 = vrot.slane %v195_v20, 2  ;;  %v338_v32 = vrot.slane %v295_v21, 3  ;;  %v35_v10 = vld [vmem:[%s10009_s0 + $0x48] sm:$0xff] }
  0x30   :  { %v438_v33 = vrot.slane %v395_v25, 4  ;;  %v643_v35 = vsel %vm616_vm6, %v640_v63, %v642_v37  ;;  %v141_v36 = vsel %vm116_vm1, %v138_v27, %v140_v46  ;;  %v538_v41 = vrot.slane %v7998_v22, 5 }
  0x31   :  { %6952 = vmatpush3.msra.mxu0 %v697_v23  ;;  %6999 = vmatpush3.msra.mxu1 %v697_v23  ;;  %v476_v34 = vadd.f32 %v443_v54, %v376_v26  ;;  %v175_v40 = vadd.f32 %v141_v36, %v59_v11  ;;  %v241_v28 = vsel %vm216_vm2, %v238_v31, %v240_v47  ;;  %v638_v42 = vrot.slane %v8002_v29, 6 }
  0x32   :  { %6953 = vmatprep.subr.mxu0 %v7843_v1  ;;  %7000 = vmatprep.subr.mxu1 %v7843_v1  ;;  %v341_v37 = vsel %vm316_vm3, %v338_v32, %v340_v52  ;;  %v441_v39 = vsel %vm416_vm4, %v438_v33, %v440_v53  ;;  %v58_v44 = vmul.f32 %v7885_v12, %v36_v38 }
  0x33   :  { %v576_v43 = vadd.f32 %v543_v30, %v476_v34  ;;  %v275_v45 = vadd.f32 %v241_v28, %v175_v40  ;;  %v94_v46 = vmul.f32 %v7889_v13, %v36_v38  ;;  %v194_v48 = vmul.f32 %v7893_v14, %v36_v38 }
  0x34   :  { %v294_v49 = vmul.f32 %v7897_v15, %v36_v38  ;;  %v394_v47 = vmul.f32 %v7901_v16, %v36_v38  ;;  %v8023_v51 = vmul.f32 %v7905_v17, %v36_v38  ;;  %v8026_v55 = vmul.f32 %v7909_v18, %v36_v38 }
  0x35   :  { %v676_v50 = vadd.f32 %v643_v35, %v576_v43  ;;  %v375_v52 = vadd.f32 %v341_v37, %v275_v45  ;;  %v136_v53 = vrot.slane %v94_v46, 1  ;;  %v236_v56 = vrot.slane %v194_v48, 2  ;;  %v34_v45 = vld [vmem:[%s10009_s0 + $0x40] sm:$0xff] }
  0x36   :  { %v336_v57 = vrot.slane %v294_v49, 3  ;;  %v541_v59 = vsel %vm516_vm5, %v538_v41, %v540_v61  ;;  %v436_v60 = vrot.slane %v394_v47, 4  ;;  %v641_v11 = vsel %vm616_vm6, %v638_v42, %v640_v63 }
  0x37   :  { %v696_v58 = vadd.f32 %v7951_v24, %v676_v50  ;;  %v475_v62 = vadd.f32 %v441_v39, %v375_v52  ;;  %v139_v54 = vsel %vm116_vm1, %v136_v53, %v138_v27  ;;  %v239_v0 = vsel %vm216_vm2, %v236_v56, %v238_v31 }
  0x38   :  { %v174_v19 = vadd.f32 %v139_v54, %v58_v44  ;;  %v339_v20 = vsel %vm316_vm3, %v336_v57, %v338_v32  ;;  %v536_v21 = vrot.slane %v8023_v51, 5  ;;  %v439_v25 = vsel %vm416_vm4, %v436_v60, %v438_v33 }
  0x39   :  { %6954 = vmatpush3.msra.mxu0 %v696_v58  ;;  %7001 = vmatpush3.msra.mxu1 %v696_v58  ;;  %v575_v61 = vadd.f32 %v541_v59, %v475_v62  ;;  %v636_v22 = vrot.slane %v8026_v55, 6  ;;  %v57_v23 = vmul.f32 %v7885_v12, %v35_v10  ;;  %v93_v27 = vmul.f32 %v7889_v13, %v35_v10 }
  0x3a   :  { %6955 = vmatprep.subr.mxu0 %v7843_v1  ;;  %7002 = vmatprep.subr.mxu1 %v7843_v1  ;;  %v274_v26 = vadd.f32 %v239_v0, %v174_v19  ;;  %v193_v63 = vmul.f32 %v7893_v14, %v35_v10  ;;  %v293_v29 = vmul.f32 %v7897_v15, %v35_v10 }
  0x3b   :  { %v675_v30 = vadd.f32 %v641_v11, %v575_v61  ;;  %v393_v31 = vmul.f32 %v7901_v16, %v35_v10  ;;  %v8048_v32 = vmul.f32 %v7905_v17, %v35_v10  ;;  %v8051_v34 = vmul.f32 %v7909_v18, %v35_v10 }
  0x3c   :  { %v374_v33 = vadd.f32 %v339_v20, %v274_v26  ;;  %v134_v35 = vrot.slane %v93_v27, 1  ;;  %v234_v36 = vrot.slane %v193_v63, 2  ;;  %v334_v38 = vrot.slane %v293_v29, 3  ;;  %v33_v26 = vld [vmem:[%s10009_s0 + $0x38] sm:$0xff] }
  0x3d   :  { %v695_v40 = vadd.f32 %v7951_v24, %v675_v30  ;;  %v539_v28 = vsel %vm516_vm5, %v536_v21, %v538_v41  ;;  %v434_v43 = vrot.slane %v393_v31, 4  ;;  %v639_v46 = vsel %vm616_vm6, %v636_v22, %v638_v42 }
  0x3e   :  { %v474_v37 = vadd.f32 %v439_v25, %v374_v33  ;;  %v137_v39 = vsel %vm116_vm1, %v134_v35, %v136_v53  ;;  %v237_v44 = vsel %vm216_vm2, %v234_v36, %v236_v56  ;;  %v337_v49 = vsel %vm316_vm3, %v334_v38, %v336_v57 }
  0x3f   :  { %6956 = vmatpush3.msra.mxu0 %v695_v40  ;;  %7003 = vmatpush3.msra.mxu1 %v695_v40  ;;  %v173_v48 = vadd.f32 %v137_v39, %v57_v23  ;;  %v534_v50 = vrot.slane %v8048_v32, 5  ;;  %v437_v47 = vsel %vm416_vm4, %v434_v43, %v436_v60  ;;  %v634_v51 = vrot.slane %v8051_v34, 6 }
  0x40   :  { %6957 = vmatprep.subr.mxu0 %v7843_v1  ;;  %7004 = vmatprep.subr.mxu1 %v7843_v1  ;;  %v574_v41 = vadd.f32 %v539_v28, %v474_v37  ;;  %v56_v55 = vmul.f32 %v7885_v12, %v34_v45  ;;  %v92_v53 = vmul.f32 %v7889_v13, %v34_v45 }
  0x41   :  { %v273_v52 = vadd.f32 %v237_v44, %v173_v48  ;;  %v192_v42 = vmul.f32 %v7893_v14, %v34_v45  ;;  %v292_v56 = vmul.f32 %v7897_v15, %v34_v45  ;;  %v392_v58 = vmul.f32 %v7901_v16, %v34_v45 }
  0x42   :  { %v674_v57 = vadd.f32 %v639_v46, %v574_v41  ;;  %v8073_v59 = vmul.f32 %v7905_v17, %v34_v45  ;;  %v8076_v62 = vmul.f32 %v7909_v18, %v34_v45  ;;  %v132_v54 = vrot.slane %v92_v53, 1 }
  0x43   :  { %v373_v60 = vadd.f32 %v337_v49, %v273_v52  ;;  %v232_v0 = vrot.slane %v192_v42, 2  ;;  %v332_v10 = vrot.slane %v292_v56, 3  ;;  %v537_v19 = vsel %vm516_vm5, %v534_v50, %v536_v21  ;;  %v32_v52 = vld [vmem:[%s10009_s0 + $0x30] sm:$0xff] }
  0x44   :  { %v694_v11 = vadd.f32 %v7951_v24, %v674_v57  ;;  %v432_v20 = vrot.slane %v392_v58, 4  ;;  %v135_v25 = vsel %vm116_vm1, %v132_v54, %v134_v35  ;;  %v637_v27 = vsel %vm616_vm6, %v634_v51, %v636_v22 }
  0x45   :  { %v473_v61 = vadd.f32 %v437_v47, %v373_v60  ;;  %v235_v23 = vsel %vm216_vm2, %v232_v0, %v234_v36  ;;  %v172_v63 = vadd.f32 %v135_v25, %v56_v55  ;;  %v335_v29 = vsel %vm316_vm3, %v332_v10, %v334_v38 }
  0x46   :  { %6958 = vmatpush3.msra.mxu0 %v694_v11  ;;  %7005 = vmatpush3.msra.mxu1 %v694_v11  ;;  %v532_v30 = vrot.slane %v8073_v59, 5  ;;  %v435_v31 = vsel %vm416_vm4, %v432_v20, %v434_v43  ;;  %v632_v32 = vrot.slane %v8076_v62, 6  ;;  %v55_v34 = vmul.f32 %v7885_v12, %v33_v26 }
  0x47   :  { %6959 = vmatprep.subr.mxu0 %v7843_v1  ;;  %7006 = vmatprep.subr.mxu1 %v7843_v1  ;;  %v573_v21 = vadd.f32 %v537_v19, %v473_v61  ;;  %v272_v33 = vadd.f32 %v235_v23, %v172_v63  ;;  %v91_v35 = vmul.f32 %v7889_v13, %v33_v26 }
  0x48   :  { %v191_v22 = vmul.f32 %v7893_v14, %v33_v26  ;;  %v291_v36 = vmul.f32 %v7897_v15, %v33_v26  ;;  %v391_v40 = vmul.f32 %v7901_v16, %v33_v26  ;;  %v8098_v28 = vmul.f32 %v7905_v17, %v33_v26 }
  0x49   :  { %v673_v38 = vadd.f32 %v637_v27, %v573_v21  ;;  %v8101_v37 = vmul.f32 %v7909_v18, %v33_v26  ;;  %v372_v43 = vadd.f32 %v335_v29, %v272_v33  ;;  %v130_v39 = vrot.slane %v91_v35, 1  ;;  %v31_v33 = vld [vmem:[%s10009_s0 + $0x28] sm:$0xff] }
  0x4a   :  { %v230_v44 = vrot.slane %v191_v22, 2  ;;  %v330_v45 = vrot.slane %v291_v36, 3  ;;  %v535_v48 = vsel %vm516_vm5, %v532_v30, %v534_v50  ;;  %v430_v49 = vrot.slane %v391_v40, 4 }
  0x4b   :  { %v693_v46 = vadd.f32 %v7951_v24, %v673_v38  ;;  %v472_v41 = vadd.f32 %v435_v31, %v372_v43  ;;  %v133_v47 = vsel %vm116_vm1, %v130_v39, %v132_v54  ;;  %v635_v53 = vsel %vm616_vm6, %v632_v32, %v634_v51 }
  0x4c   :  { %v233_v55 = vsel %vm216_vm2, %v230_v44, %v232_v0  ;;  %v171_v42 = vadd.f32 %v133_v47, %v55_v34  ;;  %v333_v56 = vsel %vm316_vm3, %v330_v45, %v332_v10  ;;  %v530_v57 = vrot.slane %v8098_v28, 5 }
  0x4d   :  { %6960 = vmatpush3.msra.mxu0 %v693_v46  ;;  %7007 = vmatpush3.msra.mxu1 %v693_v46  ;;  %v572_v50 = vadd.f32 %v535_v48, %v472_v41  ;;  %v433_v58 = vsel %vm416_vm4, %v430_v49, %v432_v20  ;;  %v630_v59 = vrot.slane %v8101_v37, 6  ;;  %v54_v62 = vmul.f32 %v7885_v12, %v32_v52 }
  0x4e   :  { %6961 = vmatprep.subr.mxu0 %v7843_v1  ;;  %7008 = vmatprep.subr.mxu1 %v7843_v1  ;;  %v271_v60 = vadd.f32 %v233_v55, %v171_v42  ;;  %v90_v54 = vmul.f32 %v7889_v13, %v32_v52  ;;  %v190_v51 = vmul.f32 %v7893_v14, %v32_v52 }
  0x4f   :  { %v290_v0 = vmul.f32 %v7897_v15, %v32_v52  ;;  %v672_v10 = vadd.f32 %v635_v53, %v572_v50  ;;  %v390_v11 = vmul.f32 %v7901_v16, %v32_v52  ;;  %v8123_v19 = vmul.f32 %v7905_v17, %v32_v52 }
  0x50   :  { %v8126_v61 = vmul.f32 %v7909_v18, %v32_v52  ;;  %v371_v20 = vadd.f32 %v333_v56, %v271_v60  ;;  %v128_v25 = vrot.slane %v90_v54, 1  ;;  %v228_v23 = vrot.slane %v190_v51, 2  ;;  %v30_v60 = vld [vmem:[%s10009_s0 + $0x20] sm:$0xff] }
  0x51   :  { %v328_v26 = vrot.slane %v290_v0, 3  ;;  %v692_v27 = vadd.f32 %v7951_v24, %v672_v10  ;;  %v533_v63 = vsel %vm516_vm5, %v530_v57, %v532_v30  ;;  %v428_v29 = vrot.slane %v390_v11, 4 }
  0x52   :  { %v471_v21 = vadd.f32 %v433_v58, %v371_v20  ;;  %v131_v31 = vsel %vm116_vm1, %v128_v25, %v130_v39  ;;  %v231_v34 = vsel %vm216_vm2, %v228_v23, %v230_v44  ;;  %v633_v35 = vsel %vm616_vm6, %v630_v59, %v632_v32 }
  0x53   :  { %6962 = vmatpush3.msra.mxu0 %v692_v27  ;;  %7009 = vmatpush3.msra.mxu1 %v692_v27  ;;  %v170_v22 = vadd.f32 %v131_v31, %v54_v62  ;;  %v331_v36 = vsel %vm316_vm3, %v328_v26, %v330_v45  ;;  %v528_v38 = vrot.slane %v8123_v19, 5  ;;  %v431_v40 = vsel %vm416_vm4, %v428_v29, %v430_v49 }
  0x54   :  { %6963 = vmatprep.subr.mxu0 %v7843_v1  ;;  %7010 = vmatprep.subr.mxu1 %v7843_v1  ;;  %v571_v30 = vadd.f32 %v533_v63, %v471_v21  ;;  %v628_v28 = vrot.slane %v8126_v61, 6  ;;  %v53_v37 = vmul.f32 %v7885_v12, %v31_v33  ;;  %v89_v39 = vmul.f32 %v7889_v13, %v31_v33 }
  0x55   :  { %v270_v43 = vadd.f32 %v231_v34, %v170_v22  ;;  %v189_v32 = vmul.f32 %v7893_v14, %v31_v33  ;;  %v289_v44 = vmul.f32 %v7897_v15, %v31_v33  ;;  %v389_v46 = vmul.f32 %v7901_v16, %v31_v33 }
  0x56   :  { %v671_v45 = vadd.f32 %v633_v35, %v571_v30  ;;  %v8148_v48 = vmul.f32 %v7905_v17, %v31_v33  ;;  %v8151_v41 = vmul.f32 %v7909_v18, %v31_v33  ;;  %v126_v47 = vrot.slane %v89_v39, 1 }
  0x57   :  { %v370_v49 = vadd.f32 %v331_v36, %v270_v43  ;;  %v226_v55 = vrot.slane %v189_v32, 2  ;;  %v326_v52 = vrot.slane %v289_v44, 3  ;;  %v531_v42 = vsel %vm516_vm5, %v528_v38, %v530_v57  ;;  %v29_v43 = vld [vmem:[%s10009_s0 + $0x18] sm:$0xff] }
  0x58   :  { %v691_v53 = vadd.f32 %v7951_v24, %v671_v45  ;;  %v426_v56 = vrot.slane %v389_v46, 4  ;;  %v129_v58 = vsel %vm116_vm1, %v126_v47, %v128_v25  ;;  %v631_v54 = vsel %vm616_vm6, %v628_v28, %v630_v59 }
  0x59   :  { %v470_v50 = vadd.f32 %v431_v40, %v370_v49  ;;  %v229_v62 = vsel %vm216_vm2, %v226_v55, %v228_v23  ;;  %v169_v51 = vadd.f32 %v129_v58, %v53_v37  ;;  %v329_v0 = vsel %vm316_vm3, %v326_v52, %v328_v26 }
  0x5a   :  { %6964 = vmatpush3.msra.mxu0 %v691_v53  ;;  %7011 = vmatpush3.msra.mxu1 %v691_v53  ;;  %v526_v10 = vrot.slane %v8148_v48, 5  ;;  %v429_v11 = vsel %vm416_vm4, %v426_v56, %v428_v29  ;;  %v626_v19 = vrot.slane %v8151_v41, 6  ;;  %v52_v61 = vmul.f32 %v7885_v12, %v30_v60 }
  0x5b   :  { %6965 = vmatprep.subr.mxu0 %v7843_v1  ;;  %7012 = vmatprep.subr.mxu1 %v7843_v1  ;;  %v570_v57 = vadd.f32 %v531_v42, %v470_v50  ;;  %v269_v20 = vadd.f32 %v229_v62, %v169_v51  ;;  %v88_v25 = vmul.f32 %v7889_v13, %v30_v60 }
  0x5c   :  { %v188_v59 = vmul.f32 %v7893_v14, %v30_v60  ;;  %v288_v23 = vmul.f32 %v7897_v15, %v30_v60  ;;  %v388_v27 = vmul.f32 %v7901_v16, %v30_v60  ;;  %v8173_v63 = vmul.f32 %v7905_v17, %v30_v60 }
  0x5d   :  { %v670_v26 = vadd.f32 %v631_v54, %v570_v57  ;;  %v8176_v21 = vmul.f32 %v7909_v18, %v30_v60  ;;  %v369_v29 = vadd.f32 %v329_v0, %v269_v20  ;;  %v124_v31 = vrot.slane %v88_v25, 1  ;;  %v28_v20 = vld [vmem:[%s10009_s0 + $0x10] sm:$0xff] }
  0x5e   :  { %v224_v34 = vrot.slane %v188_v59, 2  ;;  %v324_v33 = vrot.slane %v288_v23, 3  ;;  %v529_v22 = vsel %vm516_vm5, %v526_v10, %v528_v38  ;;  %v424_v36 = vrot.slane %v388_v27, 4 }
  0x5f   :  { %v690_v35 = vadd.f32 %v7951_v24, %v670_v26  ;;  %v469_v30 = vadd.f32 %v429_v11, %v369_v29  ;;  %v127_v40 = vsel %vm116_vm1, %v124_v31, %v126_v47  ;;  %v629_v39 = vsel %vm616_vm6, %v626_v19, %v628_v28 }
  0x60   :  { %v227_v37 = vsel %vm216_vm2, %v224_v34, %v226_v55  ;;  %v168_v32 = vadd.f32 %v127_v40, %v52_v61  ;;  %v327_v44 = vsel %vm316_vm3, %v324_v33, %v326_v52  ;;  %v524_v45 = vrot.slane %v8173_v63, 5 }
  0x61   :  { %6966 = vmatpush3.msra.mxu0 %v690_v35  ;;  %7013 = vmatpush3.msra.mxu1 %v690_v35  ;;  %v569_v38 = vadd.f32 %v529_v22, %v469_v30  ;;  %v427_v46 = vsel %vm416_vm4, %v424_v36, %v426_v56  ;;  %v624_v48 = vrot.slane %v8176_v21, 6  ;;  %v51_v41 = vmul.f32 %v7885_v12, %v29_v43 }
  0x62   :  { %6967 = vmatprep.subr.mxu0 %v7843_v1  ;;  %7014 = vmatprep.subr.mxu1 %v7843_v1  ;;  %v268_v49 = vadd.f32 %v227_v37, %v168_v32  ;;  %v87_v47 = vmul.f32 %v7889_v13, %v29_v43  ;;  %v187_v28 = vmul.f32 %v7893_v14, %v29_v43 }
  0x63   :  { %v287_v55 = vmul.f32 %v7897_v15, %v29_v43  ;;  %v669_v52 = vadd.f32 %v629_v39, %v569_v38  ;;  %v387_v53 = vmul.f32 %v7901_v16, %v29_v43  ;;  %v8198_v42 = vmul.f32 %v7905_v17, %v29_v43 }
  0x64   :  { %v8201_v50 = vmul.f32 %v7909_v18, %v29_v43  ;;  %v368_v56 = vadd.f32 %v327_v44, %v268_v49  ;;  %v122_v58 = vrot.slane %v87_v47, 1  ;;  %v222_v62 = vrot.slane %v187_v28, 2  ;;  %v27_v49 = vld [vmem:[%s10009_s0 + $0x8] sm:$0xff] }
  0x65   :  { %v322_v60 = vrot.slane %v287_v55, 3  ;;  %v689_v54 = vadd.f32 %v7951_v24, %v669_v52  ;;  %v527_v51 = vsel %vm516_vm5, %v524_v45, %v526_v10  ;;  %v422_v0 = vrot.slane %v387_v53, 4 }
  0x66   :  { %v468_v57 = vadd.f32 %v427_v46, %v368_v56  ;;  %v125_v11 = vsel %vm116_vm1, %v122_v58, %v124_v31  ;;  %v225_v61 = vsel %vm216_vm2, %v222_v62, %v224_v34  ;;  %v627_v25 = vsel %vm616_vm6, %v624_v48, %v626_v19 }
  0x67   :  { %6968 = vmatpush3.msra.mxu0 %v689_v54  ;;  %7015 = vmatpush3.msra.mxu1 %v689_v54  ;;  %v167_v59 = vadd.f32 %v125_v11, %v51_v41  ;;  %v325_v23 = vsel %vm316_vm3, %v322_v60, %v324_v33  ;;  %v522_v26 = vrot.slane %v8198_v42, 5  ;;  %v425_v27 = vsel %vm416_vm4, %v422_v0, %v424_v36 }
  0x68   :  { %6969 = vmatprep.subr.mxu0 %v7843_v1  ;;  %7016 = vmatprep.subr.mxu1 %v7843_v1  ;;  %v568_v10 = vadd.f32 %v527_v51, %v468_v57  ;;  %v622_v63 = vrot.slane %v8201_v50, 6  ;;  %v50_v21 = vmul.f32 %v7885_v12, %v28_v20  ;;  %v86_v31 = vmul.f32 %v7889_v13, %v28_v20 }
  0x69   :  { %v267_v29 = vadd.f32 %v225_v61, %v167_v59  ;;  %v186_v19 = vmul.f32 %v7893_v14, %v28_v20  ;;  %v286_v34 = vmul.f32 %v7897_v15, %v28_v20  ;;  %v386_v35 = vmul.f32 %v7901_v16, %v28_v20 }
  0x6a   :  { %v668_v33 = vadd.f32 %v627_v25, %v568_v10  ;;  %v8223_v22 = vmul.f32 %v7905_v17, %v28_v20  ;;  %v8226_v30 = vmul.f32 %v7909_v18, %v28_v20  ;;  %v120_v40 = vrot.slane %v86_v31, 1 }
  0x6b   :  { %v367_v36 = vadd.f32 %v325_v23, %v267_v29  ;;  %v220_v37 = vrot.slane %v186_v19, 2  ;;  %v320_v43 = vrot.slane %v286_v34, 3  ;;  %v525_v32 = vsel %vm516_vm5, %v522_v26, %v524_v45  ;;  %v26_v29 = vld [vmem:[%s10009_s0] sm:$0xff]  ;;  %s7846_s0 = smov [#allocation5]  }
  0x6c   :  { %v688_v39 = vadd.f32 %v7951_v24, %v668_v33  ;;  %v420_v44 = vrot.slane %v386_v35, 4  ;;  %v123_v46 = vsel %vm116_vm1, %v120_v40, %v122_v58  ;;  %v625_v47 = vsel %vm616_vm6, %v622_v63, %v624_v48  ;;  %s6376_s18 = sshll.u32 %s7846_s0, 4  ;;  %s6377_s18 = int_to_ptr.vmem [resolvable:$true] %s6376_s18 }
  0x6d   :  { %v467_v38 = vadd.f32 %v425_v27, %v367_v36  ;;  %v223_v41 = vsel %vm216_vm2, %v220_v37, %v222_v62  ;;  %v166_v28 = vadd.f32 %v123_v46, %v50_v21  ;;  %v323_v55 = vsel %vm316_vm3, %v320_v43, %v322_v60  ;;  %s7816_s19 = scalar_lea.vmem %s6377_s18, 32  ;;  %p7821_p6 = scmp.lt.s32.totalorder %s6377_s18, %s6377_s18 }
  0x6e   :  { %6970 = vmatpush3.msra.mxu0 %v688_v39  ;;  %7017 = vmatpush3.msra.mxu1 %v688_v39  ;;  %v520_v52 = vrot.slane %v8223_v22, 5  ;;  %v423_v53 = vsel %vm416_vm4, %v420_v44, %v422_v0  ;;  %v620_v42 = vrot.slane %v8226_v30, 6  ;;  %v49_v50 = vmul.f32 %v7885_v12, %v27_v49  ;;  %p7817_p5 = scmp.ne.s32.totalorder %s6377_s18, %s7816_s19  ;;  %p7822_p7 = scmp.lt.s32.totalorder %s7816_s19, %s7816_s19 }
  0x6f   :  { %6971 = vmatprep.subr.mxu0 %v7843_v1  ;;  %7018 = vmatprep.subr.mxu1 %v7843_v1  ;;  %v567_v45 = vadd.f32 %v525_v32, %v467_v38  ;;  %v266_v56 = vadd.f32 %v223_v41, %v166_v28  ;;  %v85_v58 = vmul.f32 %v7889_v13, %v27_v49 }
  0x70   :  { %v185_v48 = vmul.f32 %v7893_v14, %v27_v49  ;;  %v285_v62 = vmul.f32 %v7897_v15, %v27_v49  ;;  %v385_v54 = vmul.f32 %v7901_v16, %v27_v49  ;;  %v485_v51 = vmul.f32 %v7905_v17, %v27_v49  ;;  %p7823_p8 = por %p7822_p7, %p7821_p6 }
  0x71   :  { %v667_v60 = vadd.f32 %v625_v47, %v567_v45  ;;  %v8249_v57 = vmul.f32 %v7909_v18, %v27_v49  ;;  %v366_v0 = vadd.f32 %v323_v55, %v266_v56  ;;  %v118_v11 = vrot.slane %v85_v58, 1 }
  0x72   :  { %v218_v61 = vrot.slane %v185_v48, 2  ;;  %v318_v20 = vrot.slane %v285_v62, 3  ;;  %v523_v59 = vsel %vm516_vm5, %v520_v52, %v522_v26  ;;  %v418_v23 = vrot.slane %v385_v54, 4  ;;  %p7824_p9 = pnand %p7823_p8, %p7817_p5 }
  0x73   :  { %v687_v25 = vadd.f32 %v7951_v24, %v667_v60  ;;  %v466_v10 = vadd.f32 %v423_v53, %v366_v0  ;;  %v121_v27 = vsel %vm116_vm1, %v118_v11, %v120_v40  ;;  %v623_v31 = vsel %vm616_vm6, %v620_v42, %v622_v63  ;;  %v700_v0 = vld [vmem:[#allocation2 + $0x8] sm:$0xff] }
  0x74   :  { %v221_v21 = vsel %vm216_vm2, %v218_v61, %v220_v37  ;;  %v165_v19 = vadd.f32 %v121_v27, %v49_v50  ;;  %v518_v34 = vrot.slane %v485_v51, 5  ;;  %v321_v33 = vsel %vm316_vm3, %v318_v20, %v320_v43  ;;  %v709_v27 = vld [vmem:[#allocation2 + $0x50] sm:$0xff] }
  0x75   :  { %6972 = vmatpush3.msra.mxu0 %v687_v25  ;;  %7019 = vmatpush3.msra.mxu1 %v687_v25  ;;  %v566_v26 = vadd.f32 %v523_v59, %v466_v10  ;;  %v421_v35 = vsel %vm416_vm4, %v418_v23, %v420_v44  ;;  %v618_v22 = vrot.slane %v8249_v57, 6  ;;  %v84_v36 = vmul.f32 %v7889_v13, %v26_v29  ;;  %v707_v25 = vld [vmem:[#allocation2 + $0x40] sm:$0xff]  ;;  %v704_v10 = vld [vmem:[#allocation2 + $0x28] sm:$0xff] }
  0x76   :  { %6973 = vmatprep.subr.mxu0 %v7843_v1  ;;  %7020 = vmatprep.subr.mxu1 %v7843_v1  ;;  %v265_v30 = vadd.f32 %v221_v21, %v165_v19  ;;  %v184_v40 = vmul.f32 %v7893_v14, %v26_v29  ;;  %v284_v63 = vmul.f32 %v7897_v15, %v26_v29  ;;  %v703_v59 = vld [vmem:[#allocation2 + $0x20] sm:$0xff]  ;;  %v7845_v21 = vmov 0  }
  0x77   :  { %v666_v37 = vadd.f32 %v623_v31, %v566_v26  ;;  %v48_v39 = vmul.f32 %v7885_v12, %v26_v29  ;;  %v384_v32 = vmul.f32 %v7901_v16, %v26_v29  ;;  %v484_v38 = vmul.f32 %v7905_v17, %v26_v29  ;;  %7794 = vset.pattern.permute.xlu0 %v7845_v21 }
  0x78   :  { %v365_v46 = vadd.f32 %v321_v33, %v265_v30  ;;  %v117_v43 = vrot.slane %v84_v36, 1  ;;  %v217_v41 = vrot.slane %v184_v40, 2  ;;  %v317_v44 = vrot.slane %v284_v63, 3  ;;  %7795 = vset.pattern.permute.xlu1 %v7845_v21 }
  0x79   :  { %v686_v49 = vadd.f32 %v7951_v24, %v666_v37  ;;  %v521_v47 = vsel %vm516_vm5, %v518_v34, %v520_v52  ;;  %v584_v13 = vmul.f32 %v7909_v18, %v26_v29  ;;  %v417_v12 = vrot.slane %v384_v32, 4 }
  0x7a   :  { %v465_v14 = vadd.f32 %v421_v35, %v365_v46  ;;  %v119_v15 = vsel %vm116_vm1, %v117_v43, %v118_v11  ;;  %v219_v28 = vsel %vm216_vm2, %v217_v41, %v218_v61  ;;  %v621_v16 = vsel %vm616_vm6, %v618_v22, %v620_v42  ;;  %v705_v11 = vld [vmem:[#allocation2 + $0x30] sm:$0xff] }
  0x7b   :  { %6974 = vmatpush3.msra.mxu0 %v686_v49  ;;  %7021 = vmatpush3.msra.mxu1 %v686_v49  ;;  %v164_v17 = vadd.f32 %v119_v15, %v48_v39  ;;  %v319_v52 = vsel %vm316_vm3, %v317_v44, %v318_v20  ;;  %v517_v45 = vrot.slane %v484_v38, 5  ;;  %v419_v50 = vsel %vm416_vm4, %v417_v12, %v418_v23  ;;  %v701_v61 = vld [vmem:[#allocation2 + $0x10] sm:$0xff]  ;;  %v706_v20 = vld [vmem:[#allocation2 + $0x38] sm:$0xff]  ;;  %v708_v23 = vld [vmem:[#allocation2 + $0x48] sm:$0xff] }
  0x7c   :  { %6975 = vmatprep.subr.mxu0 %v7843_v1  ;;  %7022 = vmatprep.subr.mxu1 %v7843_v1  ;;  %v565_v55 = vadd.f32 %v521_v47, %v465_v14  ;;  %v617_v56 = vrot.slane %v584_v13, 6 }
  0x7d   :  { %v264_v18 = vadd.f32 %v219_v28, %v164_v17  ;;  %v519_v62 = vsel %vm516_vm5, %v517_v45, %v518_v34  ;;  %v8320_v45 = vld [vmem:[#allocation2 + $0x68] sm:$0xff] }
  0x7e   :  { %v665_v53 = vadd.f32 %v621_v16, %v565_v55  ;;  %v619_v60 = vsel %vm616_vm6, %v617_v56, %v618_v22  ;;  %v6398_v56 = vadd.s32 4294967293, %v7867_v2 }
  0x7f   :  { %v364_v58 = vadd.f32 %v319_v52, %v264_v18  ;;  %v1057_v52 = vld [vmem:[#allocation2 + $0x60] sm:$0xff] }
  0x80   :  { %v685_v48 = vadd.f32 %v7951_v24, %v665_v53  ;;  %v1494_v18 = vrot.slane %v1057_v52, 6  ;;  %v1495_v53 = vrot.slane %v8320_v45, 6  ;;  %vm960_vm8 = vcmp.lt.s32.totalorder %v6398_v56, 0 }
  0x81   :  { %v464_v42 = vadd.f32 %v419_v50, %v364_v58  ;;  %v961_v58 = vsub.s32 0, %v6398_v56 }
  0x82   :  { %6976 = vmatpush3.msra.mxu0 %v685_v48  ;;  %7023 = vmatpush3.msra.mxu1 %v685_v48  ;;  %v1496_v50 = vsel %vm616_vm6, %v1494_v18, %v1495_v53 }
  0x83   :  { %6977 = vmatprep.subr.mxu0 %v7843_v1  ;;  %7024 = vmatprep.subr.mxu1 %v7843_v1  ;;  %v564_v54 = vadd.f32 %v519_v62, %v464_v42  ;;  %v6403_v48 = vmin.u32 %v6398_v56, %v961_v58 }
  0x85   :  { %v664_v51 = vadd.f32 %v619_v60, %v564_v54  ;;  %v8327_v62 = vmul.u32.u64.low 3435973837, %v6403_v48  ;;  %v8328_v42 = vmul.u32.u64.high 3435973837, %v6403_v48, %v8327_v62  ;;  %v936_v60 = vadd.s32 8, %v7867_v2 }
  0x87   :  { %v684_v57 = vadd.f32 %v7951_v24, %v664_v51  ;;  %v702_v24 = vld [vmem:[#allocation2 + $0x18] sm:$0xff]  ;;  %v6399_v54 = vadd.s32 4294967293, %v936_v60  ;;  %v966_v51 = vshrl.u32 %v8328_v42, 4 }
  0x89   :  { %6978 = vmatpush3.msra.mxu0 %v684_v57  ;;  %7025 = vmatpush3.msra.mxu1 %v684_v57  ;;  %v937_v57 = vadd.s32 16, %v7867_v2 }
  0x8a   :  { %6980 = vmatmul.mubr.msk.f32.vlgmr.msra.gmra.mxu0 %vm710_vm7, %v700_v0  ;;  %7027 = vmatmul.mubr.msk.f32.vlgmr.msra.gmra.mxu1 %vm710_vm7, %v705_v11  ;;  %v8333_v0 = vmul.u32.u64.low 3435973837, %v6399_v54  ;;  %v8334_v11 = vmul.u32.u64.high 3435973837, %v6399_v54, %v8333_v0 }
  0x8b   :  { %6982 = vmatprep.mubr.msk.f32.mxu0 %vm7844_vm0, %v7843_v1  ;;  %7029 = vmatprep.mubr.msk.f32.mxu1 %vm7844_vm0, %v7843_v1 }
  0x8c   :  { %7041 = vmatprep.subr.mxu0 %v7843_v1  ;;  %7058 = vmatprep.subr.mxu1 %v7843_v1 }
  0x8d   :  { %7042 = vmatpush3.msk.msra.mxu0 %vm216_vm2, %v1057_v52  ;;  %7059 = vmatpush3.msk.msra.mxu1 %vm216_vm2, %v1496_v50  ;;  %v8410_v52 = vld [vmem:[#allocation2 + $0x70] sm:$0xff] }
  0x8e   :  { %6983 = vmatmul.mubr.msk.f32.gmra.mxu0 %vm710_vm7, %v701_v61  ;;  %7030 = vmatmul.mubr.msk.f32.gmra.mxu1 %vm710_vm7, %v706_v20  ;;  %v967_v61 = vmul.u32 20, %v966_v51  ;;  %v6400_v20 = vadd.s32 4294967293, %v937_v57  ;;  %v1634_v57 = vrot.slane %v8410_v52, 4 }
  0x8f   :  { %6985 = vmatprep.mubr.msk.f32.mxu0 %vm7844_vm0, %v7843_v1  ;;  %7032 = vmatprep.mubr.msk.f32.mxu1 %vm7844_vm0, %v7843_v1 }
  0x90   :  { %7075 = vmatprep.subr.mxu0 %v7843_v1  ;;  %7092 = vmatprep.subr.mxu1 %v7843_v1 }
  0x92   :  { %6986 = vmatmul.mubr.msk.f32.gmra.mxu0 %vm710_vm7, %v702_v24  ;;  %7033 = vmatmul.mubr.msk.f32.gmra.mxu1 %vm710_vm7, %v707_v25  ;;  %v968_v24 = vsub.s32 %v6403_v48, %v967_v61 }
  0x93   :  { %6988 = vmatprep.mubr.msk.f32.mxu0 %vm7844_vm0, %v7843_v1  ;;  %7035 = vmatprep.mubr.msk.f32.mxu1 %vm7844_vm0, %v7843_v1 }
  0x94   :  { %v969_v21 = vsub.s32 0, %v968_v24 }
  0x96   :  { %6989 = vmatmul.mubr.msk.f32.gmra.mxu0 %vm710_vm7, %v703_v59  ;;  %7036 = vmatmul.mubr.msk.f32.gmra.mxu1 %vm710_vm7, %v708_v23  ;;  %v8336_v25 = vmul.u32.u64.low 3435973837, %v6400_v20  ;;  %v8337_v59 = vmul.u32.u64.high 3435973837, %v6400_v20, %v8336_v25  ;;  %v977_v23 = vshrl.u32 %v8334_v11, 4 }
  0x97   :  { %6991 = vmatprep.mubr.msk.f32.mxu0 %vm7844_vm0, %v7843_v1  ;;  %7038 = vmatprep.mubr.msk.f32.mxu1 %vm7844_vm0, %v7843_v1 }
  0x9a   :  { %6992 = vmatmul.mubr.msk.f32.gmra.mxu0 %vm710_vm7, %v704_v10  ;;  %7039 = vmatmul.mubr.msk.f32.gmra.mxu1 %vm710_vm7, %v709_v27  ;;  %v8341_v10 = vadd.s32 32, %v7867_v2  ;;  %v938_v27 = vadd.s32 24, %v7867_v2  ;;  %v1633_v2 = vrot.slane %v8320_v45, 4 }
  0x9b   :  { %7043 = vmatprep.mubr.msk.f32.mxu0 %vm7844_vm0, %v7843_v1  ;;  %7060 = vmatprep.mubr.msk.f32.mxu1 %vm7844_vm0, %v7843_v1 }
 0x14a   :  { %v795_v29 = vpop.f32.mrf.mxu0  ;;  %v900_v31 = vpop.f32.mrf.mxu1 }
 0x14b   :  { %v924_v19 = vmax.f32 %v795_v29, %v900_v31  ;;  %v978_v29 = vmul.u32 20, %v977_v23  ;;  %v6402_v31 = vadd.s32 4294967293, %v8341_v10 }
 0x14c   :  { %v6981_v34 = vpop.f32.mrf.mxu0  ;;  %v7028_v26 = vpop.f32.mrf.mxu1 }
 0x14d   :  { %v929_v33 = vmax.f32 %v924_v19, 0.0  ;;  %v6401_v19 = vadd.s32 4294967293, %v938_v27  ;;  %v970_v34 = vsel %vm960_vm8, %v969_v21, %v968_v24  ;;  %v988_v26 = vshrl.u32 %v8337_v59, 4 }
 0x14e   :  { %v800_v35 = vpop.f32.mrf.mxu0  ;;  %v905_v22 = vpop.f32.mrf.mxu1  ;;  %vm1015_vm9 = vcmp.ne.s32.totalorder %v970_v34, 0  ;;  %vm1020_vm10 = vcmp.lt.s32.totalorder %v970_v34, 0 }
 0x14f   :  { %v925_v30 = vmax.f32 %v800_v35, %v905_v22  ;;  %1067 = vperm.xlu0 %7794, %v929_v33   ;;  %v979_v33 = vsub.s32 %v6399_v54, %v978_v29  ;;  %v8346_v35 = vmul.u32.u64.low 3435973837, %v6402_v31  ;;  %v8347_v22 = vmul.u32.u64.high 3435973837, %v6402_v31, %v8346_v35  ;;  %vm1025_vm11 = vmand %vm1020_vm10, %vm1015_vm9 }
 0x150   :  { %v6984_v36 = vpop.f32.mrf.mxu0  ;;  %v7031_v40 = vpop.f32.mrf.mxu1 }
 0x151   :  { %v930_v63 = vmax.f32 %v925_v30, 0.0  ;;  %v8349_v30 = vmul.u32.u64.low 3435973837, %v6401_v19  ;;  %v8350_v36 = vmul.u32.u64.high 3435973837, %v6401_v19, %v8349_v30  ;;  %v1030_v40 = vadd.s32 20, %v970_v34 }
 0x152   :  { %v805_v37 = vpop.f32.mrf.mxu0  ;;  %v910_v39 = vpop.f32.mrf.mxu1  ;;  %vm1016_vm12 = vcmp.ne.s32.totalorder %v979_v33, 0  ;;  %vm1021_vm13 = vcmp.lt.s32.totalorder %v979_v33, 0 }
 0x153   :  { %v926_v32 = vmax.f32 %v805_v37, %v910_v39  ;;  %1072 = vperm.xlu0 %7794, %v930_v63   ;;  %v989_v63 = vmul.u32 20, %v988_v26  ;;  %v1031_v37 = vadd.s32 20, %v979_v33  ;;  %v1035_v39 = vsel %vm1025_vm11, %v1030_v40, %v970_v34  ;;  %vm1026_vm14 = vmand %vm1021_vm13, %vm1016_vm12 }
 0x154   :  { %v6987_v38 = vpop.f32.mrf.mxu0  ;;  %v7034_v46 = vpop.f32.mrf.mxu1  ;;  %vm1040_vm7 = vcmp.lt.s32.totalorder %v1035_v39, 14 }
 0x155   :  { %v931_v43 = vmax.f32 %v926_v32, 0.0  ;;  %v8352_v32 = vsub.s32 %v6400_v20, %v989_v63  ;;  %v1010_v38 = vshrl.u32 %v8347_v22, 4  ;;  %v999_v46 = vshrl.u32 %v8350_v36, 4  ;;  %vm1045_vm10 = vmand %vm940_vm15, %vm1040_vm7 }
 0x156   :  { %v810_v41 = vpop.f32.mrf.mxu0  ;;  %v915_v44 = vpop.f32.mrf.mxu1 }
 0x157   :  { %v927_v49 = vmax.f32 %v810_v41, %v915_v44  ;;  %1077 = vperm.xlu1 %7795, %v931_v43   ;;  %v1055_v43 = vld [vmem:[#allocation2 + $0x58] sm:$0x7f]  ;;  %v1036_v41 = vsel %vm1026_vm14, %v1031_v37, %v979_v33  ;;  %vm1017_vm8 = vcmp.ne.s32.totalorder %v8352_v32, 0  ;;  %vm1022_vm9 = vcmp.lt.s32.totalorder %v8352_v32, 0 }
 0x158   :  { %v6990_v47 = vpop.f32.mrf.mxu0  ;;  %v7037_v13 = vpop.f32.mrf.mxu1  ;;  %v1011_v44 = vmul.u32 20, %v1010_v38  ;;  %vm1041_vm11 = vcmp.lt.s32.totalorder %v1036_v41, 14  ;;  %vm8384_vm12 = vmand %vm1022_vm9, %vm1017_vm8  ;;  %vm1351_vm9 = vcmask 48128  }
 0x159   :  { %v932_v14 = vmax.f32 %v927_v49, 0.0  ;;  %v8361_v49 = vrot.slane %v1055_v43, %v82_v4  ;;  %v8364_v47 = vadd.s32 20, %v8352_v32  ;;  %v1000_v13 = vmul.u32 20, %v999_v46 }
 0x15a   :  { %v815_v15 = vpop.f32.mrf.mxu0  ;;  %v920_v28 = vpop.f32.mrf.mxu1  ;;  %v8380_v4 = vrot.slane %v1055_v43, %v482_v8  ;;  %v8400_v8 = vsel %vm1041_vm11, 1.0, %v7843_v1 }
 0x15b   :  { %v928_v12 = vmax.f32 %v815_v15, %v920_v28  ;;  %1082 = vperm.xlu1 %7795, %v932_v14   ;;  %v8368_v14 = vrot.slane %v1055_v43, %v182_v5  ;;  %v8372_v15 = vrot.slane %v1055_v43, %v282_v6  ;;  %v8376_v28 = vrot.slane %v1055_v43, %v382_v7 }
 0x15c   :  { %v6993_v16 = vpop.f32.mrf.mxu0  ;;  %v7040_v17 = vpop.f32.mrf.mxu1  ;;  %v8390_v5 = vrot.slane %v1055_v43, %v582_v9  ;;  %v8394_v6 = vrot.slane %v1055_v43, %v46_v3  ;;  %v8397_v7 = vsel %vm1045_vm10, 1.0, %v7843_v1  ;;  %v1037_v9 = vsel %vm8384_vm12, %v8364_v47, %v8352_v32 }
 0x15d   :  { %v933_v55 = vmax.f32 %v928_v12, 0.0  ;;  %v8402_v17 = vsub.s32 %v6402_v31, %v1011_v44  ;;  %v8413_v3 = vsub.s32 %v6401_v19, %v1000_v13  ;;  %vm8543_vm8 = vcmp.lt.s32.totalorder %v1037_v9, 14 }
 0x15e   :  { %vm949_vm12 = vcmp.lt.s32.totalorder %v8341_v10, 37 }
 0x15f   :  { %1087 = vperm.xlu0 %7794, %v933_v55   ;;  %v8439_v0 = vadd.s32 20, %v8402_v17  ;;  %vm1019_vm13 = vcmp.ne.s32.totalorder %v8402_v17, 0  ;;  %vm1024_vm14 = vcmp.lt.s32.totalorder %v8402_v17, 0  ;;  %vm1018_vm15 = vcmp.ne.s32.totalorder %v8413_v3, 0 }
 0x160   :  { %vm1023_vm7 = vcmp.lt.s32.totalorder %v8413_v3, 0  ;;  %vm8562_vm10 = vmand %vm1024_vm14, %vm1019_vm13 }
 0x161   :  { %vm8578_vm11 = vmand %vm1023_vm7, %vm1018_vm15  ;;  %vm3210_vm7 = vcmask 97280  }
 0x1ca   :  { %v8382_v12 = vpop.permute.xlu0 %1067 }
 0x1cb   :  { %v1108_v55 = vmul.f32 %v8361_v49, %v8382_v12  ;;  %v1141_v18 = vmul.f32 %v8368_v14, %v8382_v12  ;;  %v1174_v53 = vmul.f32 %v8372_v15, %v8382_v12  ;;  %v1207_v50 = vmul.f32 %v8376_v28, %v8382_v12 }
 0x1cc   :  { %v1240_v56 = vmul.f32 %v8380_v4, %v8382_v12  ;;  %v1273_v48 = vmul.f32 %v8390_v5, %v8382_v12  ;;  %v1094_v11 = vmul.f32 %v8394_v6, %v8382_v12 }
 0x1cd   :  { %v1118_v61 = vrot.slane %v1108_v55, 1  ;;  %v1151_v25 = vrot.slane %v1141_v18, 2  ;;  %v1184_v59 = vrot.slane %v1174_v53, 3  ;;  %v1217_v23 = vrot.slane %v1207_v50, 4 }
 0x1ce   :  { %v8423_v58 = vpop.permute.xlu0 %1072  ;;  %v1250_v27 = vrot.slane %v1240_v56, 5  ;;  %v1283_v29 = vrot.slane %v1273_v48, 6 }
 0x1cf   :  { %v1109_v62 = vmul.f32 %v8361_v49, %v8423_v58  ;;  %v1142_v42 = vmul.f32 %v8368_v14, %v8423_v58  ;;  %v1175_v60 = vmul.f32 %v8372_v15, %v8423_v58  ;;  %v1208_v54 = vmul.f32 %v8376_v28, %v8423_v58 }
 0x1d0   :  { %v1241_v51 = vmul.f32 %v8380_v4, %v8423_v58  ;;  %v1274_v34 = vmul.f32 %v8390_v5, %v8423_v58  ;;  %v1095_v37 = vmul.f32 %v8394_v6, %v8423_v58 }
 0x1d1   :  { %v1119_v20 = vrot.slane %v1109_v62, 1  ;;  %v1152_v24 = vrot.slane %v1142_v42, 2  ;;  %v1185_v19 = vrot.slane %v1175_v60, 3  ;;  %v1218_v35 = vrot.slane %v1208_v54, 4 }
 0x1d2   :  { %v8443_v21 = vpop.permute.xlu1 %1077  ;;  %v1251_v22 = vrot.slane %v1241_v51, 5  ;;  %v1284_v41 = vrot.slane %v1274_v34, 6 }
 0x1d3   :  { %v1120_v31 = vsel %vm116_vm1, %v1118_v61, %v1119_v20  ;;  %v1153_v33 = vsel %vm216_vm2, %v1151_v25, %v1152_v24  ;;  %v1110_v30 = vmul.f32 %v8361_v49, %v8443_v21  ;;  %v1143_v36 = vmul.f32 %v8368_v14, %v8443_v21 }
 0x1d4   :  { %v1132_v26 = vadd.f32 %v1120_v31, %v1094_v11  ;;  %v1176_v40 = vmul.f32 %v8372_v15, %v8443_v21  ;;  %v8457_v63 = vmul.f32 %v8376_v28, %v8443_v21  ;;  %v8463_v38 = vmul.f32 %v8380_v4, %v8443_v21 }
 0x1d5   :  { %v8467_v46 = vmul.f32 %v8390_v5, %v8443_v21  ;;  %v1186_v43 = vsel %vm316_vm3, %v1184_v59, %v1185_v19  ;;  %v1121_v44 = vrot.slane %v1110_v30, 1  ;;  %v1154_v13 = vrot.slane %v1143_v36, 2 }
 0x1d6   :  { %v1165_v39 = vadd.f32 %v1153_v33, %v1132_v26  ;;  %v1219_v18 = vsel %vm416_vm4, %v1217_v23, %v1218_v35  ;;  %v1252_v53 = vsel %vm516_vm5, %v1250_v27, %v1251_v22  ;;  %v1096_v50 = vmul.f32 %v8394_v6, %v8443_v21  ;;  %v8474_v56 = vpop.permute.xlu1 %1082 }
 0x1d7   :  { %v1122_v48 = vsel %vm116_vm1, %v1119_v20, %v1121_v44  ;;  %v1187_v62 = vrot.slane %v1176_v40, 3  ;;  %v1220_v42 = vrot.slane %v8457_v63, 4  ;;  %v1253_v60 = vrot.slane %v8463_v38, 5 }
 0x1d8   :  { %v1198_v55 = vadd.f32 %v1186_v43, %v1165_v39  ;;  %v1133_v51 = vadd.f32 %v1122_v48, %v1095_v37  ;;  %v1155_v11 = vsel %vm216_vm2, %v1152_v24, %v1154_v13  ;;  %v1286_v61 = vrot.slane %v8467_v46, 6 }
 0x1d9   :  { %v1111_v25 = vmul.f32 %v8361_v49, %v8474_v56  ;;  %v1144_v59 = vmul.f32 %v8368_v14, %v8474_v56  ;;  %v8487_v20 = vmul.f32 %v8372_v15, %v8474_v56  ;;  %v8491_v23 = vmul.f32 %v8376_v28, %v8474_v56 }
 0x1da   :  { %v1231_v54 = vadd.f32 %v1219_v18, %v1198_v55  ;;  %v1285_v31 = vsel %vm616_vm6, %v1283_v29, %v1284_v41  ;;  %v1166_v24 = vadd.f32 %v1155_v11, %v1133_v51  ;;  %v8496_v34 = vmul.f32 %v8380_v4, %v8474_v56  ;;  %v8507_v39 = vpop.permute.xlu0 %1087 }
 0x1db   :  { %v1188_v26 = vsel %vm316_vm3, %v1185_v19, %v1187_v62  ;;  %v1097_v33 = vmul.f32 %v8394_v6, %v8474_v56  ;;  %v1123_v30 = vrot.slane %v1111_v25, 1  ;;  %v1156_v36 = vrot.slane %v1144_v59, 2 }
 0x1dc   :  { %v1264_v27 = vadd.f32 %v1252_v53, %v1231_v54  ;;  %v1199_v40 = vadd.f32 %v1188_v26, %v1166_v24  ;;  %v1221_v63 = vsel %vm416_vm4, %v1218_v35, %v1220_v42  ;;  %v1254_v37 = vsel %vm516_vm5, %v1251_v22, %v1253_v60 }
 0x1dd   :  { %v8505_v29 = vmul.f32 %v8390_v5, %v8474_v56  ;;  %v1287_v19 = vsel %vm616_vm6, %v1284_v41, %v1286_v61  ;;  %v1124_v38 = vsel %vm116_vm1, %v1121_v44, %v1123_v30  ;;  %v1189_v35 = vrot.slane %v8487_v20, 3 }
 0x1de   :  { %v1222_v22 = vrot.slane %v8491_v23, 4  ;;  %v1297_v43 = vadd.f32 %v1285_v31, %v1264_v27  ;;  %v1232_v55 = vadd.f32 %v1221_v63, %v1199_v40  ;;  %v1134_v18 = vadd.f32 %v1124_v38, %v1096_v50 }
 0x1df   :  { %v1255_v53 = vrot.slane %v8496_v34, 5  ;;  %v1157_v48 = vsel %vm216_vm2, %v1154_v13, %v1156_v36  ;;  %v1112_v54 = vmul.f32 %v8361_v49, %v8507_v39  ;;  %v1145_v51 = vmul.f32 %v8368_v14, %v8507_v39 }
 0x1e0   :  { %v1178_v41 = vmul.f32 %v8372_v15, %v8507_v39  ;;  %v1265_v44 = vadd.f32 %v1254_v37, %v1232_v55  ;;  %v1167_v11 = vadd.f32 %v1157_v48, %v1134_v18  ;;  %v1288_v50 = vrot.slane %v8505_v29, 6  ;;  %v8533_v15 = vld [vmem:[#allocation2 + $0x5f] ss:$0 sm:$0xff] }
 0x1e1   :  { %v1211_v13 = vmul.f32 %v8376_v28, %v8507_v39  ;;  %v1190_v25 = vsel %vm316_vm3, %v1187_v62, %v1189_v35  ;;  %v1098_v49 = vmul.f32 %v8394_v6, %v8507_v39  ;;  %v1125_v14 = vrot.slane %v1112_v54, 1 }
 0x1e2   :  { %v1158_v59 = vrot.slane %v1145_v51, 2  ;;  %v1298_v20 = vadd.f32 %v1287_v19, %v1265_v44  ;;  %v1200_v23 = vadd.f32 %v1190_v25, %v1167_v11  ;;  %v1223_v27 = vsel %vm416_vm4, %v1220_v42, %v1222_v22 }
 0x1e3   :  { %v1244_v31 = vmul.f32 %v8380_v4, %v8507_v39  ;;  %v1256_v6 = vsel %vm516_vm5, %v1253_v60, %v1255_v53  ;;  %v1126_v62 = vsel %vm116_vm1, %v1123_v30, %v1125_v14  ;;  %v1136_v24 = vadd.f32 %v1125_v14, %v1098_v49 }
 0x1e4   :  { %v1191_v34 = vrot.slane %v1178_v41, 3  ;;  %v1233_v42 = vadd.f32 %v1223_v27, %v1200_v23  ;;  %v1135_v26 = vadd.f32 %v1126_v62, %v1097_v33  ;;  %v1224_v40 = vrot.slane %v1211_v13, 4 }
 0x1e5   :  { %v1277_v4 = vmul.f32 %v8390_v5, %v8507_v39  ;;  %v1159_v16 = vsel %vm216_vm2, %v1156_v36, %v1158_v59  ;;  %v1169_v32 = vadd.f32 %v1158_v59, %v1136_v24  ;;  %v1306_v47 = vadd.f32 %v8533_v15, %v1297_v43  ;;  %v1060_v5 = vld [vmem:[#allocation2 + $0x78] sm:$0xff] }
 0x1e6   :  { %v1307_v9 = vadd.f32 %v8533_v15, %v1298_v20  ;;  %v1266_v63 = vadd.f32 %v1256_v6, %v1233_v42  ;;  %v1289_v60 = vsel %vm616_vm6, %v1286_v61, %v1288_v50  ;;  %v1168_v30 = vadd.f32 %v1159_v16, %v1135_v26 }
 0x1e7   :  { %v1257_v37 = vrot.slane %v1244_v31, 5  ;;  %v1192_v33 = vsel %vm316_vm3, %v1189_v35, %v1191_v34  ;;  %v1202_v29 = vadd.f32 %v1191_v34, %v1169_v32  ;;  %v1311_v19 = vmax.f32 %v1306_v47, 0.0 }
 0x1e8   :  { %v1312_v38 = vmax.f32 %v1307_v9, 0.0  ;;  %v1299_v36 = vadd.f32 %v1289_v60, %v1266_v63  ;;  %v1201_v43 = vadd.f32 %v1192_v33, %v1168_v30  ;;  %v1225_v46 = vsel %vm416_vm4, %v1222_v22, %v1224_v40 }
 0x1e9   :  { %v1033_v61 = vadd.s32 20, %v8413_v3  ;;  %v1235_v55 = vadd.f32 %v1224_v40, %v1202_v29  ;;  %v1290_v18 = vrot.slane %v1277_v4, 6  ;;  %v1321_v35 = vrot.slane %v1311_v19, 5 }
 0x1ea   :  { %v1322_v48 = vrot.slane %v1312_v38, 5  ;;  %v1308_v54 = vadd.f32 %v8533_v15, %v1299_v36  ;;  %v1234_v51 = vadd.f32 %v1225_v46, %v1201_v43  ;;  %v1635_v41 = vsel %vm416_vm4, %v1633_v2, %v1634_v57  ;;  %v1061_v38 = vld [vmem:[#allocation2 + $0x80] sm:$0xff] }
 0x1eb   :  { %v1039_v44 = vsel %vm8562_vm10, %v8439_v0, %v8402_v17  ;;  %v1258_v11 = vsel %vm516_vm5, %v1255_v53, %v1257_v37  ;;  %v1268_v13 = vadd.f32 %v1257_v37, %v1235_v55  ;;  %v1335_v45 = vsel %vm516_vm5, 0.0, %v1321_v35 }
 0x1ec   :  { %v1323_v2 = vsel %vm516_vm5, %v1321_v35, %v1322_v48  ;;  %v1313_v57 = vmax.f32 %v1308_v54, 0.0  ;;  %v1267_v25 = vadd.f32 %v1258_v11, %v1234_v51  ;;  %v8590_v49 = vmul.f32 %v1335_v45, %v8397_v7 }
 0x1ed   :  { %v8593_v14 = vmul.f32 %v1323_v2, %v8400_v8  ;;  %v1291_v59 = vsel %vm616_vm6, %v1288_v50, %v1290_v18  ;;  %v1301_v20 = vadd.f32 %v1290_v18, %v1268_v13  ;;  %v8599_v17 = vsel %vm8543_vm8, 1.0, %v7843_v1  ;;  %v1062_v2 = vld [vmem:[#allocation2 + $0x88] sm:$0x3] }
 0x1ee   :  { %v1038_v0 = vsel %vm8578_vm11, %v1033_v61, %v8413_v3  ;;  %v1324_v53 = vrot.slane %v1313_v57, 5  ;;  %v1300_v23 = vadd.f32 %v1291_v59, %v1267_v25  ;;  %7044 = vmatmul.mubr.msk.f32.vlgmr.msra.gmra.mxu0 %vm1351_vm9, %v8590_v49  ;;  %v1484_v27 = vrot.slane %v8590_v49, 1 }
 0x1ef   :  { %v1485_v31 = vrot.slane %v8593_v14, 1  ;;  %v1310_v50 = vadd.f32 %v8533_v15, %v1301_v20  ;;  %7046 = vmatprep.mubr.msk.f32.mxu0 %vm7844_vm0, %v7843_v1  ;;  %7076 = vmatpush3.msk.msra.mxu0 %vm216_vm2, %v1635_v41  ;;  %vm1044_vm13 = vcmp.lt.s32.totalorder %v1039_v44, 14  ;;  %v1771_v3 = vrot.slane %v8410_v52, 2 }
 0x1f0   :  { %v1309_v28 = vadd.f32 %v8533_v15, %v1300_v23  ;;  %v1325_v62 = vsel %vm516_vm5, %v1322_v48, %v1324_v53  ;;  %7109 = vmatprep.subr.mxu0 %v7843_v1  ;;  %vm1043_vm14 = vcmp.lt.s32.totalorder %v1038_v0, 14  ;;  %vm1049_vm15 = vmand %vm949_vm12, %vm1044_vm13  ;;  %v1624_v33 = vrot.slane %v8593_v14, 2 }
 0x1f1   :  { %v1486_v6 = vsel %vm116_vm1, %v1484_v27, %v1485_v31  ;;  %v1315_v24 = vmax.f32 %v1310_v50, 0.0  ;;  %v8620_v34 = vmul.f32 %v1325_v62, %v8599_v17  ;;  %v8631_v26 = vsel %vm1043_vm14, 1.0, %v7843_v1 }
 0x1f2   :  { %7061 = vmatmul.mubr.msk.f32.vlgmr.msra.gmra.mxu1 %vm1351_vm9, %v1486_v6  ;;  %v1314_v42 = vmax.f32 %v1309_v28, 0.0  ;;  %7047 = vmatmul.mubr.msk.f32.gmra.mxu0 %vm1351_vm9, %v8593_v14  ;;  %v8636_v4 = vsel %vm1049_vm15, 1.0, %v7843_v1  ;;  %v1623_v19 = vrot.slane %v8590_v49, 2  ;;  %v2044_v46 = vrot.slane %v1060_v5, 6 }
 0x1f3   :  { %7063 = vmatprep.mubr.msk.f32.mxu1 %vm7844_vm0, %v7843_v1  ;;  %v1328_v10 = vrot.slane %v1315_v24, 5  ;;  %7049 = vmatprep.mubr.msk.f32.mxu0 %vm7844_vm0, %v7843_v1  ;;  %v1487_v52 = vrot.slane %v8620_v34, 1  ;;  %v1626_v43 = vrot.slane %v8620_v34, 2  ;;  %v2045_v61 = vrot.slane %v1061_v38, 6 }
 0x1f4   :  { %7093 = vmatpush3.msk.msra.mxu1 %vm216_vm2, %v1771_v3  ;;  %v1326_v15 = vrot.slane %v1314_v42, 5  ;;  %v1625_v36 = vsel %vm216_vm2, %v1623_v19, %v1624_v33  ;;  %v1763_v55 = vrot.slane %v8593_v14, 3  ;;  %v1762_v35 = vrot.slane %v8590_v49, 3 }
 0x1f5   :  { %7126 = vmatprep.subr.mxu1 %v7843_v1  ;;  %v1488_v40 = vsel %vm116_vm1, %v1485_v31, %v1487_v52  ;;  %v1627_v18 = vsel %vm216_vm2, %v1624_v33, %v1626_v43  ;;  %v2046_v54 = vsel %vm616_vm6, %v2044_v46, %v2045_v61  ;;  %v1765_v41 = vrot.slane %v8620_v34, 3 }
 0x1f6   :  { %v1329_v16 = vsel %vm516_vm5, %v1326_v15, %v1328_v10  ;;  %7050 = vmatmul.mubr.msk.f32.gmra.mxu0 %vm1351_vm9, %v8620_v34  ;;  %7064 = vmatmul.mubr.msk.f32.gmra.mxu1 %vm1351_vm9, %v1488_v40  ;;  %v1327_v32 = vsel %vm516_vm5, %v1324_v53, %v1326_v15  ;;  %v1764_v51 = vsel %vm316_vm3, %v1762_v35, %v1763_v55  ;;  %v2183_v59 = vrot.slane %v1061_v38, 4 }
 0x1f7   :  { %7052 = vmatprep.mubr.msk.f32.mxu0 %vm7844_vm0, %v7843_v1  ;;  %v8646_v47 = vmul.f32 %v1327_v32, %v8631_v26  ;;  %7066 = vmatprep.mubr.msk.f32.mxu1 %vm7844_vm0, %v7843_v1  ;;  %v1336_v9 = vsel %vm316_vm3, %v1329_v16, 0.0  ;;  %v1766_v11 = vsel %vm316_vm3, %v1763_v55, %v1765_v41  ;;  %v2184_v20 = vrot.slane %v1062_v2, 4 }
 0x1f8   :  { %v8652_v63 = vmul.f32 %v1336_v9, %v8636_v4  ;;  %v1899_v0 = vrot.slane %v8593_v14, 4  ;;  %v1898_v23 = vrot.slane %v8590_v49, 4  ;;  %v1901_v50 = vrot.slane %v8620_v34, 4 }
 0x1f9   :  { %v1489_v60 = vrot.slane %v8646_v47, 1  ;;  %v1628_v48 = vrot.slane %v8646_v47, 2  ;;  %v1767_v13 = vrot.slane %v8646_v47, 3  ;;  %v2185_v27 = vsel %vm416_vm4, %v2183_v59, %v2184_v20 }
 0x1fa   :  { %7053 = vmatmul.mubr.msk.f32.gmra.mxu0 %vm1351_vm9, %v8646_v47  ;;  %v1491_v37 = vrot.slane %v8652_v63, 1  ;;  %v1630_v44 = vrot.slane %v8652_v63, 2  ;;  %v1769_v25 = vrot.slane %v8652_v63, 3  ;;  %v1900_v31 = vsel %vm416_vm4, %v1898_v23, %v1899_v0 }
 0x1fb   :  { %7055 = vmatprep.mubr.msk.f32.mxu0 %vm7844_vm0, %v7843_v1  ;;  %v1490_v30 = vsel %vm116_vm1, %v1487_v52, %v1489_v60  ;;  %v1629_v22 = vsel %vm216_vm2, %v1626_v43, %v1628_v48  ;;  %v1768_v57 = vsel %vm316_vm3, %v1765_v41, %v1767_v13  ;;  %v2035_v3 = vrot.slane %v8593_v14, 5 }
 0x1fc   :  { %7067 = vmatmul.mubr.msk.f32.gmra.mxu1 %vm1351_vm9, %v1490_v30  ;;  %v1492_v29 = vsel %vm116_vm1, %v1489_v60, %v1491_v37  ;;  %v1631_v45 = vsel %vm216_vm2, %v1628_v48, %v1630_v44  ;;  %v1770_v53 = vsel %vm316_vm3, %v1767_v13, %v1769_v25  ;;  %v1902_v28 = vsel %vm416_vm4, %v1899_v0, %v1901_v50 }
 0x1fd   :  { %7069 = vmatprep.mubr.msk.f32.mxu1 %vm7844_vm0, %v7843_v1  ;;  %v2034_v6 = vrot.slane %v8590_v49, 5  ;;  %v1903_v62 = vrot.slane %v8646_v47, 4  ;;  %v2037_v42 = vrot.slane %v8620_v34, 5  ;;  %v1905_v52 = vrot.slane %v8652_v63, 4 }
 0x1fe   :  { %7056 = vmatmul.mubr.msk.f32.gmra.mxu0 %vm1351_vm9, %v8652_v63  ;;  %v2039_v40 = vrot.slane %v8646_v47, 5  ;;  %v2041_v9 = vrot.slane %v8652_v63, 5  ;;  %v2174_v60 = vrot.slane %v8593_v14, 6  ;;  %v2180_v19 = vrot.slane %v8652_v63, 6 }
 0x1ff   :  { %7077 = vmatprep.mubr.msk.f32.mxu0 %vm7844_vm0, %v7843_v1  ;;  %v2036_v24 = vsel %vm516_vm5, %v2034_v6, %v2035_v3  ;;  %v1904_v10 = vsel %vm416_vm4, %v1901_v50, %v1903_v62  ;;  %v2038_v15 = vsel %vm516_vm5, %v2035_v3, %v2037_v42  ;;  %v1906_v16 = vsel %vm416_vm4, %v1903_v62, %v1905_v52 }
 0x200   :  { %7070 = vmatmul.mubr.msk.f32.gmra.mxu1 %vm1351_vm9, %v1492_v29  ;;  %v2040_v32 = vsel %vm516_vm5, %v2037_v42, %v2039_v40  ;;  %v2042_v30 = vsel %vm516_vm5, %v2039_v40, %v2041_v9  ;;  %v2176_v29 = vrot.slane %v8620_v34, 6  ;;  %vm5059_vm8 = vcmask 195584  }
 0x201   :  { %7072 = vmatprep.mubr.msk.f32.mxu1 %vm7844_vm0, %v7843_v1 }
 0x202   :  { %7078 = vmatmul.mubr.msk.f32.vlgmr.msra.gmra.mxu0 %vm1351_vm9, %v1625_v36  ;;  %v2177_v14 = vsel %vm616_vm6, %v2174_v60, %v2176_v29 }
 0x203   :  { %7080 = vmatprep.mubr.msk.f32.mxu0 %vm7844_vm0, %v7843_v1  ;;  %7110 = vmatpush3.msk.msra.mxu0 %vm216_vm2, %v1060_v5  ;;  %v8803_v5 = vld [vmem:[#allocation2 + $0x94] sm:$0xff] }
 0x204   :  { %7073 = vmatmul.mubr.msk.f32.gmra.mxu1 %vm1351_vm9, %v1491_v37  ;;  %7143 = vmatprep.subr.mxu0 %v7843_v1  ;;  %v2173_v37 = vrot.slane %v8590_v49, 6  ;;  %v2178_v49 = vrot.slane %v8646_v47, 6  ;;  %v2333_v47 = vld [vmem:[#allocation2 + $0x8c] sm:$0xff]  ;;  %v2370_v36 = vrot.slane %v8803_v5, 6 }
 0x205   :  { %7094 = vmatprep.mubr.msk.f32.mxu1 %vm7844_vm0, %v7843_v1  ;;  %v2369_v63 = vrot.slane %v2333_v47, 6 }
 0x206   :  { %7081 = vmatmul.mubr.msk.f32.gmra.mxu0 %vm1351_vm9, %v1627_v18  ;;  %v2175_v33 = vsel %vm616_vm6, %v2173_v37, %v2174_v60  ;;  %v2179_v34 = vsel %vm616_vm6, %v2176_v29, %v2178_v49  ;;  %v2181_v38 = vsel %vm616_vm6, %v2178_v49, %v2180_v19 }
 0x207   :  { %7083 = vmatprep.mubr.msk.f32.mxu0 %vm7844_vm0, %v7843_v1  ;;  %v2371_v43 = vsel %vm616_vm6, %v2369_v63, %v2370_v36 }
 0x208   :  { %7095 = vmatmul.mubr.msk.f32.vlgmr.msra.gmra.mxu1 %vm1351_vm9, %v1764_v51 }
 0x209   :  { %7097 = vmatprep.mubr.msk.f32.mxu1 %vm7844_vm0, %v7843_v1  ;;  %7127 = vmatpush3.msk.msra.mxu1 %vm216_vm2, %v2046_v54 }
 0x20a   :  { %7084 = vmatmul.mubr.msk.f32.gmra.mxu0 %vm1351_vm9, %v1629_v22  ;;  %7160 = vmatprep.subr.mxu1 %v7843_v1 }
 0x20b   :  { %7086 = vmatprep.mubr.msk.f32.mxu0 %vm7844_vm0, %v7843_v1 }
 0x20c   :  { %7098 = vmatmul.mubr.msk.f32.gmra.mxu1 %vm1351_vm9, %v1766_v11 }
 0x20d   :  { %7100 = vmatprep.mubr.msk.f32.mxu1 %vm7844_vm0, %v7843_v1 }
 0x20e   :  { %7087 = vmatmul.mubr.msk.f32.gmra.mxu0 %vm1351_vm9, %v1631_v45 }
 0x20f   :  { %7089 = vmatprep.mubr.msk.f32.mxu0 %vm7844_vm0, %v7843_v1 }
 0x210   :  { %7101 = vmatmul.mubr.msk.f32.gmra.mxu1 %vm1351_vm9, %v1768_v57 }
 0x211   :  { %7103 = vmatprep.mubr.msk.f32.mxu1 %vm7844_vm0, %v7843_v1 }
 0x212   :  { %7090 = vmatmul.mubr.msk.f32.gmra.mxu0 %vm1351_vm9, %v1630_v44 }
 0x213   :  { %7111 = vmatprep.mubr.msk.f32.mxu0 %vm7844_vm0, %v7843_v1 }
 0x214   :  { %7104 = vmatmul.mubr.msk.f32.gmra.mxu1 %vm1351_vm9, %v1770_v53 }
 0x215   :  { %7106 = vmatprep.mubr.msk.f32.mxu1 %vm7844_vm0, %v7843_v1 }
 0x216   :  { %7112 = vmatmul.mubr.msk.f32.vlgmr.msra.gmra.mxu0 %vm1351_vm9, %v1900_v31 }
 0x217   :  { %7114 = vmatprep.mubr.msk.f32.mxu0 %vm7844_vm0, %v7843_v1  ;;  %7144 = vmatpush3.msk.msra.mxu0 %vm216_vm2, %v2185_v27 }
 0x218   :  { %7107 = vmatmul.mubr.msk.f32.gmra.mxu1 %vm1351_vm9, %v1769_v25  ;;  %7177 = vmatprep.subr.mxu0 %v7843_v1 }
 0x219   :  { %7128 = vmatprep.mubr.msk.f32.mxu1 %vm7844_vm0, %v7843_v1 }
 0x21a   :  { %7115 = vmatmul.mubr.msk.f32.gmra.mxu0 %vm1351_vm9, %v1902_v28 }
 0x21b   :  { %7117 = vmatprep.mubr.msk.f32.mxu0 %vm7844_vm0, %v7843_v1 }
 0x21c   :  { %7129 = vmatmul.mubr.msk.f32.vlgmr.msra.gmra.mxu1 %vm1351_vm9, %v2036_v24 }
 0x21d   :  { %7131 = vmatprep.mubr.msk.f32.mxu1 %vm7844_vm0, %v7843_v1  ;;  %7161 = vmatpush3.msk.msra.mxu1 %vm216_vm2, %v2371_v43 }
 0x21e   :  { %7118 = vmatmul.mubr.msk.f32.gmra.mxu0 %vm1351_vm9, %v1904_v10  ;;  %7194 = vmatprep.subr.mxu1 %v7843_v1 }
 0x21f   :  { %7120 = vmatprep.mubr.msk.f32.mxu0 %vm7844_vm0, %v7843_v1 }
 0x220   :  { %7132 = vmatmul.mubr.msk.f32.gmra.mxu1 %vm1351_vm9, %v2038_v15 }
 0x221   :  { %7134 = vmatprep.mubr.msk.f32.mxu1 %vm7844_vm0, %v7843_v1 }
 0x222   :  { %7121 = vmatmul.mubr.msk.f32.gmra.mxu0 %vm1351_vm9, %v1906_v16 }
 0x223   :  { %7123 = vmatprep.mubr.msk.f32.mxu0 %vm7844_vm0, %v7843_v1 }
 0x224   :  { %7135 = vmatmul.mubr.msk.f32.gmra.mxu1 %vm1351_vm9, %v2040_v32 }
 0x225   :  { %7137 = vmatprep.mubr.msk.f32.mxu1 %vm7844_vm0, %v7843_v1 }
 0x226   :  { %7124 = vmatmul.mubr.msk.f32.gmra.mxu0 %vm1351_vm9, %v1905_v52 }
 0x227   :  { %7145 = vmatprep.mubr.msk.f32.mxu0 %vm7844_vm0, %v7843_v1 }
 0x228   :  { %7138 = vmatmul.mubr.msk.f32.gmra.mxu1 %vm1351_vm9, %v2042_v30 }
 0x229   :  { %7140 = vmatprep.mubr.msk.f32.mxu1 %vm7844_vm0, %v7843_v1 }
 0x22a   :  { %7146 = vmatmul.mubr.msk.f32.vlgmr.msra.gmra.mxu0 %vm1351_vm9, %v2175_v33  ;;  %v6405_v33 = vld [vmem:[#allocation2 + $0x8a] ss:$0 sm:$0xff] }
 0x22b   :  { %7148 = vmatprep.mubr.msk.f32.mxu0 %vm7844_vm0, %v7843_v1  ;;  %7178 = vmatpush3.msk.msra.mxu0 %vm216_vm2, %v2333_v47  ;;  %v1346_v63 = vmul.f32 %v6405_v33, %v8382_v12  ;;  %v1347_v36 = vmul.f32 %v6405_v33, %v8423_v58  ;;  %v1348_v43 = vmul.f32 %v6405_v33, %v8443_v21 }
 0x22c   :  { %7141 = vmatmul.mubr.msk.f32.gmra.mxu1 %vm1351_vm9, %v2041_v9  ;;  %7211 = vmatprep.subr.mxu0 %v7843_v1 }
 0x22d   :  { %7162 = vmatprep.mubr.msk.f32.mxu1 %vm7844_vm0, %v7843_v1 }
 0x22e   :  { %7149 = vmatmul.mubr.msk.f32.gmra.mxu0 %vm1351_vm9, %v2177_v14 }
 0x22f   :  { %7151 = vmatprep.mubr.msk.f32.mxu0 %vm7844_vm0, %v7843_v1 }
 0x232   :  { %7152 = vmatmul.mubr.msk.f32.gmra.mxu0 %vm1351_vm9, %v2179_v34 }
 0x233   :  { %7154 = vmatprep.mubr.msk.f32.mxu0 %vm7844_vm0, %v7843_v1 }
 0x236   :  { %7155 = vmatmul.mubr.msk.f32.gmra.mxu0 %vm1351_vm9, %v2181_v38 }
 0x237   :  { %7157 = vmatprep.mubr.msk.f32.mxu0 %vm7844_vm0, %v7843_v1 }
 0x23a   :  { %7158 = vmatmul.mubr.msk.f32.gmra.mxu0 %vm1351_vm9, %v2180_v19 }
 0x23b   :  { %7179 = vmatprep.mubr.msk.f32.mxu0 %vm7844_vm0, %v7843_v1 }
 0x2ae   :  { %v8811_v46 = vpop.f32.mrf.mxu0 }
 0x2af   :  { %v1465_v19 = vrot.slane %v8811_v46, 5 }
 0x2b0   :  { %v7045_v61 = vpop.f32.mrf.mxu0 }
 0x2b2   :  { %v8813_v55 = vpop.f32.mrf.mxu1  ;;  %v1441_v18 = vpop.f32.mrf.mxu0 }
 0x2b3   :  { %v1466_v49 = vrot.slane %v1441_v18, 5 }
 0x2b4   :  { %v7062_v35 = vpop.f32.mrf.mxu1  ;;  %v7048_v48 = vpop.f32.mrf.mxu0 }
 0x2b5   :  { %v1604_v35 = vrot.slane %v8813_v55, 5  ;;  %v1349_v48 = vmul.f32 %v6405_v33, %v8474_v56  ;;  %v1467_v12 = vsel %vm516_vm5, %v1465_v19, %v1466_v49  ;;  %v1479_v55 = vadd.f32 %v1465_v19, %v1346_v63 }
 0x2b6   :  { %v8815_v54 = vpop.f32.mrf.mxu0  ;;  %v8817_v51 = vpop.f32.mrf.mxu1 }
 0x2b7   :  { %v1468_v34 = vrot.slane %v8815_v54, 5  ;;  %v1605_v61 = vrot.slane %v8817_v51, 5  ;;  %v1350_v54 = vmul.f32 %v6405_v33, %v8507_v39  ;;  %v2586_v39 = vrot.slane %v8803_v5, 4 }
 0x2b8   :  { %v7051_v41 = vpop.f32.mrf.mxu0  ;;  %v7065_v22 = vpop.f32.mrf.mxu1 }
 0x2b9   :  { %v8867_v22 = vld [vmem:[#allocation2 + $0x9c] sm:$0xff]  ;;  %v1469_v58 = vsel %vm516_vm5, %v1466_v49, %v1468_v34 }
 0x2ba   :  { %v8819_v44 = vpop.f32.mrf.mxu0 }
 0x2bb   :  { %v1470_v18 = vrot.slane %v8819_v44, 5 }
 0x2bc   :  { %v7054_v11 = vpop.f32.mrf.mxu0  ;;  %v8821_v13 = vpop.f32.mrf.mxu1 }
 0x2bd   :  { %v1607_v21 = vrot.slane %v8821_v13, 5  ;;  %v2705_v13 = vrot.slane %v8867_v22, 2 }
 0x2be   :  { %v8823_v45 = vpop.f32.mrf.mxu0  ;;  %v7068_v2 = vpop.f32.mrf.mxu1 }
 0x2bf   :  { %v1472_v51 = vrot.slane %v8823_v45, 5  ;;  %v2587_v2 = vrot.slane %v8867_v22, 4  ;;  %v1618_v45 = vadd.f32 %v1604_v35, %v1479_v55 }
 0x2c0   :  { %v7057_v57 = vpop.f32.mrf.mxu0  ;;  %v8825_v25 = vpop.f32.mrf.mxu1 }
 0x2c1   :  { %v1609_v56 = vrot.slane %v8825_v25, 5  ;;  %v1606_v57 = vsel %vm516_vm5, %v1604_v35, %v1605_v61  ;;  %v1471_v25 = vsel %vm516_vm5, %v1468_v34, %v1470_v18 }
 0x2c2   :  { %v8827_v59 = vpop.f32.mrf.mxu0  ;;  %v7071_v20 = vpop.f32.mrf.mxu1 }
 0x2c3   :  { %v1743_v20 = vrot.slane %v8827_v59, 5 }
 0x2c4   :  { %v7079_v0 = vpop.f32.mrf.mxu0  ;;  %v8829_v53 = vpop.f32.mrf.mxu1 }
 0x2c5   :  { %v1757_v49 = vadd.f32 %v1743_v20, %v1618_v45 }
 0x2c6   :  { %v8831_v23 = vpop.f32.mrf.mxu0  ;;  %v7074_v27 = vpop.f32.mrf.mxu1 }
 0x2c7   :  { %v1744_v0 = vrot.slane %v8831_v23, 5  ;;  %v1480_v27 = vadd.f32 %v1467_v12, %v1347_v36  ;;  %v1610_v23 = vsel %vm516_vm5, %v1607_v21, %v1609_v56 }
 0x2c8   :  { %v7082_v31 = vpop.f32.mrf.mxu0  ;;  %v8833_v50 = vpop.f32.mrf.mxu1 }
 0x2c9   :  { %v1481_v31 = vadd.f32 %v1469_v58, %v1348_v43  ;;  %v1745_v34 = vsel %vm516_vm5, %v1743_v20, %v1744_v0 }
 0x2ca   :  { %v8835_v3 = vpop.f32.mrf.mxu0  ;;  %v7096_v28 = vpop.f32.mrf.mxu1 }
 0x2cb   :  { %v1746_v59 = vrot.slane %v8835_v3, 5 }
 0x2cc   :  { %v7085_v6 = vpop.f32.mrf.mxu0  ;;  %v8837_v62 = vpop.f32.mrf.mxu1 }
 0x2ce   :  { %v8839_v24 = vpop.f32.mrf.mxu0  ;;  %v7099_v42 = vpop.f32.mrf.mxu1 }
 0x2cf   :  { %v1608_v42 = vsel %vm516_vm5, %v1605_v61, %v1607_v21  ;;  %v1748_v19 = vrot.slane %v8839_v24, 5 }
 0x2d0   :  { %v7088_v10 = vpop.f32.mrf.mxu0  ;;  %v8841_v52 = vpop.f32.mrf.mxu1  ;;  %v1620_v63 = vadd.f32 %v1608_v42, %v1481_v31 }
 0x2d1   :  { %v1473_v10 = vsel %vm516_vm5, %v1470_v18, %v1472_v51  ;;  %v1882_v36 = vrot.slane %v8841_v52, 5 }
 0x2d2   :  { %v8843_v15 = vpop.f32.mrf.mxu0  ;;  %v7102_v40 = vpop.f32.mrf.mxu1  ;;  %v1483_v3 = vadd.f32 %v1473_v10, %v1350_v54  ;;  %v1749_v54 = vsel %vm516_vm5, %v1746_v59, %v1748_v19 }
 0x2d3   :  { %v1879_v40 = vrot.slane %v8833_v50, 5  ;;  %v1482_v50 = vadd.f32 %v1471_v25, %v1349_v48  ;;  %v1750_v52 = vrot.slane %v8843_v15, 5 }
 0x2d4   :  { %v7091_v16 = vpop.f32.mrf.mxu0  ;;  %v8845_v32 = vpop.f32.mrf.mxu1 }
 0x2d5   :  { %v1619_v16 = vadd.f32 %v1606_v57, %v1480_v27 }
 0x2d6   :  { %v8847_v9 = vpop.f32.mrf.mxu0  ;;  %v7105_v60 = vpop.f32.mrf.mxu1 }
 0x2d7   :  { %v1611_v60 = vrot.slane %v8829_v53, 5  ;;  %v1893_v53 = vadd.f32 %v1879_v40, %v1757_v49  ;;  %v1758_v24 = vadd.f32 %v1745_v34, %v1619_v16 }
 0x2d8   :  { %v7113_v30 = vpop.f32.mrf.mxu0  ;;  %v8849_v37 = vpop.f32.mrf.mxu1 }
 0x2d9   :  { %v1880_v30 = vrot.slane %v8837_v62, 5  ;;  %v1747_v62 = vsel %vm516_vm5, %v1744_v0, %v1746_v59  ;;  %v1612_v12 = vsel %vm516_vm5, %v1609_v56, %v1611_v60  ;;  %v1886_v20 = vrot.slane %v8849_v37, 5 }
 0x2da   :  { %v8851_v29 = vpop.f32.mrf.mxu0  ;;  %v7108_v14 = vpop.f32.mrf.mxu1  ;;  %v1759_v55 = vadd.f32 %v1747_v62, %v1620_v63  ;;  %v1622_v31 = vadd.f32 %v1612_v12, %v1483_v3 }
 0x2db   :  { %v2016_v35 = vrot.slane %v8851_v29, 5  ;;  %v1883_v29 = vsel %vm516_vm5, %v1880_v30, %v1882_v36 }
 0x2dc   :  { %v7116_v38 = vpop.f32.mrf.mxu0  ;;  %v8855_v47 = vpop.f32.mrf.mxu1 }
 0x2dd   :  { %v2015_v38 = vrot.slane %v8847_v9, 5  ;;  %v2154_v18 = vrot.slane %v8855_v47, 5  ;;  %v1881_v9 = vsel %vm516_vm5, %v1879_v40, %v1880_v30  ;;  %v1884_v47 = vrot.slane %v8845_v32, 5 }
 0x2de   :  { %v8865_v46 = vpop.f32.mrf.mxu0  ;;  %v7130_v41 = vpop.f32.mrf.mxu1  ;;  %v1894_v15 = vadd.f32 %v1881_v9, %v1758_v24  ;;  %v1895_v32 = vadd.f32 %v1883_v29, %v1759_v55 }
 0x2df   :  { %v1621_v41 = vadd.f32 %v1610_v23, %v1482_v50  ;;  %v2029_v21 = vadd.f32 %v2015_v38, %v1893_v53  ;;  %v2017_v0 = vsel %vm516_vm5, %v2015_v38, %v2016_v35  ;;  %v1887_v49 = vsel %vm516_vm5, %v1884_v47, %v1886_v20 }
 0x2e0   :  { %v7119_v11 = vpop.f32.mrf.mxu0  ;;  %v8874_v44 = vpop.f32.mrf.mxu1  ;;  %v2030_v37 = vadd.f32 %v2017_v0, %v1894_v15  ;;  %v2588_v20 = vsel %vm416_vm4, %v2586_v39, %v2587_v2 }
 0x2e1   :  { %v2155_v51 = vrot.slane %v8874_v44, 5  ;;  %v2018_v11 = vrot.slane %v8865_v46, 5  ;;  %v2168_v27 = vadd.f32 %v2154_v18, %v2029_v21  ;;  %v1760_v25 = vadd.f32 %v1749_v54, %v1621_v41 }
 0x2e2   :  { %v8883_v28 = vpop.f32.mrf.mxu0  ;;  %v7133_v6 = vpop.f32.mrf.mxu1  ;;  %v1751_v46 = vsel %vm516_vm5, %v1748_v19, %v1750_v52  ;;  %v8928_v52 = vld [vmem:[#allocation2 + $0xac] sm:$0xff] }
 0x2e3   :  { %v8912_v6 = vld [vmem:[#allocation2 + $0x8b] ss:$0 sm:$0xff]  ;;  %v2156_v40 = vsel %vm516_vm5, %v2154_v18, %v2155_v51  ;;  %v2019_v16 = vsel %vm516_vm5, %v2016_v35, %v2018_v11  ;;  %v2020_v23 = vrot.slane %v8883_v28, 5  ;;  %v1761_v53 = vadd.f32 %v1751_v46, %v1622_v31 }
 0x2e4   :  { %v7122_v33 = vpop.f32.mrf.mxu0  ;;  %v8892_v14 = vpop.f32.mrf.mxu1  ;;  %v2169_v50 = vadd.f32 %v2156_v40, %v2030_v37  ;;  %v2031_v62 = vadd.f32 %v2019_v16, %v1895_v32  ;;  %v2941_v15 = vrot.slane %v8928_v52, 6 }
 0x2e5   :  { %v2157_v44 = vrot.slane %v8892_v14, 5  ;;  %v1885_v14 = vsel %vm516_vm5, %v1882_v36, %v1884_v47  ;;  %v2021_v18 = vsel %vm516_vm5, %v2018_v11, %v2020_v23  ;;  %v1897_v24 = vadd.f32 %v1887_v49, %v1761_v53 }
 0x2e6   :  { %v2006_v43 = vpop.f32.mrf.mxu0  ;;  %v7136_v61 = vpop.f32.mrf.mxu1 }
 0x2e7   :  { %v2022_v60 = vrot.slane %v2006_v43, 5  ;;  %v2158_v19 = vsel %vm516_vm5, %v2155_v51, %v2157_v44  ;;  %v1896_v43 = vadd.f32 %v1885_v14, %v1760_v25 }
 0x2e8   :  { %v7125_v48 = vpop.f32.mrf.mxu0  ;;  %v2140_v58 = vpop.f32.mrf.mxu1  ;;  %v2170_v9 = vadd.f32 %v2158_v19, %v2031_v62 }
 0x2e9   :  { %v2159_v63 = vrot.slane %v2140_v58, 5  ;;  %v2023_v36 = vsel %vm516_vm5, %v2020_v23, %v2022_v60  ;;  %v8926_v58 = vld [vmem:[#allocation2 + $0xa4] sm:$0xff]  ;;  %v2032_v11 = vadd.f32 %v2021_v18, %v1896_v43 }
 0x2ea   :  { %v2264_v56 = vpop.f32.mrf.mxu0  ;;  %v7139_v57 = vpop.f32.mrf.mxu1  ;;  %v2940_v31 = vrot.slane %v8926_v58, 6 }
 0x2eb   :  { %v2293_v45 = vrot.slane %v2264_v56, 5  ;;  %v2160_v21 = vsel %vm516_vm5, %v2157_v44, %v2159_v63  ;;  %v2033_v56 = vadd.f32 %v2023_v36, %v1897_v24 }
 0x2ec   :  { %v7147_v42 = vpop.f32.mrf.mxu0  ;;  %v2145_v10 = vpop.f32.mrf.mxu1  ;;  %v2171_v25 = vadd.f32 %v2160_v21, %v2032_v11 }
 0x2ed   :  { %v2307_v59 = vadd.f32 %v2293_v45, %v2168_v27  ;;  %v2161_v3 = vrot.slane %v2145_v10, 5 }
 0x2ee   :  { %v2269_v30 = vpop.f32.mrf.mxu0  ;;  %v7142_v33 = vpop.f32.mrf.mxu1 }
 0x2ef   :  { %v2316_v34 = vadd.f32 %v8912_v6, %v2307_v59  ;;  %v2294_v38 = vrot.slane %v2269_v30, 5  ;;  %v2162_v55 = vsel %vm516_vm5, %v2159_v63, %v2161_v3 }
 0x2f0   :  { %v7150_v61 = vpop.f32.mrf.mxu0  ;;  %v2172_v44 = vadd.f32 %v2162_v55, %v2033_v56 }
 0x2f1   :  { %v2321_v35 = vmax.f32 %v2316_v34, 0.0  ;;  %v2295_v28 = vsel %vm516_vm5, %v2293_v45, %v2294_v38 }
 0x2f2   :  { %v2308_v41 = vadd.f32 %v2295_v28, %v2169_v50  ;;  %v2274_v12 = vpop.f32.mrf.mxu0 }
 0x2f3   :  { %v2326_v48 = vsel %vm516_vm5, 0.0, %v2321_v35  ;;  %v2296_v54 = vrot.slane %v2274_v12, 5 }
 0x2f4   :  { %v8932_v51 = vmul.f32 %v2326_v48, %v8397_v7  ;;  %v2317_v29 = vadd.f32 %v8912_v6, %v2308_v41  ;;  %v7153_v47 = vpop.f32.mrf.mxu0 }
 0x2f5   :  { %v2297_v57 = vsel %vm516_vm5, %v2294_v38, %v2296_v54 }
 0x2f6   :  { %v2322_v0 = vmax.f32 %v2317_v29, 0.0  ;;  %v2309_v27 = vadd.f32 %v2297_v57, %v2170_v9  ;;  %v2279_v45 = vpop.f32.mrf.mxu0  ;;  %7180 = vmatmul.mubr.msk.f32.vlgmr.msra.gmra.mxu0 %vm1351_vm9, %v8932_v51  ;;  %v2358_v5 = vrot.slane %v8932_v51, 1  ;;  %v2696_v32 = vrot.slane %v8932_v51, 3 }
 0x2f7   :  { %v2298_v42 = vrot.slane %v2279_v45, 5  ;;  %7182 = vmatprep.mubr.msk.f32.mxu0 %vm7844_vm0, %v7843_v1  ;;  %7212 = vmatpush3.msk.msra.mxu0 %vm216_vm2, %v2705_v13  ;;  %v2576_v46 = vrot.slane %v8932_v51, 2  ;;  %v2930_v59 = vrot.slane %v8932_v51, 5  ;;  %v2813_v22 = vrot.slane %v8932_v51, 4 }
 0x2f8   :  { %v8953_v39 = vmul.f32 %v2322_v0, %v8400_v8  ;;  %v2318_v2 = vadd.f32 %v8912_v6, %v2309_v27  ;;  %v7156_v10 = vpop.f32.mrf.mxu0  ;;  %7245 = vmatprep.subr.mxu0 %v7843_v1  ;;  %v3050_v13 = vrot.slane %v8932_v51, 6 }
 0x2f9   :  { %v2299_v40 = vsel %vm516_vm5, %v2296_v54, %v2298_v42 }
 0x2fa   :  { %v2323_v37 = vmax.f32 %v2318_v2, 0.0  ;;  %v2310_v16 = vadd.f32 %v2299_v40, %v2171_v25  ;;  %v2284_v23 = vpop.f32.mrf.mxu0  ;;  %7183 = vmatmul.mubr.msk.f32.gmra.mxu0 %vm1351_vm9, %v8953_v39  ;;  %v2359_v60 = vrot.slane %v8953_v39, 1  ;;  %v2697_v30 = vrot.slane %v8953_v39, 3 }
 0x2fb   :  { %v2300_v33 = vrot.slane %v2284_v23, 5  ;;  %7185 = vmatprep.mubr.msk.f32.mxu0 %vm7844_vm0, %v7843_v1  ;;  %v2577_v14 = vrot.slane %v8953_v39, 2  ;;  %v2931_v49 = vrot.slane %v8953_v39, 5  ;;  %v2814_v34 = vrot.slane %v8953_v39, 4 }
 0x2fc   :  { %v2330_v38 = vmul.f32 %v2323_v37, %v8599_v17  ;;  %v2319_v50 = vadd.f32 %v8912_v6, %v2310_v16  ;;  %v7159_v19 = vpop.f32.mrf.mxu0  ;;  %v2360_v63 = vsel %vm116_vm1, %v2358_v5, %v2359_v60  ;;  %v8976_v3 = vsel %vm316_vm3, %v2696_v32, %v2697_v30 }
 0x2fd   :  { %v2301_v61 = vsel %vm516_vm5, %v2298_v42, %v2300_v33  ;;  %7163 = vmatmul.mubr.msk.f32.vlgmr.msra.gmra.mxu1 %vm1351_vm9, %v2360_v63  ;;  %v8981_v53 = vsel %vm216_vm2, %v2576_v46, %v2577_v14  ;;  %v8984_v62 = vsel %vm516_vm5, %v2930_v59, %v2931_v49  ;;  %v8987_v35 = vsel %vm416_vm4, %v2813_v22, %v2814_v34  ;;  %v9205_v19 = vld [vmem:[#allocation2 + $0xbf] sm:$0xff]  ;;  %v2340_v63 = vld [vmem:[#allocation2 + $0xb7] sm:$0xff] }
 0x2fe   :  { %v2324_v28 = vmax.f32 %v2319_v50, 0.0  ;;  %v2311_v43 = vadd.f32 %v2301_v61, %v2172_v44  ;;  %7186 = vmatmul.mubr.msk.f32.gmra.mxu0 %vm1351_vm9, %v2330_v38  ;;  %7165 = vmatprep.mubr.msk.f32.mxu1 %vm7844_vm0, %v7843_v1  ;;  %v2361_v18 = vrot.slane %v2330_v38, 1  ;;  %v2699_v36 = vrot.slane %v2330_v38, 3  ;;  %v2343_v61 = vld [vmem:[#allocation2 + $0xcf] sm:$0xff] }
 0x2ff   :  { %7188 = vmatprep.mubr.msk.f32.mxu0 %vm7844_vm0, %v7843_v1  ;;  %7195 = vmatpush3.msk.msra.mxu1 %vm216_vm2, %v2588_v20  ;;  %v2579_v41 = vrot.slane %v2330_v38, 2  ;;  %v2933_v12 = vrot.slane %v2330_v38, 5  ;;  %v2816_v24 = vrot.slane %v2330_v38, 4  ;;  %v3051_v9 = vrot.slane %v8953_v39, 6 }
 0x300   :  { %v8997_v48 = vmul.f32 %v2324_v28, %v8631_v26  ;;  %v2320_v54 = vadd.f32 %v8912_v6, %v2311_v43  ;;  %v2362_v21 = vsel %vm116_vm1, %v2359_v60, %v2361_v18  ;;  %v9002_v51 = vsel %vm316_vm3, %v2697_v30, %v2699_v36  ;;  %7228 = vmatprep.subr.mxu1 %v7843_v1 }
 0x301   :  { %7166 = vmatmul.mubr.msk.f32.gmra.mxu1 %vm1351_vm9, %v2362_v21  ;;  %v2580_v55 = vsel %vm216_vm2, %v2577_v14, %v2579_v41  ;;  %v9008_v29 = vsel %vm516_vm5, %v2931_v49, %v2933_v12  ;;  %v9011_v47 = vsel %vm416_vm4, %v2814_v34, %v2816_v24  ;;  %v9014_v11 = vsel %vm616_vm6, %v3050_v13, %v3051_v9 }
 0x302   :  { %v2325_v6 = vmax.f32 %v2320_v54, 0.0  ;;  %7189 = vmatmul.mubr.msk.f32.gmra.mxu0 %vm1351_vm9, %v8997_v48  ;;  %7168 = vmatprep.mubr.msk.f32.mxu1 %vm7844_vm0, %v7843_v1  ;;  %v2363_v56 = vrot.slane %v8997_v48, 1  ;;  %v2701_v57 = vrot.slane %v8997_v48, 3  ;;  %v2581_v20 = vrot.slane %v8997_v48, 2 }
 0x303   :  { %7191 = vmatprep.mubr.msk.f32.mxu0 %vm7844_vm0, %v7843_v1  ;;  %v2935_v0 = vrot.slane %v8997_v48, 5  ;;  %v2818_v27 = vrot.slane %v8997_v48, 4  ;;  %v3053_v45 = vrot.slane %v2330_v38, 6  ;;  %v3055_v25 = vrot.slane %v8997_v48, 6 }
 0x304   :  { %v2327_v44 = vsel %vm316_vm3, %v2325_v6, 0.0  ;;  %v2364_v42 = vsel %vm116_vm1, %v2361_v18, %v2363_v56  ;;  %v9031_v5 = vsel %vm316_vm3, %v2699_v36, %v2701_v57  ;;  %v2582_v39 = vsel %vm216_vm2, %v2579_v41, %v2581_v20 }
 0x305   :  { %v9035_v2 = vmul.f32 %v2327_v44, %v8636_v4  ;;  %7169 = vmatmul.mubr.msk.f32.gmra.mxu1 %vm1351_vm9, %v2364_v42  ;;  %v2936_v10 = vsel %vm516_vm5, %v2933_v12, %v2935_v0  ;;  %v9040_v32 = vsel %vm416_vm4, %v2816_v24, %v2818_v27  ;;  %v9043_v46 = vsel %vm616_vm6, %v3051_v9, %v3053_v45 }
 0x306   :  { %7171 = vmatprep.mubr.msk.f32.mxu1 %vm7844_vm0, %v7843_v1  ;;  %v9048_v40 = vsel %vm616_vm6, %v3053_v45, %v3055_v25  ;;  %v2942_v30 = vsel %vm616_vm6, %v2940_v31, %v2941_v15  ;;  %v3060_v34 = vrot.slane %v8928_v52, 4  ;;  %v2351_v52 = vld [vmem:[#allocation2 + $0x10b] sm:$0x3f] }
 0x307   :  { %7192 = vmatmul.mubr.msk.f32.gmra.mxu0 %vm1351_vm9, %v9035_v2  ;;  %v2365_v59 = vrot.slane %v9035_v2, 1  ;;  %v2583_v22 = vrot.slane %v9035_v2, 2  ;;  %v2937_v13 = vrot.slane %v9035_v2, 5  ;;  %v2820_v37 = vrot.slane %v9035_v2, 4 }
 0x308   :  { %7213 = vmatprep.mubr.msk.f32.mxu0 %vm7844_vm0, %v7843_v1  ;;  %v3057_v16 = vrot.slane %v9035_v2, 6  ;;  %v9092_v31 = vrot.slane %v9035_v2, 3 }
 0x309   :  { %v2366_v23 = vsel %vm116_vm1, %v2363_v56, %v2365_v59  ;;  %v2584_v60 = vsel %vm216_vm2, %v2581_v20, %v2583_v22  ;;  %v2938_v33 = vsel %vm516_vm5, %v2935_v0, %v2937_v13  ;;  %v2821_v14 = vsel %vm416_vm4, %v2818_v27, %v2820_v37 }
 0x30a   :  { %7172 = vmatmul.mubr.msk.f32.gmra.mxu1 %vm1351_vm9, %v2366_v23  ;;  %v9072_v49 = vsel %vm616_vm6, %v3055_v25, %v3057_v16  ;;  %v2704_v15 = vsel %vm316_vm3, %v2701_v57, %v9092_v31 }
 0x30b   :  { %7214 = vmatmul.mubr.msk.f32.vlgmr.msra.gmra.mxu0 %vm1351_vm9, %v8976_v3  ;;  %7174 = vmatprep.mubr.msk.f32.mxu1 %vm7844_vm0, %v7843_v1 }
 0x30c   :  { %7216 = vmatprep.mubr.msk.f32.mxu0 %vm7844_vm0, %v7843_v1  ;;  %7246 = vmatpush3.msk.msra.mxu0 %vm216_vm2, %v2942_v30 }
 0x30d   :  { %7279 = vmatprep.subr.mxu0 %v7843_v1 }
 0x30e   :  { %7175 = vmatmul.mubr.msk.f32.gmra.mxu1 %vm1351_vm9, %v2365_v59 }
 0x30f   :  { %7217 = vmatmul.mubr.msk.f32.gmra.mxu0 %vm1351_vm9, %v9002_v51  ;;  %7196 = vmatprep.mubr.msk.f32.mxu1 %vm7844_vm0, %v7843_v1 }
 0x310   :  { %7219 = vmatprep.mubr.msk.f32.mxu0 %vm7844_vm0, %v7843_v1 }
 0x312   :  { %7197 = vmatmul.mubr.msk.f32.vlgmr.msra.gmra.mxu1 %vm1351_vm9, %v8981_v53 }
 0x313   :  { %7220 = vmatmul.mubr.msk.f32.gmra.mxu0 %vm1351_vm9, %v9031_v5  ;;  %7199 = vmatprep.mubr.msk.f32.mxu1 %vm7844_vm0, %v7843_v1 }
 0x314   :  { %7222 = vmatprep.mubr.msk.f32.mxu0 %vm7844_vm0, %v7843_v1  ;;  %7229 = vmatpush3.msk.msra.mxu1 %vm216_vm2, %v8926_v58  ;;  %v2338_v58 = vld [vmem:[#allocation2 + $0xb4] sm:$0x3] }
 0x315   :  { %7262 = vmatprep.subr.mxu1 %v7843_v1  ;;  %v3061_v38 = vrot.slane %v2338_v58, 4 }
 0x316   :  { %7200 = vmatmul.mubr.msk.f32.gmra.mxu1 %vm1351_vm9, %v2580_v55 }
 0x317   :  { %7223 = vmatmul.mubr.msk.f32.gmra.mxu0 %vm1351_vm9, %v2704_v15  ;;  %7202 = vmatprep.mubr.msk.f32.mxu1 %vm7844_vm0, %v7843_v1  ;;  %v3062_v50 = vsel %vm416_vm4, %v3060_v34, %v3061_v38 }
 0x318   :  { %7225 = vmatprep.mubr.msk.f32.mxu0 %vm7844_vm0, %v7843_v1 }
 0x31a   :  { %7203 = vmatmul.mubr.msk.f32.gmra.mxu1 %vm1351_vm9, %v2582_v39 }
 0x31b   :  { %7226 = vmatmul.mubr.msk.f32.gmra.mxu0 %vm1351_vm9, %v9092_v31  ;;  %7205 = vmatprep.mubr.msk.f32.mxu1 %vm7844_vm0, %v7843_v1 }
 0x31c   :  { %7247 = vmatprep.mubr.msk.f32.mxu0 %vm7844_vm0, %v7843_v1 }
 0x31e   :  { %7206 = vmatmul.mubr.msk.f32.gmra.mxu1 %vm1351_vm9, %v2584_v60 }
 0x31f   :  { %7248 = vmatmul.mubr.msk.f32.vlgmr.msra.gmra.mxu0 %vm1351_vm9, %v8984_v62  ;;  %7208 = vmatprep.mubr.msk.f32.mxu1 %vm7844_vm0, %v7843_v1 }
 0x320   :  { %7250 = vmatprep.mubr.msk.f32.mxu0 %vm7844_vm0, %v7843_v1  ;;  %7280 = vmatpush3.msk.msra.mxu0 %vm416_vm4, %v9205_v19 }
 0x321   :  { %7281 = vmatprep.subr.mxu0 %v7843_v1 }
 0x322   :  { %7209 = vmatmul.mubr.msk.f32.gmra.mxu1 %vm1351_vm9, %v2583_v22  ;;  %7282 = vmatpush3.msra.mxu0 %v2340_v63 }
 0x323   :  { %7251 = vmatmul.mubr.msk.f32.gmra.mxu0 %vm1351_vm9, %v9008_v29  ;;  %7230 = vmatprep.mubr.msk.f32.mxu1 %vm7844_vm0, %v7843_v1 }
 0x324   :  { %7253 = vmatprep.mubr.msk.f32.mxu0 %vm7844_vm0, %v7843_v1  ;;  %7315 = vmatprep.subr.mxu0 %v7843_v1 }
 0x326   :  { %7231 = vmatmul.mubr.msk.f32.vlgmr.msra.gmra.mxu1 %vm1351_vm9, %v8987_v35 }
 0x327   :  { %7254 = vmatmul.mubr.msk.f32.gmra.mxu0 %vm1351_vm9, %v2936_v10  ;;  %7233 = vmatprep.mubr.msk.f32.mxu1 %vm7844_vm0, %v7843_v1 }
 0x328   :  { %7256 = vmatprep.mubr.msk.f32.mxu0 %vm7844_vm0, %v7843_v1  ;;  %7263 = vmatpush3.msk.msra.mxu1 %vm216_vm2, %v3062_v50 }
 0x329   :  { %7298 = vmatprep.subr.mxu1 %v7843_v1 }
 0x32a   :  { %7234 = vmatmul.mubr.msk.f32.gmra.mxu1 %vm1351_vm9, %v9011_v47 }
 0x32b   :  { %7257 = vmatmul.mubr.msk.f32.gmra.mxu0 %vm1351_vm9, %v2938_v33  ;;  %7236 = vmatprep.mubr.msk.f32.mxu1 %vm7844_vm0, %v7843_v1 }
 0x32c   :  { %7259 = vmatprep.mubr.msk.f32.mxu0 %vm7844_vm0, %v7843_v1 }
 0x32e   :  { %7237 = vmatmul.mubr.msk.f32.gmra.mxu1 %vm1351_vm9, %v9040_v32 }
 0x32f   :  { %7260 = vmatmul.mubr.msk.f32.gmra.mxu0 %vm1351_vm9, %v2937_v13  ;;  %7239 = vmatprep.mubr.msk.f32.mxu1 %vm7844_vm0, %v7843_v1 }
 0x330   :  { %7283 = vmatprep.mubr.msk.f32.mxu0 %vm7844_vm0, %v7843_v1 }
 0x332   :  { %7240 = vmatmul.mubr.msk.f32.gmra.mxu1 %vm1351_vm9, %v2821_v14 }
 0x333   :  { %7242 = vmatprep.mubr.msk.f32.mxu1 %vm7844_vm0, %v7843_v1 }
 0x336   :  { %7243 = vmatmul.mubr.msk.f32.gmra.mxu1 %vm1351_vm9, %v2820_v37 }
 0x337   :  { %7264 = vmatprep.mubr.msk.f32.mxu1 %vm7844_vm0, %v7843_v1 }
 0x33a   :  { %7265 = vmatmul.mubr.msk.f32.vlgmr.msra.gmra.mxu1 %vm1351_vm9, %v9014_v11 }
 0x33b   :  { %7267 = vmatprep.mubr.msk.f32.mxu1 %vm7844_vm0, %v7843_v1  ;;  %7299 = vmatpush3.msk.msra.mxu1 %vm216_vm2, %v2351_v52 }
 0x33c   :  { %7334 = vmatprep.subr.mxu1 %v7843_v1 }
 0x33e   :  { %7268 = vmatmul.mubr.msk.f32.gmra.mxu1 %vm1351_vm9, %v9043_v46 }
 0x33f   :  { %7270 = vmatprep.mubr.msk.f32.mxu1 %vm7844_vm0, %v7843_v1 }
 0x342   :  { %7271 = vmatmul.mubr.msk.f32.gmra.mxu1 %vm1351_vm9, %v9048_v40 }
 0x343   :  { %7273 = vmatprep.mubr.msk.f32.mxu1 %vm7844_vm0, %v7843_v1 }
 0x346   :  { %7274 = vmatmul.mubr.msk.f32.gmra.mxu1 %vm1351_vm9, %v9072_v49 }
 0x347   :  { %7276 = vmatprep.mubr.msk.f32.mxu1 %vm7844_vm0, %v7843_v1 }
 0x34a   :  { %7277 = vmatmul.mubr.msk.f32.gmra.mxu1 %vm1351_vm9, %v3057_v16 }
 0x34b   :  { %7300 = vmatprep.mubr.msk.f32.mxu1 %vm7844_vm0, %v7843_v1 }
 0x34e   :  { %7301 = vmatmul.mubr.msk.f32.vlgmr.msra.gmra.mxu1 %vm1351_vm9, %v8976_v3  ;;  %v9211_v3 = vld [vmem:[#allocation2 + $0xd7] sm:$0xff] }
 0x34f   :  { %7303 = vmatprep.mubr.msk.f32.mxu1 %vm7844_vm0, %v7843_v1  ;;  %7335 = vmatpush3.msk.msra.mxu1 %vm416_vm4, %v9211_v3 }
 0x350   :  { %7336 = vmatprep.subr.mxu1 %v7843_v1 }
 0x351   :  { %7337 = vmatpush3.msra.mxu1 %v2343_v61 }
 0x352   :  { %7304 = vmatmul.mubr.msk.f32.gmra.mxu1 %vm1351_vm9, %v9002_v51  ;;  %7372 = vmatprep.subr.mxu1 %v7843_v1 }
 0x353   :  { %7306 = vmatprep.mubr.msk.f32.mxu1 %vm7844_vm0, %v7843_v1 }
 0x356   :  { %7307 = vmatmul.mubr.msk.f32.gmra.mxu1 %vm1351_vm9, %v9031_v5 }
 0x357   :  { %7309 = vmatprep.mubr.msk.f32.mxu1 %vm7844_vm0, %v7843_v1 }
 0x35a   :  { %7310 = vmatmul.mubr.msk.f32.gmra.mxu1 %vm1351_vm9, %v2704_v15 }
 0x35b   :  { %7312 = vmatprep.mubr.msk.f32.mxu1 %vm7844_vm0, %v7843_v1 }
 0x35e   :  { %7313 = vmatmul.mubr.msk.f32.gmra.mxu1 %vm1351_vm9, %v9092_v31 }
 0x35f   :  { %7338 = vmatprep.mubr.msk.f32.mxu1 %vm7844_vm0, %v7843_v1 }
 0x3b6   :  { %v2552_v53 = vpop.f32.mrf.mxu0 }
 0x3b8   :  { %v7181_v62 = vpop.f32.mrf.mxu0 }
 0x3ba   :  { %v2557_v35 = vpop.f32.mrf.mxu0 }
 0x3bc   :  { %v7184_v28 = vpop.f32.mrf.mxu0 }
 0x3bd   :  { %v2450_v43 = vpop.f32.mrf.mxu1 }
 0x3be   :  { %v2562_v18 = vpop.f32.mrf.mxu0  ;;  %v2553_v38 = vadd.f32 %v2552_v53, %v2450_v43 }
 0x3bf   :  { %v7164_v36 = vpop.f32.mrf.mxu1 }
 0x3c0   :  { %v7187_v41 = vpop.f32.mrf.mxu0 }
 0x3c1   :  { %v2455_v12 = vpop.f32.mrf.mxu1 }
 0x3c2   :  { %v2567_v24 = vpop.f32.mrf.mxu0  ;;  %v2558_v28 = vadd.f32 %v2557_v35, %v2455_v12 }
 0x3c3   :  { %v7167_v9 = vpop.f32.mrf.mxu1 }
 0x3c4   :  { %v7190_v48 = vpop.f32.mrf.mxu0 }
 0x3c5   :  { %v2460_v54 = vpop.f32.mrf.mxu1 }
 0x3c7   :  { %v7170_v21 = vpop.f32.mrf.mxu1  ;;  %v9217_v51 = vpop.f32.mrf.mxu0 }
 0x3c9   :  { %v7193_v55 = vpop.f32.mrf.mxu0 }
 0x3ca   :  { %v2465_v29 = vpop.f32.mrf.mxu1  ;;  %v2563_v55 = vadd.f32 %v2562_v18, %v2460_v54 }
 0x3cb   :  { %v2784_v47 = vpop.f32.mrf.mxu0 }
 0x3cc   :  { %v7173_v11 = vpop.f32.mrf.mxu1 }
 0x3cd   :  { %v7215_v6 = vpop.f32.mrf.mxu0 }
 0x3ce   :  { %v2470_v56 = vpop.f32.mrf.mxu1 }
 0x3cf   :  { %v2789_v57 = vpop.f32.mrf.mxu0 }
 0x3d0   :  { %v7176_v20 = vpop.f32.mrf.mxu1 }
 0x3d1   :  { %v7218_v0 = vpop.f32.mrf.mxu0 }
 0x3d2   :  { %v2667_v27 = vpop.f32.mrf.mxu1 }
 0x3d3   :  { %v2794_v45 = vpop.f32.mrf.mxu0  ;;  %v2691_v63 = vadd.f32 %v2667_v27, %v2553_v38 }
 0x3d4   :  { %v7198_v25 = vpop.f32.mrf.mxu1 }
 0x3d5   :  { %v7221_v44 = vpop.f32.mrf.mxu0  ;;  %v2808_v48 = vadd.f32 %v2784_v47, %v2691_v63 }
 0x3d6   :  { %v2672_v42 = vpop.f32.mrf.mxu1  ;;  %v2568_v44 = vadd.f32 %v2567_v24, %v2465_v29  ;;  %v2342_v29 = vld [vmem:[#allocation2 + $0xc7] sm:$0xff] }
 0x3d7   :  { %v2799_v5 = vpop.f32.mrf.mxu0  ;;  %v2692_v9 = vadd.f32 %v2672_v42, %v2558_v28  ;;  %v2573_v42 = vadd.f32 %v9217_v51, %v2470_v56  ;;  %v3423_v51 = vrot.slane %v2342_v29, 4 }
 0x3d8   :  { %v7201_v39 = vpop.f32.mrf.mxu1 }
 0x3d9   :  { %v7224_v2 = vpop.f32.mrf.mxu0  ;;  %v2809_v0 = vadd.f32 %v2789_v57, %v2692_v9  ;;  %v9223_v39 = vld [vmem:[#allocation2 + $0xb6] ss:$0 sm:$0xff] }
 0x3da   :  { %v2677_v10 = vpop.f32.mrf.mxu1 }
 0x3db   :  { %v9219_v32 = vpop.f32.mrf.mxu0  ;;  %v2693_v20 = vadd.f32 %v2677_v10, %v2563_v55 }
 0x3dc   :  { %v7204_v46 = vpop.f32.mrf.mxu1 }
 0x3dd   :  { %v7227_v40 = vpop.f32.mrf.mxu0  ;;  %v2810_v46 = vadd.f32 %v2794_v45, %v2693_v20 }
 0x3de   :  { %v2682_v59 = vpop.f32.mrf.mxu1 }
 0x3df   :  { %v3021_v22 = vpop.f32.mrf.mxu0  ;;  %v2694_v2 = vadd.f32 %v2682_v59, %v2568_v44 }
 0x3e0   :  { %v7207_v13 = vpop.f32.mrf.mxu1 }
 0x3e1   :  { %v7249_v37 = vpop.f32.mrf.mxu0  ;;  %v2811_v57 = vadd.f32 %v2799_v5, %v2694_v2 }
 0x3e2   :  { %v2687_v16 = vpop.f32.mrf.mxu1 }
 0x3e3   :  { %v3026_v23 = vpop.f32.mrf.mxu0  ;;  %v2695_v10 = vadd.f32 %v2687_v16, %v2573_v42  ;;  %v2346_v42 = vld [vmem:[#allocation2 + $0xe7] sm:$0xff] }
 0x3e4   :  { %v7210_v60 = vpop.f32.mrf.mxu1 }
 0x3e5   :  { %v7252_v30 = vpop.f32.mrf.mxu0  ;;  %v2812_v56 = vadd.f32 %v9219_v32, %v2695_v10 }
 0x3e6   :  { %v2901_v33 = vpop.f32.mrf.mxu1  ;;  %v3422_v30 = vrot.slane %v9205_v19, 4 }
 0x3e7   :  { %v3031_v14 = vpop.f32.mrf.mxu0  ;;  %v2925_v11 = vadd.f32 %v2901_v33, %v2808_v48 }
 0x3e8   :  { %v7232_v49 = vpop.f32.mrf.mxu1  ;;  %v3424_v19 = vsel %vm416_vm4, %v3422_v30, %v3423_v51 }
 0x3e9   :  { %v7255_v31 = vpop.f32.mrf.mxu0  ;;  %v3045_v43 = vadd.f32 %v3021_v22, %v2925_v11 }
 0x3ea   :  { %v2906_v15 = vpop.f32.mrf.mxu1 }
 0x3eb   :  { %v3036_v58 = vpop.f32.mrf.mxu0  ;;  %v2926_v53 = vadd.f32 %v2906_v15, %v2809_v0 }
 0x3ec   :  { %v7235_v34 = vpop.f32.mrf.mxu1 }
 0x3ed   :  { %v7258_v50 = vpop.f32.mrf.mxu0  ;;  %v3046_v54 = vadd.f32 %v3026_v23, %v2926_v53 }
 0x3ee   :  { %v2911_v52 = vpop.f32.mrf.mxu1 }
 0x3ef   :  { %v9221_v61 = vpop.f32.mrf.mxu0  ;;  %v2927_v47 = vadd.f32 %v2911_v52, %v2810_v46 }
 0x3f0   :  { %v7238_v62 = vpop.f32.mrf.mxu1 }
 0x3f1   :  { %v7261_v36 = vpop.f32.mrf.mxu0  ;;  %v3047_v45 = vadd.f32 %v3031_v14, %v2927_v47 }
 0x3f2   :  { %v2916_v41 = vpop.f32.mrf.mxu1 }
 0x3f3   :  { %v2928_v37 = vadd.f32 %v2916_v41, %v2811_v57 }
 0x3f4   :  { %v7241_v21 = vpop.f32.mrf.mxu1 }
 0x3f5   :  { %v3048_v14 = vadd.f32 %v3036_v58, %v2928_v37 }
 0x3f6   :  { %v2921_v6 = vpop.f32.mrf.mxu1 }
 0x3f7   :  { %v2929_v15 = vadd.f32 %v2921_v6, %v2812_v56 }
 0x3f8   :  { %v7244_v25 = vpop.f32.mrf.mxu1 }
 0x3f9   :  { %v3049_v41 = vadd.f32 %v9221_v61, %v2929_v15  ;;  %v9260_v25 = vld [vmem:[#allocation2 + $0xef] sm:$0xff] }
 0x3fa   :  { %v3141_v27 = vpop.f32.mrf.mxu1 }
 0x3fb   :  { %v3165_v35 = vadd.f32 %v3141_v27, %v3045_v43 }
 0x3fc   :  { %v7266_v12 = vpop.f32.mrf.mxu1 }
 0x3fd   :  { %v3174_v18 = vadd.f32 %v9223_v39, %v3165_v35 }
 0x3fe   :  { %v3146_v40 = vpop.f32.mrf.mxu1 }
 0x3ff   :  { %v3179_v13 = vmax.f32 %v3174_v18, 0.0  ;;  %v3166_v24 = vadd.f32 %v3146_v40, %v3046_v54 }
 0x400   :  { %v7269_v22 = vpop.f32.mrf.mxu1 }
 0x401   :  { %v3189_v60 = vrot.slane %v3179_v13, 5  ;;  %v3175_v59 = vadd.f32 %v9223_v39, %v3166_v24  ;;  %v2345_v24 = vld [vmem:[#allocation2 + $0xdf] sm:$0xff] }
 0x402   :  { %v3151_v33 = vpop.f32.mrf.mxu1 }
 0x403   :  { %v3203_v23 = vsel %vm516_vm5, 0.0, %v3189_v60  ;;  %v3180_v16 = vmax.f32 %v3175_v59, 0.0  ;;  %v3167_v5 = vadd.f32 %v3151_v33, %v3047_v45  ;;  %v3661_v45 = vrot.slane %v2345_v24, 4 }
 0x404   :  { %v9232_v49 = vmul.f32 %v3203_v23, %v8397_v7  ;;  %v7272_v31 = vpop.f32.mrf.mxu1 }
 0x405   :  { %v3190_v34 = vrot.slane %v3180_v16, 5  ;;  %v3176_v38 = vadd.f32 %v9223_v39, %v3167_v5 }
 0x406   :  { %v3156_v50 = vpop.f32.mrf.mxu1  ;;  %7284 = vmatmul.mubr.msk.f32.vlgmr.msra.gmra.mxu0 %vm3210_vm7, %v9232_v49  ;;  %v3533_v48 = vrot.slane %v9232_v49, 2  ;;  %v3412_v33 = vrot.slane %v9232_v49, 1 }
 0x407   :  { %v3191_v32 = vsel %vm516_vm5, %v3189_v60, %v3190_v34  ;;  %v3181_v52 = vmax.f32 %v3176_v38, 0.0  ;;  %v3168_v63 = vadd.f32 %v3156_v50, %v3048_v14  ;;  %7286 = vmatprep.mubr.msk.f32.mxu0 %vm7844_vm0, %v7843_v1  ;;  %7316 = vmatpush3.msk.msra.mxu0 %vm416_vm4, %v3423_v51  ;;  %v3660_v60 = vrot.slane %v9211_v3, 4 }
 0x408   :  { %v9243_v62 = vmul.f32 %v3191_v32, %v8400_v8  ;;  %v7275_v28 = vpop.f32.mrf.mxu1  ;;  %7317 = vmatprep.subr.mxu0 %v7843_v1  ;;  %v3771_v14 = vrot.slane %v9232_v49, 4 }
 0x409   :  { %v3192_v58 = vrot.slane %v3181_v52, 5  ;;  %v3177_v36 = vadd.f32 %v9223_v39, %v3168_v63  ;;  %7318 = vmatpush3.msra.mxu0 %v3424_v19  ;;  %v3662_v16 = vsel %vm416_vm4, %v3660_v60, %v3661_v45  ;;  %v2350_v52 = vld [vmem:[#allocation2 + $0x107] sm:$0xf] }
 0x40a   :  { %v3161_v9 = vpop.f32.mrf.mxu1  ;;  %7287 = vmatmul.mubr.msk.f32.gmra.mxu0 %vm3210_vm7, %v9243_v62  ;;  %v3534_v21 = vrot.slane %v9243_v62, 2  ;;  %7353 = vmatprep.subr.mxu0 %v7843_v1  ;;  %v3413_v37 = vrot.slane %v9243_v62, 1  ;;  %v3772_v31 = vrot.slane %v9243_v62, 4  ;;  %v3889_v60 = vrot.slane %v9243_v62, 5 }
 0x40b   :  { %v3193_v55 = vsel %vm516_vm5, %v3190_v34, %v3192_v58  ;;  %v3182_v11 = vmax.f32 %v3177_v36, 0.0  ;;  %v3169_v6 = vadd.f32 %v3161_v9, %v3049_v41  ;;  %7289 = vmatprep.mubr.msk.f32.mxu0 %vm7844_vm0, %v7843_v1  ;;  %v2349_v41 = vld [vmem:[#allocation2 + $0xff] sm:$0xff] }
 0x40c   :  { %v9257_v61 = vmul.f32 %v3193_v55, %v8599_v17  ;;  %v7278_v20 = vpop.f32.mrf.mxu1  ;;  %v3535_v0 = vsel %vm216_vm2, %v3533_v48, %v3534_v21  ;;  %v3414_v3 = vsel %vm116_vm1, %v3412_v33, %v3413_v37  ;;  %v3773_v19 = vsel %vm416_vm4, %v3771_v14, %v3772_v31  ;;  %v2348_v48 = vld [vmem:[#allocation2 + $0xf7] sm:$0xff] }
 0x40d   :  { %v3194_v44 = vrot.slane %v3182_v11, 5  ;;  %v3178_v53 = vadd.f32 %v9223_v39, %v3169_v6  ;;  %7339 = vmatmul.mubr.msk.f32.vlgmr.msra.gmra.mxu1 %vm3210_vm7, %v3535_v0  ;;  %v3651_v11 = vrot.slane %v9243_v62, 3  ;;  %v3898_v6 = vrot.slane %v9260_v25, 4 }
 0x40e   :  { %7290 = vmatmul.mubr.msk.f32.gmra.mxu0 %vm3210_vm7, %v9257_v61  ;;  %v9266_v43 = vpop.f32.mrf.mxu1  ;;  %7341 = vmatprep.mubr.msk.f32.mxu1 %vm7844_vm0, %v7843_v1  ;;  %v3536_v27 = vrot.slane %v9257_v61, 2  ;;  %v3415_v23 = vrot.slane %v9257_v61, 1  ;;  %v3774_v32 = vrot.slane %v9257_v61, 4  ;;  %v3899_v20 = vrot.slane %v2348_v48, 4 }
 0x40f   :  { %v3195_v2 = vsel %vm516_vm5, %v3192_v58, %v3194_v44  ;;  %v3183_v46 = vmax.f32 %v3178_v53, 0.0  ;;  %7292 = vmatprep.mubr.msk.f32.mxu0 %vm7844_vm0, %v7843_v1  ;;  %7373 = vmatpush3.msk.msra.mxu1 %vm416_vm4, %v9260_v25  ;;  %v3650_v0 = vrot.slane %v9232_v49, 3  ;;  %v3891_v33 = vrot.slane %v9257_v61, 5 }
 0x410   :  { %v9277_v39 = vmul.f32 %v3195_v2, %v8631_v26  ;;  %v7302_v35 = vpop.f32.mrf.mxu1  ;;  %v3537_v12 = vsel %vm216_vm2, %v3534_v21, %v3536_v27  ;;  %7374 = vmatprep.subr.mxu1 %v7843_v1  ;;  %v3416_v34 = vsel %vm116_vm1, %v3413_v37, %v3415_v23  ;;  %v3775_v58 = vsel %vm416_vm4, %v3772_v31, %v3774_v32 }
 0x411   :  { %v3196_v47 = vrot.slane %v3183_v46, 5  ;;  %7342 = vmatmul.mubr.msk.f32.gmra.mxu1 %vm3210_vm7, %v3537_v12  ;;  %v3652_v53 = vsel %vm316_vm3, %v3650_v0, %v3651_v11  ;;  %v3900_v25 = vsel %vm416_vm4, %v3898_v6, %v3899_v20  ;;  %v4010_v2 = vrot.slane %v9243_v62, 6 }
 0x412   :  { %7293 = vmatmul.mubr.msk.f32.gmra.mxu0 %vm3210_vm7, %v9277_v39  ;;  %v9284_v18 = vpop.f32.mrf.mxu1  ;;  %7344 = vmatprep.mubr.msk.f32.mxu1 %vm7844_vm0, %v7843_v1  ;;  %v3538_v54 = vrot.slane %v9277_v39, 2  ;;  %v3417_v38 = vrot.slane %v9277_v39, 1  ;;  %v3776_v36 = vrot.slane %v9277_v39, 4  ;;  %v3655_v35 = vrot.slane %v9277_v39, 3 }
 0x413   :  { %v3197_v40 = vsel %vm516_vm5, %v3194_v44, %v3196_v47  ;;  %7295 = vmatprep.mubr.msk.f32.mxu0 %vm7844_vm0, %v7843_v1  ;;  %7375 = vmatpush3.msra.mxu1 %v2346_v42  ;;  %v4009_v12 = vrot.slane %v9232_v49, 6  ;;  %v4012_v47 = vrot.slane %v9257_v61, 6  ;;  %v3893_v62 = vrot.slane %v9277_v39, 5 }
 0x414   :  { %v3204_v10 = vsel %vm316_vm3, %v3197_v40, 0.0  ;;  %v7305_v57 = vpop.f32.mrf.mxu1  ;;  %v3539_v13 = vsel %vm216_vm2, %v3536_v27, %v3538_v54  ;;  %7410 = vmatprep.subr.mxu1 %v7843_v1  ;;  %v3418_v63 = vsel %vm116_vm1, %v3415_v23, %v3417_v38  ;;  %v3777_v21 = vsel %vm416_vm4, %v3774_v32, %v3776_v36  ;;  %v4168_v23 = vld [vmem:[#allocation2 + $0x122] sm:$0xff] }
 0x415   :  { %v9296_v29 = vmul.f32 %v3204_v10, %v8636_v4  ;;  %7345 = vmatmul.mubr.msk.f32.gmra.mxu1 %vm3210_vm7, %v3539_v13  ;;  %v3653_v27 = vrot.slane %v9257_v61, 3  ;;  %v4011_v42 = vsel %vm616_vm6, %v4009_v12, %v4010_v2  ;;  %v4013_v10 = vsel %vm616_vm6, %v4010_v2, %v4012_v47 }
 0x416   :  { %v9299_v22 = vpop.f32.mrf.mxu1  ;;  %7347 = vmatprep.mubr.msk.f32.mxu1 %vm7844_vm0, %v7843_v1  ;;  %v4014_v57 = vrot.slane %v9277_v39, 6  ;;  %v3894_v61 = vsel %vm516_vm5, %v3891_v33, %v3893_v62  ;;  %v4167_v39 = vld [vmem:[#allocation2 + $0x11a] sm:$0xff] }
 0x417   :  { %7296 = vmatmul.mubr.msk.f32.gmra.mxu0 %vm3210_vm7, %v9296_v29  ;;  %v3540_v59 = vrot.slane %v9296_v29, 2  ;;  %v3419_v28 = vrot.slane %v9296_v29, 1  ;;  %v3778_v55 = vrot.slane %v9296_v29, 4  ;;  %v3654_v46 = vsel %vm316_vm3, %v3651_v11, %v3653_v27 }
 0x418   :  { %v7308_v30 = vpop.f32.mrf.mxu1  ;;  %7319 = vmatprep.mubr.msk.f32.mxu0 %vm7844_vm0, %v7843_v1  ;;  %v3657_v40 = vrot.slane %v9296_v29, 3  ;;  %v4015_v24 = vsel %vm616_vm6, %v4012_v47, %v4014_v57  ;;  %v4016_v37 = vrot.slane %v9296_v29, 6 }
 0x419   :  { %v3541_v51 = vsel %vm216_vm2, %v3538_v54, %v3540_v59  ;;  %v3420_v9 = vsel %vm116_vm1, %v3417_v38, %v3419_v28  ;;  %v3779_v44 = vsel %vm416_vm4, %v3776_v36, %v3778_v55  ;;  %v3656_v54 = vsel %vm316_vm3, %v3653_v27, %v3655_v35 }
 0x41a   :  { %v9312_v56 = vpop.f32.mrf.mxu1  ;;  %7348 = vmatmul.mubr.msk.f32.gmra.mxu1 %vm3210_vm7, %v3541_v51  ;;  %v3658_v13 = vsel %vm316_vm3, %v3655_v35, %v3657_v40  ;;  %v3895_v51 = vrot.slane %v9296_v29, 5  ;;  %v4166_v29 = vld [vmem:[#allocation2 + $0x112] sm:$0xff] }
 0x41b   :  { %7320 = vmatmul.mubr.msk.f32.vlgmr.msra.gmra.mxu0 %vm3210_vm7, %v3414_v3  ;;  %7350 = vmatprep.mubr.msk.f32.mxu1 %vm7844_vm0, %v7843_v1 }
 0x41c   :  { %v7311_v5 = vpop.f32.mrf.mxu1  ;;  %7322 = vmatprep.mubr.msk.f32.mxu0 %vm7844_vm0, %v7843_v1  ;;  %7354 = vmatpush3.msk.msra.mxu0 %vm416_vm4, %v3661_v45  ;;  %v4017_v45 = vsel %vm616_vm6, %v4014_v57, %v4016_v37  ;;  %v3896_v3 = vsel %vm516_vm5, %v3893_v62, %v3895_v51 }
 0x41d   :  { %7355 = vmatprep.subr.mxu0 %v7843_v1  ;;  %v4219_v5 = vrot.slane %v4168_v23, 4 }
 0x41e   :  { %v9326_v15 = vpop.f32.mrf.mxu1  ;;  %7351 = vmatmul.mubr.msk.f32.gmra.mxu1 %vm3210_vm7, %v3540_v59  ;;  %7356 = vmatpush3.msra.mxu0 %v3662_v16  ;;  %v3888_v59 = vrot.slane %v9232_v49, 5  ;;  %v3892_v49 = vsel %vm516_vm5, %v3889_v60, %v3891_v33  ;;  %v4218_v16 = vrot.slane %v4167_v39, 4 }
 0x41f   :  { %7323 = vmatmul.mubr.msk.f32.gmra.mxu0 %vm3210_vm7, %v3416_v34  ;;  %7376 = vmatprep.mubr.msk.f32.mxu1 %vm7844_vm0, %v7843_v1 }
 0x420   :  { %v7314_v50 = vpop.f32.mrf.mxu1  ;;  %7325 = vmatprep.mubr.msk.f32.mxu0 %vm7844_vm0, %v7843_v1  ;;  %7391 = vmatprep.subr.mxu0 %v7843_v1  ;;  %v3890_v30 = vsel %vm516_vm5, %v3888_v59, %v3889_v60  ;;  %v4220_v31 = vsel %vm416_vm4, %v4218_v16, %v4219_v5 }
 0x422   :  { %7377 = vmatmul.mubr.msk.f32.vlgmr.msra.gmra.mxu1 %vm3210_vm7, %v3773_v19 }
 0x423   :  { %7326 = vmatmul.mubr.msk.f32.gmra.mxu0 %vm3210_vm7, %v3418_v63  ;;  %7379 = vmatprep.mubr.msk.f32.mxu1 %vm7844_vm0, %v7843_v1 }
 0x424   :  { %7328 = vmatprep.mubr.msk.f32.mxu0 %vm7844_vm0, %v7843_v1  ;;  %7411 = vmatpush3.msk.msra.mxu1 %vm416_vm4, %v2350_v52 }
 0x425   :  { %7412 = vmatprep.subr.mxu1 %v7843_v1 }
 0x426   :  { %7380 = vmatmul.mubr.msk.f32.gmra.mxu1 %vm3210_vm7, %v3775_v58 }
 0x427   :  { %7329 = vmatmul.mubr.msk.f32.gmra.mxu0 %vm3210_vm7, %v3420_v9  ;;  %7382 = vmatprep.mubr.msk.f32.mxu1 %vm7844_vm0, %v7843_v1 }
 0x428   :  { %7331 = vmatprep.mubr.msk.f32.mxu0 %vm7844_vm0, %v7843_v1  ;;  %7413 = vmatpush3.msra.mxu1 %v2349_v41 }
 0x429   :  { %7448 = vmatprep.subr.mxu1 %v7843_v1 }
 0x42a   :  { %7383 = vmatmul.mubr.msk.f32.gmra.mxu1 %vm3210_vm7, %v3777_v21 }
 0x42b   :  { %7332 = vmatmul.mubr.msk.f32.gmra.mxu0 %vm3210_vm7, %v3419_v28  ;;  %7385 = vmatprep.mubr.msk.f32.mxu1 %vm7844_vm0, %v7843_v1 }
 0x42c   :  { %7357 = vmatprep.mubr.msk.f32.mxu0 %vm7844_vm0, %v7843_v1 }
 0x42e   :  { %7386 = vmatmul.mubr.msk.f32.gmra.mxu1 %vm3210_vm7, %v3779_v44 }
 0x42f   :  { %7358 = vmatmul.mubr.msk.f32.vlgmr.msra.gmra.mxu0 %vm3210_vm7, %v3652_v53  ;;  %7388 = vmatprep.mubr.msk.f32.mxu1 %vm7844_vm0, %v7843_v1 }
 0x430   :  { %7360 = vmatprep.mubr.msk.f32.mxu0 %vm7844_vm0, %v7843_v1  ;;  %7392 = vmatpush3.msk.msra.mxu0 %vm416_vm4, %v3899_v20 }
 0x431   :  { %7393 = vmatprep.subr.mxu0 %v7843_v1 }
 0x432   :  { %7389 = vmatmul.mubr.msk.f32.gmra.mxu1 %vm3210_vm7, %v3778_v55  ;;  %7394 = vmatpush3.msra.mxu0 %v3900_v25 }
 0x433   :  { %7361 = vmatmul.mubr.msk.f32.gmra.mxu0 %vm3210_vm7, %v3654_v46  ;;  %7414 = vmatprep.mubr.msk.f32.mxu1 %vm7844_vm0, %v7843_v1 }
 0x434   :  { %7363 = vmatprep.mubr.msk.f32.mxu0 %vm7844_vm0, %v7843_v1  ;;  %7429 = vmatprep.subr.mxu0 %v7843_v1 }
 0x436   :  { %7415 = vmatmul.mubr.msk.f32.vlgmr.msra.gmra.mxu1 %vm3210_vm7, %v4011_v42 }
 0x437   :  { %7364 = vmatmul.mubr.msk.f32.gmra.mxu0 %vm3210_vm7, %v3656_v54  ;;  %7417 = vmatprep.mubr.msk.f32.mxu1 %vm7844_vm0, %v7843_v1 }
 0x438   :  { %7366 = vmatprep.mubr.msk.f32.mxu0 %vm7844_vm0, %v7843_v1  ;;  %7449 = vmatpush3.msk.msra.mxu1 %vm416_vm4, %v4167_v39 }
 0x439   :  { %7450 = vmatprep.subr.mxu1 %v7843_v1 }
 0x43a   :  { %7418 = vmatmul.mubr.msk.f32.gmra.mxu1 %vm3210_vm7, %v4013_v10 }
 0x43b   :  { %7367 = vmatmul.mubr.msk.f32.gmra.mxu0 %vm3210_vm7, %v3658_v13  ;;  %7420 = vmatprep.mubr.msk.f32.mxu1 %vm7844_vm0, %v7843_v1 }
 0x43c   :  { %7369 = vmatprep.mubr.msk.f32.mxu0 %vm7844_vm0, %v7843_v1  ;;  %7451 = vmatpush3.msra.mxu1 %v4166_v29 }
 0x43d   :  { %7486 = vmatprep.subr.mxu1 %v7843_v1 }
 0x43e   :  { %7421 = vmatmul.mubr.msk.f32.gmra.mxu1 %vm3210_vm7, %v4015_v24 }
 0x43f   :  { %7370 = vmatmul.mubr.msk.f32.gmra.mxu0 %vm3210_vm7, %v3657_v40  ;;  %7423 = vmatprep.mubr.msk.f32.mxu1 %vm7844_vm0, %v7843_v1 }
 0x440   :  { %7395 = vmatprep.mubr.msk.f32.mxu0 %vm7844_vm0, %v7843_v1 }
 0x442   :  { %7424 = vmatmul.mubr.msk.f32.gmra.mxu1 %vm3210_vm7, %v4017_v45 }
 0x443   :  { %7396 = vmatmul.mubr.msk.f32.vlgmr.msra.gmra.mxu0 %vm3210_vm7, %v3890_v30  ;;  %7426 = vmatprep.mubr.msk.f32.mxu1 %vm7844_vm0, %v7843_v1 }
 0x444   :  { %7398 = vmatprep.mubr.msk.f32.mxu0 %vm7844_vm0, %v7843_v1  ;;  %7430 = vmatpush3.msk.msra.mxu0 %vm416_vm4, %v4219_v5 }
 0x445   :  { %7431 = vmatprep.subr.mxu0 %v7843_v1 }
 0x446   :  { %7427 = vmatmul.mubr.msk.f32.gmra.mxu1 %vm3210_vm7, %v4016_v37  ;;  %7432 = vmatpush3.msra.mxu0 %v4220_v31 }
 0x447   :  { %7399 = vmatmul.mubr.msk.f32.gmra.mxu0 %vm3210_vm7, %v3892_v49  ;;  %7452 = vmatprep.mubr.msk.f32.mxu1 %vm7844_vm0, %v7843_v1 }
 0x448   :  { %7401 = vmatprep.mubr.msk.f32.mxu0 %vm7844_vm0, %v7843_v1  ;;  %7467 = vmatprep.subr.mxu0 %v7843_v1 }
 0x44b   :  { %7402 = vmatmul.mubr.msk.f32.gmra.mxu0 %vm3210_vm7, %v3894_v61 }
 0x44c   :  { %7404 = vmatprep.mubr.msk.f32.mxu0 %vm7844_vm0, %v7843_v1 }
 0x44f   :  { %7405 = vmatmul.mubr.msk.f32.gmra.mxu0 %vm3210_vm7, %v3896_v3 }
 0x450   :  { %7407 = vmatprep.mubr.msk.f32.mxu0 %vm7844_vm0, %v7843_v1 }
 0x453   :  { %7408 = vmatmul.mubr.msk.f32.gmra.mxu0 %vm3210_vm7, %v3895_v51 }
 0x454   :  { %7433 = vmatprep.mubr.msk.f32.mxu0 %vm7844_vm0, %v7843_v1 }
 0x4c6   :  { %v3295_v34 = vpop.f32.mrf.mxu0 }
 0x4c7   :  { %v3389_v61 = vadd.f32 %v9266_v43, %v3295_v34 }
 0x4c8   :  { %v7285_v38 = vpop.f32.mrf.mxu0 }
 0x4ca   :  { %v3300_v14 = vpop.f32.mrf.mxu0 }
 0x4cb   :  { %v3394_v16 = vadd.f32 %v9284_v18, %v3300_v14 }
 0x4cc   :  { %v7288_v50 = vpop.f32.mrf.mxu0 }
 0x4cd   :  { %v3621_v19 = vpop.f32.mrf.mxu1 }
 0x4ce   :  { %v3305_v32 = vpop.f32.mrf.mxu0 }
 0x4cf   :  { %v7340_v52 = vpop.f32.mrf.mxu1 }
 0x4d0   :  { %v7291_v63 = vpop.f32.mrf.mxu0 }
 0x4d1   :  { %v3626_v28 = vpop.f32.mrf.mxu1 }
 0x4d2   :  { %v3310_v58 = vpop.f32.mrf.mxu0 }
 0x4d3   :  { %v7343_v36 = vpop.f32.mrf.mxu1 }
 0x4d4   :  { %v7294_v41 = vpop.f32.mrf.mxu0  ;;  %v3399_v36 = vadd.f32 %v9299_v22, %v3305_v32 }
 0x4d5   :  { %v3631_v9 = vpop.f32.mrf.mxu1 }
 0x4d7   :  { %v9459_v48 = vpop.f32.mrf.mxu0  ;;  %v7346_v21 = vpop.f32.mrf.mxu1 }
 0x4d8   :  { %v3409_v32 = vadd.f32 %v9326_v15, %v9459_v48 }
 0x4d9   :  { %v7297_v55 = vpop.f32.mrf.mxu0 }
 0x4da   :  { %v9461_v11 = vpop.f32.mrf.mxu1 }
 0x4db   :  { %v3504_v6 = vpop.f32.mrf.mxu0 }
 0x4dc   :  { %v7349_v20 = vpop.f32.mrf.mxu1  ;;  %v3528_v39 = vadd.f32 %v3504_v6, %v3389_v61  ;;  %v3404_v6 = vadd.f32 %v9312_v56, %v3310_v58  ;;  %v4170_v61 = vld [vmem:[#allocation2 + $0x132] sm:$0xff] }
 0x4dd   :  { %v7321_v0 = vpop.f32.mrf.mxu0 }
 0x4de   :  { %v9463_v44 = vpop.f32.mrf.mxu1  ;;  %v3645_v50 = vadd.f32 %v3621_v19, %v3528_v39 }
 0x4df   :  { %v3509_v53 = vpop.f32.mrf.mxu0 }
 0x4e0   :  { %v7352_v27 = vpop.f32.mrf.mxu1  ;;  %v3529_v38 = vadd.f32 %v3509_v53, %v3394_v16 }
 0x4e1   :  { %v7324_v25 = vpop.f32.mrf.mxu0 }
 0x4e2   :  { %v3859_v2 = vpop.f32.mrf.mxu1  ;;  %v3646_v43 = vadd.f32 %v3626_v28, %v3529_v38 }
 0x4e3   :  { %v3514_v46 = vpop.f32.mrf.mxu0 }
 0x4e4   :  { %v7378_v35 = vpop.f32.mrf.mxu1  ;;  %v3530_v20 = vadd.f32 %v3514_v46, %v3399_v36 }
 0x4e5   :  { %v7327_v12 = vpop.f32.mrf.mxu0 }
 0x4e6   :  { %v3864_v42 = vpop.f32.mrf.mxu1  ;;  %v3647_v53 = vadd.f32 %v3631_v9, %v3530_v20 }
 0x4e7   :  { %v3519_v47 = vpop.f32.mrf.mxu0 }
 0x4e8   :  { %v7381_v54 = vpop.f32.mrf.mxu1  ;;  %v3531_v14 = vadd.f32 %v3519_v47, %v3404_v6 }
 0x4e9   :  { %v7330_v40 = vpop.f32.mrf.mxu0  ;;  %v9473_v54 = vld [vmem:[#allocation2 + $0x111] ss:$0 sm:$0xff] }
 0x4ea   :  { %v3869_v10 = vpop.f32.mrf.mxu1  ;;  %v3648_v56 = vadd.f32 %v9461_v11, %v3531_v14 }
 0x4eb   :  { %v3524_v57 = vpop.f32.mrf.mxu0 }
 0x4ec   :  { %v7384_v13 = vpop.f32.mrf.mxu1 }
 0x4ed   :  { %v7333_v24 = vpop.f32.mrf.mxu0 }
 0x4ee   :  { %v9465_v37 = vpop.f32.mrf.mxu1  ;;  %v3532_v24 = vadd.f32 %v3524_v57, %v3409_v32 }
 0x4ef   :  { %v3742_v60 = vpop.f32.mrf.mxu0 }
 0x4f0   :  { %v7387_v59 = vpop.f32.mrf.mxu1  ;;  %v3766_v41 = vadd.f32 %v3742_v60, %v3645_v50  ;;  %v3649_v48 = vadd.f32 %v9463_v44, %v3532_v24 }
 0x4f1   :  { %v7359_v45 = vpop.f32.mrf.mxu0 }
 0x4f2   :  { %v9467_v30 = vpop.f32.mrf.mxu1  ;;  %v3883_v18 = vadd.f32 %v3859_v2, %v3766_v41 }
 0x4f3   :  { %v3747_v33 = vpop.f32.mrf.mxu0 }
 0x4f4   :  { %v7390_v49 = vpop.f32.mrf.mxu1  ;;  %v3767_v27 = vadd.f32 %v3747_v33, %v3646_v43 }
 0x4f5   :  { %v7362_v62 = vpop.f32.mrf.mxu0 }
 0x4f6   :  { %v4097_v51 = vpop.f32.mrf.mxu1  ;;  %v3884_v13 = vadd.f32 %v3864_v42, %v3767_v27  ;;  %v4171_v62 = vld [vmem:[#allocation2 + $0x13a] sm:$0xff] }
 0x4f7   :  { %v3752_v3 = vpop.f32.mrf.mxu0  ;;  %v4554_v39 = vrot.slane %v4171_v62, 4 }
 0x4f8   :  { %v7416_v29 = vpop.f32.mrf.mxu1  ;;  %v3768_v46 = vadd.f32 %v3752_v3, %v3647_v53 }
 0x4f9   :  { %v7365_v23 = vpop.f32.mrf.mxu0  ;;  %v4553_v29 = vrot.slane %v4170_v61, 4 }
 0x4fa   :  { %v4102_v5 = vpop.f32.mrf.mxu1  ;;  %v3885_v49 = vadd.f32 %v3869_v10, %v3768_v46 }
 0x4fb   :  { %v3757_v31 = vpop.f32.mrf.mxu0 }
 0x4fc   :  { %v7419_v52 = vpop.f32.mrf.mxu1  ;;  %v3769_v60 = vadd.f32 %v3757_v31, %v3648_v56 }
 0x4fd   :  { %v7368_v63 = vpop.f32.mrf.mxu0 }
 0x4fe   :  { %v4107_v21 = vpop.f32.mrf.mxu1  ;;  %v3886_v57 = vadd.f32 %v9465_v37, %v3769_v60  ;;  %v4555_v37 = vsel %vm416_vm4, %v4553_v29, %v4554_v39  ;;  %v4173_v60 = vld [vmem:[#allocation2 + $0x14a] sm:$0xff] }
 0x4ff   :  { %v3762_v55 = vpop.f32.mrf.mxu0  ;;  %v4791_v62 = vrot.slane %v4173_v60, 4 }
 0x500   :  { %v7422_v34 = vpop.f32.mrf.mxu1  ;;  %v3770_v23 = vadd.f32 %v3762_v55, %v3649_v48 }
 0x501   :  { %v7371_v0 = vpop.f32.mrf.mxu0 }
 0x502   :  { %v4112_v25 = vpop.f32.mrf.mxu1 }
 0x503   :  { %v3980_v35 = vpop.f32.mrf.mxu0 }
 0x504   :  { %v4004_v19 = vadd.f32 %v3980_v35, %v3883_v18  ;;  %v7425_v12 = vpop.f32.mrf.mxu1 }
 0x505   :  { %v7397_v22 = vpop.f32.mrf.mxu0 }
 0x506   :  { %v4121_v28 = vadd.f32 %v4097_v51, %v4004_v19  ;;  %v4117_v40 = vpop.f32.mrf.mxu1 }
 0x507   :  { %v3985_v58 = vpop.f32.mrf.mxu0 }
 0x508   :  { %v4130_v2 = vadd.f32 %v9473_v54, %v4121_v28  ;;  %v4005_v47 = vadd.f32 %v3985_v58, %v3884_v13  ;;  %v7428_v9 = vpop.f32.mrf.mxu1  ;;  %v4169_v13 = vld [vmem:[#allocation2 + $0x12a] sm:$0xff] }
 0x509   :  { %v7400_v59 = vpop.f32.mrf.mxu0  ;;  %v4174_v9 = vld [vmem:[#allocation2 + $0x152] sm:$0xff] }
 0x50a   :  { %v4135_v45 = vmax.f32 %v4130_v2, 0.0  ;;  %v4122_v33 = vadd.f32 %v4102_v5, %v4005_v47 }
 0x50b   :  { %v3990_v15 = vpop.f32.mrf.mxu0 }
 0x50c   :  { %v4145_v51 = vrot.slane %v4135_v45, 5  ;;  %v4131_v42 = vadd.f32 %v9473_v54, %v4122_v33  ;;  %v4006_v11 = vadd.f32 %v3990_v15, %v3885_v49  ;;  %v4792_v49 = vrot.slane %v4174_v9, 4 }
 0x50d   :  { %v7403_v3 = vpop.f32.mrf.mxu0 }
 0x50e   :  { %v4159_v16 = vsel %vm516_vm5, 0.0, %v4145_v51  ;;  %v4136_v31 = vmax.f32 %v4131_v42, 0.0  ;;  %v4123_v5 = vadd.f32 %v4107_v21, %v4006_v11  ;;  %v3887_v21 = vadd.f32 %v9467_v30, %v3770_v23 }
 0x50f   :  { %v9484_v10 = vmul.f32 %v4159_v16, %v8397_v7  ;;  %v3995_v38 = vpop.f32.mrf.mxu0  ;;  %v4793_v42 = vsel %vm416_vm4, %v4791_v62, %v4792_v49 }
 0x510   :  { %v4146_v50 = vrot.slane %v4136_v31, 5  ;;  %v4132_v44 = vadd.f32 %v9473_v54, %v4123_v5  ;;  %v4007_v52 = vadd.f32 %v3995_v38, %v3886_v57 }
 0x511   :  { %v7406_v63 = vpop.f32.mrf.mxu0  ;;  %7453 = vmatmul.mubr.msk.f32.vlgmr.msra.gmra.mxu1 %vm3210_vm7, %v9484_v10  ;;  %v4207_v30 = vrot.slane %v9484_v10, 1 }
 0x512   :  { %v4147_v36 = vsel %vm516_vm5, %v4145_v51, %v4146_v50  ;;  %v4137_v41 = vmax.f32 %v4132_v44, 0.0  ;;  %v4124_v55 = vadd.f32 %v4112_v25, %v4007_v52  ;;  %7455 = vmatprep.mubr.msk.f32.mxu1 %vm7844_vm0, %v7843_v1  ;;  %7487 = vmatpush3.msk.msra.mxu1 %vm416_vm4, %v4554_v39  ;;  %v4426_v39 = vrot.slane %v9484_v10, 2 }
 0x513   :  { %v9496_v20 = vmul.f32 %v4147_v36, %v8400_v8  ;;  %v4000_v43 = vpop.f32.mrf.mxu0  ;;  %7488 = vmatprep.subr.mxu1 %v7843_v1  ;;  %v4781_v36 = vrot.slane %v9484_v10, 5 }
 0x514   :  { %v4148_v34 = vrot.slane %v4137_v41, 5  ;;  %v4133_v6 = vadd.f32 %v9473_v54, %v4124_v55  ;;  %v4008_v0 = vadd.f32 %v4000_v43, %v3887_v21  ;;  %7489 = vmatpush3.msra.mxu1 %v4555_v37 }
 0x515   :  { %v7409_v27 = vpop.f32.mrf.mxu0  ;;  %7456 = vmatmul.mubr.msk.f32.gmra.mxu1 %vm3210_vm7, %v9496_v20  ;;  %v4208_v25 = vrot.slane %v9496_v20, 1  ;;  %7524 = vmatprep.subr.mxu1 %v7843_v1  ;;  %v4544_v45 = vrot.slane %v9496_v20, 3  ;;  %v4427_v11 = vrot.slane %v9496_v20, 2  ;;  %v4782_v37 = vrot.slane %v9496_v20, 5 }
 0x516   :  { %v4149_v18 = vsel %vm516_vm5, %v4146_v50, %v4148_v34  ;;  %v4138_v14 = vmax.f32 %v4133_v6, 0.0  ;;  %v4125_v35 = vadd.f32 %v4117_v40, %v4008_v0  ;;  %7458 = vmatprep.mubr.msk.f32.mxu1 %vm7844_vm0, %v7843_v1  ;;  %v4172_v50 = vld [vmem:[#allocation2 + $0x142] sm:$0xff]  ;;  %v4665_v43 = vrot.slane %v9496_v20, 4 }
 0x517   :  { %v9509_v53 = vmul.f32 %v4149_v18, %v8599_v17  ;;  %v4209_v19 = vsel %vm116_vm1, %v4207_v30, %v4208_v25  ;;  %v4428_v29 = vsel %vm216_vm2, %v4426_v39, %v4427_v11  ;;  %v4783_v55 = vsel %vm516_vm5, %v4781_v36, %v4782_v37 }
 0x518   :  { %v4150_v12 = vrot.slane %v4138_v14, 5  ;;  %v4134_v22 = vadd.f32 %v9473_v54, %v4125_v35  ;;  %7434 = vmatmul.mubr.msk.f32.vlgmr.msra.gmra.mxu0 %vm3210_vm7, %v4209_v19  ;;  %v4664_v0 = vrot.slane %v9484_v10, 4 }
 0x519   :  { %7459 = vmatmul.mubr.msk.f32.gmra.mxu1 %vm3210_vm7, %v9509_v53  ;;  %7436 = vmatprep.mubr.msk.f32.mxu0 %vm7844_vm0, %v7843_v1  ;;  %v4210_v32 = vrot.slane %v9509_v53, 1  ;;  %v4546_v51 = vrot.slane %v9509_v53, 3  ;;  %v4429_v23 = vrot.slane %v9509_v53, 2  ;;  %v4784_v21 = vrot.slane %v9509_v53, 5 }
 0x51a   :  { %v4151_v46 = vsel %vm516_vm5, %v4148_v34, %v4150_v12  ;;  %v4139_v28 = vmax.f32 %v4134_v22, 0.0  ;;  %7461 = vmatprep.mubr.msk.f32.mxu1 %vm7844_vm0, %v7843_v1  ;;  %7468 = vmatpush3.msk.msra.mxu0 %vm416_vm4, %v4170_v61  ;;  %v4543_v61 = vrot.slane %v9484_v10, 3  ;;  %v4666_v27 = vsel %vm416_vm4, %v4664_v0, %v4665_v43 }
 0x51b   :  { %v9524_v54 = vmul.f32 %v4151_v46, %v8631_v26  ;;  %v4211_v40 = vsel %vm116_vm1, %v4208_v25, %v4210_v32  ;;  %7469 = vmatprep.subr.mxu0 %v7843_v1  ;;  %v9571_v3 = vsel %vm316_vm3, %v4544_v45, %v4546_v51  ;;  %v4430_v5 = vsel %vm216_vm2, %v4427_v11, %v4429_v23  ;;  %v4176_v25 = vld [vmem:[#allocation2 + $0x162] sm:$0xf] }
 0x51c   :  { %v4152_v56 = vrot.slane %v4139_v28, 5  ;;  %7437 = vmatmul.mubr.msk.f32.gmra.mxu0 %vm3210_vm7, %v4211_v40  ;;  %v9556_v48 = vsel %vm316_vm3, %v4543_v61, %v4544_v45  ;;  %v4785_v34 = vsel %vm516_vm5, %v4782_v37, %v4784_v21  ;;  %v4667_v30 = vrot.slane %v9509_v53, 4  ;;  %v4186_v45 = vld [vmem:[#allocation2 + $0x1a7] sm:$0xff] }
 0x51d   :  { %7462 = vmatmul.mubr.msk.f32.gmra.mxu1 %vm3210_vm7, %v9524_v54  ;;  %7439 = vmatprep.mubr.msk.f32.mxu0 %vm7844_vm0, %v7843_v1  ;;  %v4212_v58 = vrot.slane %v9524_v54, 1  ;;  %v4548_v57 = vrot.slane %v9524_v54, 3  ;;  %v4431_v38 = vrot.slane %v9524_v54, 2  ;;  %v4786_v6 = vrot.slane %v9524_v54, 5 }
 0x51e   :  { %v4153_v24 = vsel %vm516_vm5, %v4150_v12, %v4152_v56  ;;  %7464 = vmatprep.mubr.msk.f32.mxu1 %vm7844_vm0, %v7843_v1  ;;  %7470 = vmatpush3.msra.mxu0 %v4169_v13  ;;  %v4668_v35 = vsel %vm416_vm4, %v4665_v43, %v4667_v30  ;;  %v4669_v19 = vrot.slane %v9524_v54, 4  ;;  %v4175_v12 = vld [vmem:[#allocation2 + $0x15a] sm:$0xff]  ;;  %v4903_v40 = vrot.slane %v9496_v20, 6 }
 0x51f   :  { %v4160_v2 = vsel %vm316_vm3, %v4153_v24, 0.0  ;;  %v4213_v47 = vsel %vm116_vm1, %v4210_v32, %v4212_v58  ;;  %7505 = vmatprep.subr.mxu0 %v7843_v1  ;;  %v9586_v16 = vsel %vm316_vm3, %v4546_v51, %v4548_v57  ;;  %v4432_v52 = vsel %vm216_vm2, %v4429_v23, %v4431_v38  ;;  %v4200_v56 = vld [vmem:[#allocation2 + $0x217] sm:$0xf] }
 0x520   :  { %v9541_v59 = vmul.f32 %v4160_v2, %v8636_v4  ;;  %7440 = vmatmul.mubr.msk.f32.gmra.mxu0 %vm3210_vm7, %v4213_v47  ;;  %v4787_v18 = vsel %vm516_vm5, %v4784_v21, %v4786_v6  ;;  %v4670_v32 = vsel %vm416_vm4, %v4667_v30, %v4669_v19  ;;  %v4902_v13 = vrot.slane %v9484_v10, 6  ;;  %v4199_v2 = vld [vmem:[#allocation2 + $0x20f] sm:$0xff] }
 0x521   :  { %7442 = vmatprep.mubr.msk.f32.mxu0 %vm7844_vm0, %v7843_v1  ;;  %v4905_v24 = vrot.slane %v9509_v53, 6  ;;  %v4907_v47 = vrot.slane %v9524_v54, 6  ;;  %v4180_v54 = vld [vmem:[#allocation2 + $0x177] sm:$0xff] }
 0x522   :  { %7465 = vmatmul.mubr.msk.f32.gmra.mxu1 %vm3210_vm7, %v9541_v59  ;;  %v4214_v33 = vrot.slane %v9541_v59, 1  ;;  %v9589_v31 = vrot.slane %v9541_v59, 3  ;;  %v4433_v63 = vrot.slane %v9541_v59, 2  ;;  %v4788_v14 = vrot.slane %v9541_v59, 5 }
 0x523   :  { %7490 = vmatprep.mubr.msk.f32.mxu1 %vm7844_vm0, %v7843_v1  ;;  %v4671_v46 = vrot.slane %v9541_v59, 4  ;;  %v4906_v20 = vsel %vm616_vm6, %v4903_v40, %v4905_v24  ;;  %v4908_v10 = vsel %vm616_vm6, %v4905_v24, %v4907_v47  ;;  %v4909_v53 = vrot.slane %v9541_v59, 6  ;;  %v4178_v59 = vld [vmem:[#allocation2 + $0x167] sm:$0xff] }
 0x524   :  { %v4215_v15 = vsel %vm116_vm1, %v4212_v58, %v4214_v33  ;;  %v9604_v44 = vsel %vm316_vm3, %v4548_v57, %v9589_v31  ;;  %v4434_v41 = vsel %vm216_vm2, %v4431_v38, %v4433_v63  ;;  %v4789_v22 = vsel %vm516_vm5, %v4786_v6, %v4788_v14 }
 0x525   :  { %7443 = vmatmul.mubr.msk.f32.gmra.mxu0 %vm3210_vm7, %v4215_v15  ;;  %v4672_v28 = vsel %vm416_vm4, %v4669_v19, %v4671_v46  ;;  %v4904_v58 = vsel %vm616_vm6, %v4902_v13, %v4903_v40  ;;  %v4910_v9 = vsel %vm616_vm6, %v4907_v47, %v4909_v53 }
 0x526   :  { %7491 = vmatmul.mubr.msk.f32.vlgmr.msra.gmra.mxu1 %vm3210_vm7, %v9556_v48  ;;  %7445 = vmatprep.mubr.msk.f32.mxu0 %vm7844_vm0, %v7843_v1 }
 0x527   :  { %7493 = vmatprep.mubr.msk.f32.mxu1 %vm7844_vm0, %v7843_v1  ;;  %7525 = vmatpush3.msk.msra.mxu1 %vm416_vm4, %v4792_v49  ;;  %v4184_v49 = vld [vmem:[#allocation2 + $0x197] sm:$0xff] }
 0x528   :  { %7526 = vmatprep.subr.mxu1 %v7843_v1 }
 0x529   :  { %7446 = vmatmul.mubr.msk.f32.gmra.mxu0 %vm3210_vm7, %v4214_v33  ;;  %7527 = vmatpush3.msra.mxu1 %v4793_v42  ;;  %v4185_v33 = vld [vmem:[#allocation2 + $0x19f] sm:$0xff] }
 0x52a   :  { %7494 = vmatmul.mubr.msk.f32.gmra.mxu1 %vm3210_vm7, %v9571_v3  ;;  %7471 = vmatprep.mubr.msk.f32.mxu0 %vm7844_vm0, %v7843_v1 }
 0x52b   :  { %7496 = vmatprep.mubr.msk.f32.mxu1 %vm7844_vm0, %v7843_v1  ;;  %7562 = vmatprep.subr.mxu1 %v7843_v1 }
 0x52d   :  { %7472 = vmatmul.mubr.msk.f32.vlgmr.msra.gmra.mxu0 %vm3210_vm7, %v4428_v29 }
 0x52e   :  { %7497 = vmatmul.mubr.msk.f32.gmra.mxu1 %vm3210_vm7, %v9586_v16  ;;  %7474 = vmatprep.mubr.msk.f32.mxu0 %vm7844_vm0, %v7843_v1 }
 0x52f   :  { %7499 = vmatprep.mubr.msk.f32.mxu1 %vm7844_vm0, %v7843_v1  ;;  %7506 = vmatpush3.msk.msra.mxu0 %vm416_vm4, %v4173_v60  ;;  %v4179_v60 = vld [vmem:[#allocation2 + $0x16f] sm:$0xff] }
 0x530   :  { %7507 = vmatprep.subr.mxu0 %v7843_v1 }
 0x531   :  { %7475 = vmatmul.mubr.msk.f32.gmra.mxu0 %vm3210_vm7, %v4430_v5 }
 0x532   :  { %7500 = vmatmul.mubr.msk.f32.gmra.mxu1 %vm3210_vm7, %v9604_v44  ;;  %7477 = vmatprep.mubr.msk.f32.mxu0 %vm7844_vm0, %v7843_v1 }
 0x533   :  { %7502 = vmatprep.mubr.msk.f32.mxu1 %vm7844_vm0, %v7843_v1  ;;  %7508 = vmatpush3.msra.mxu0 %v4172_v50 }
 0x534   :  { %7543 = vmatprep.subr.mxu0 %v7843_v1 }
 0x535   :  { %7478 = vmatmul.mubr.msk.f32.gmra.mxu0 %vm3210_vm7, %v4432_v52 }
 0x536   :  { %7503 = vmatmul.mubr.msk.f32.gmra.mxu1 %vm3210_vm7, %v9589_v31  ;;  %7480 = vmatprep.mubr.msk.f32.mxu0 %vm7844_vm0, %v7843_v1 }
 0x537   :  { %7528 = vmatprep.mubr.msk.f32.mxu1 %vm7844_vm0, %v7843_v1 }
 0x539   :  { %7481 = vmatmul.mubr.msk.f32.gmra.mxu0 %vm3210_vm7, %v4434_v41 }
 0x53a   :  { %7529 = vmatmul.mubr.msk.f32.vlgmr.msra.gmra.mxu1 %vm3210_vm7, %v4783_v55  ;;  %7483 = vmatprep.mubr.msk.f32.mxu0 %vm7844_vm0, %v7843_v1 }
 0x53b   :  { %7531 = vmatprep.mubr.msk.f32.mxu1 %vm7844_vm0, %v7843_v1  ;;  %7563 = vmatpush3.msra.mxu1 %v4180_v54 }
 0x53c   :  { %7564 = vmatprep.subr.mxu1 %v7843_v1 }
 0x53d   :  { %7484 = vmatmul.mubr.msk.f32.gmra.mxu0 %vm3210_vm7, %v4433_v63  ;;  %7565 = vmatpush3.msra.mxu1 %v4179_v60 }
 0x53e   :  { %7532 = vmatmul.mubr.msk.f32.gmra.mxu1 %vm3210_vm7, %v4785_v34  ;;  %7509 = vmatprep.mubr.msk.f32.mxu0 %vm7844_vm0, %v7843_v1 }
 0x53f   :  { %7534 = vmatprep.mubr.msk.f32.mxu1 %vm7844_vm0, %v7843_v1  ;;  %7566 = vmatprep.subr.mxu1 %v7843_v1 }
 0x540   :  { %7567 = vmatpush3.msra.mxu1 %v4178_v59 }
 0x541   :  { %7510 = vmatmul.mubr.msk.f32.vlgmr.msra.gmra.mxu0 %vm3210_vm7, %v4666_v27  ;;  %7602 = vmatprep.subr.mxu1 %v7843_v1 }
 0x542   :  { %7535 = vmatmul.mubr.msk.f32.gmra.mxu1 %vm3210_vm7, %v4787_v18  ;;  %7512 = vmatprep.mubr.msk.f32.mxu0 %vm7844_vm0, %v7843_v1 }
 0x543   :  { %7537 = vmatprep.mubr.msk.f32.mxu1 %vm7844_vm0, %v7843_v1  ;;  %7544 = vmatpush3.msk.msra.mxu0 %vm416_vm4, %v4176_v25 }
 0x544   :  { %7545 = vmatprep.subr.mxu0 %v7843_v1 }
 0x545   :  { %7513 = vmatmul.mubr.msk.f32.gmra.mxu0 %vm3210_vm7, %v4668_v35 }
 0x546   :  { %7538 = vmatmul.mubr.msk.f32.gmra.mxu1 %vm3210_vm7, %v4789_v22  ;;  %7515 = vmatprep.mubr.msk.f32.mxu0 %vm7844_vm0, %v7843_v1 }
 0x547   :  { %7540 = vmatprep.mubr.msk.f32.mxu1 %vm7844_vm0, %v7843_v1  ;;  %7546 = vmatpush3.msra.mxu0 %v4175_v12 }
 0x548   :  { %7583 = vmatprep.subr.mxu0 %v7843_v1 }
 0x549   :  { %7516 = vmatmul.mubr.msk.f32.gmra.mxu0 %vm3210_vm7, %v4670_v32 }
 0x54a   :  { %7541 = vmatmul.mubr.msk.f32.gmra.mxu1 %vm3210_vm7, %v4788_v14  ;;  %7518 = vmatprep.mubr.msk.f32.mxu0 %vm7844_vm0, %v7843_v1 }
 0x54b   :  { %7568 = vmatprep.mubr.msk.f32.mxu1 %vm7844_vm0, %v7843_v1 }
 0x54d   :  { %7519 = vmatmul.mubr.msk.f32.gmra.mxu0 %vm3210_vm7, %v4672_v28 }
 0x54e   :  { %7521 = vmatprep.mubr.msk.f32.mxu0 %vm7844_vm0, %v7843_v1 }
 0x551   :  { %7522 = vmatmul.mubr.msk.f32.gmra.mxu0 %vm3210_vm7, %v4671_v46 }
 0x552   :  { %7547 = vmatprep.mubr.msk.f32.mxu0 %vm7844_vm0, %v7843_v1 }
 0x555   :  { %7548 = vmatmul.mubr.msk.f32.vlgmr.msra.gmra.mxu0 %vm3210_vm7, %v4904_v58 }
 0x556   :  { %7550 = vmatprep.mubr.msk.f32.mxu0 %vm7844_vm0, %v7843_v1  ;;  %7584 = vmatpush3.msk.msra.mxu0 %vm416_vm4, %v4200_v56 }
 0x557   :  { %7585 = vmatprep.subr.mxu0 %v7843_v1 }
 0x558   :  { %7586 = vmatpush3.msra.mxu0 %v4199_v2 }
 0x559   :  { %7551 = vmatmul.mubr.msk.f32.gmra.mxu0 %vm3210_vm7, %v4906_v20  ;;  %7623 = vmatprep.subr.mxu0 %v7843_v1 }
 0x55a   :  { %7553 = vmatprep.mubr.msk.f32.mxu0 %vm7844_vm0, %v7843_v1 }
 0x55d   :  { %7554 = vmatmul.mubr.msk.f32.gmra.mxu0 %vm3210_vm7, %v4908_v10 }
 0x55e   :  { %7556 = vmatprep.mubr.msk.f32.mxu0 %vm7844_vm0, %v7843_v1 }
 0x561   :  { %7557 = vmatmul.mubr.msk.f32.gmra.mxu0 %vm3210_vm7, %v4910_v9 }
 0x562   :  { %7559 = vmatprep.mubr.msk.f32.mxu0 %vm7844_vm0, %v7843_v1 }
 0x565   :  { %7560 = vmatmul.mubr.msk.f32.gmra.mxu0 %vm3210_vm7, %v4909_v53 }
 0x566   :  { %7587 = vmatprep.mubr.msk.f32.mxu0 %vm7844_vm0, %v7843_v1 }
 0x569   :  { %7588 = vmatmul.mubr.msk.f32.vlgmr.msra.gmra.mxu0 %vm3210_vm7, %v9556_v48 }
 0x56a   :  { %7590 = vmatprep.mubr.msk.f32.mxu0 %vm7844_vm0, %v7843_v1  ;;  %7624 = vmatpush3.msra.mxu0 %v4186_v45 }
 0x56b   :  { %7625 = vmatprep.subr.mxu0 %v7843_v1 }
 0x56c   :  { %7626 = vmatpush3.msra.mxu0 %v4185_v33 }
 0x56d   :  { %7591 = vmatmul.mubr.msk.f32.gmra.mxu0 %vm3210_vm7, %v9571_v3  ;;  %7627 = vmatprep.subr.mxu0 %v7843_v1 }
 0x56e   :  { %7593 = vmatprep.mubr.msk.f32.mxu0 %vm7844_vm0, %v7843_v1  ;;  %7628 = vmatpush3.msra.mxu0 %v4184_v49 }
 0x56f   :  { %7665 = vmatprep.subr.mxu0 %v7843_v1 }
 0x571   :  { %7594 = vmatmul.mubr.msk.f32.gmra.mxu0 %vm3210_vm7, %v9586_v16 }
 0x572   :  { %7596 = vmatprep.mubr.msk.f32.mxu0 %vm7844_vm0, %v7843_v1 }
 0x575   :  { %7597 = vmatmul.mubr.msk.f32.gmra.mxu0 %vm3210_vm7, %v9604_v44 }
 0x576   :  { %7599 = vmatprep.mubr.msk.f32.mxu0 %vm7844_vm0, %v7843_v1 }
 0x579   :  { %7600 = vmatmul.mubr.msk.f32.gmra.mxu0 %vm3210_vm7, %v9589_v31 }
 0x57a   :  { %7629 = vmatprep.mubr.msk.f32.mxu0 %vm7844_vm0, %v7843_v1 }
 0x5d1   :  { %v4402_v62 = vpop.f32.mrf.mxu1 }
 0x5d3   :  { %v7454_v61 = vpop.f32.mrf.mxu1 }
 0x5d5   :  { %v4407_v15 = vpop.f32.mrf.mxu1 }
 0x5d7   :  { %v7457_v48 = vpop.f32.mrf.mxu1 }
 0x5d8   :  { %v4300_v51 = vpop.f32.mrf.mxu0 }
 0x5d9   :  { %v4412_v42 = vpop.f32.mrf.mxu1  ;;  %v4403_v9 = vadd.f32 %v4402_v62, %v4300_v51 }
 0x5da   :  { %v7435_v11 = vpop.f32.mrf.mxu0 }
 0x5db   :  { %v7460_v3 = vpop.f32.mrf.mxu1 }
 0x5dc   :  { %v4305_v57 = vpop.f32.mrf.mxu0 }
 0x5dd   :  { %v4417_v39 = vpop.f32.mrf.mxu1  ;;  %v4408_v49 = vadd.f32 %v4407_v15, %v4305_v57 }
 0x5de   :  { %v7438_v29 = vpop.f32.mrf.mxu0 }
 0x5df   :  { %v7463_v23 = vpop.f32.mrf.mxu1 }
 0x5e0   :  { %v4310_v16 = vpop.f32.mrf.mxu0 }
 0x5e1   :  { %v4413_v23 = vadd.f32 %v4412_v42, %v4310_v16 }
 0x5e2   :  { %v7441_v31 = vpop.f32.mrf.mxu0  ;;  %v9733_v5 = vpop.f32.mrf.mxu1 }
 0x5e4   :  { %v7466_v38 = vpop.f32.mrf.mxu1 }
 0x5e5   :  { %v4315_v50 = vpop.f32.mrf.mxu0 }
 0x5e6   :  { %v4635_v44 = vpop.f32.mrf.mxu1 }
 0x5e7   :  { %v7444_v52 = vpop.f32.mrf.mxu0 }
 0x5e8   :  { %v7492_v63 = vpop.f32.mrf.mxu1 }
 0x5e9   :  { %v4320_v37 = vpop.f32.mrf.mxu0 }
 0x5ea   :  { %v4640_v36 = vpop.f32.mrf.mxu1 }
 0x5eb   :  { %v7447_v41 = vpop.f32.mrf.mxu0 }
 0x5ec   :  { %v7495_v55 = vpop.f32.mrf.mxu1 }
 0x5ed   :  { %v4514_v21 = vpop.f32.mrf.mxu0  ;;  %v4418_v55 = vadd.f32 %v4417_v39, %v4315_v50 }
 0x5ee   :  { %v4645_v43 = vpop.f32.mrf.mxu1  ;;  %v4538_v59 = vadd.f32 %v4514_v21, %v4403_v9 }
 0x5ef   :  { %v7473_v34 = vpop.f32.mrf.mxu0 }
 0x5f0   :  { %v7498_v6 = vpop.f32.mrf.mxu1  ;;  %v4659_v3 = vadd.f32 %v4635_v44, %v4538_v59  ;;  %v9737_v34 = vld [vmem:[#allocation2 + $0x166] ss:$0 sm:$0xff] }
 0x5f1   :  { %v4519_v0 = vpop.f32.mrf.mxu0 }
 0x5f2   :  { %v4650_v27 = vpop.f32.mrf.mxu1  ;;  %v4539_v11 = vadd.f32 %v4519_v0, %v4408_v49  ;;  %v4423_v0 = vadd.f32 %v9733_v5, %v4320_v37 }
 0x5f3   :  { %v7476_v30 = vpop.f32.mrf.mxu0 }
 0x5f4   :  { %v7501_v25 = vpop.f32.mrf.mxu1  ;;  %v4660_v63 = vadd.f32 %v4640_v36, %v4539_v11 }
 0x5f5   :  { %v4524_v18 = vpop.f32.mrf.mxu0 }
 0x5f6   :  { %v4655_v14 = vpop.f32.mrf.mxu1  ;;  %v4540_v52 = vadd.f32 %v4524_v18, %v4413_v23 }
 0x5f7   :  { %v7479_v35 = vpop.f32.mrf.mxu0 }
 0x5f8   :  { %v7504_v19 = vpop.f32.mrf.mxu1  ;;  %v4661_v30 = vadd.f32 %v4645_v43, %v4540_v52  ;;  %v4192_v52 = vld [vmem:[#allocation2 + $0x1d7] sm:$0xff] }
 0x5f9   :  { %v4529_v12 = vpop.f32.mrf.mxu0 }
 0x5fa   :  { %v4873_v22 = vpop.f32.mrf.mxu1  ;;  %v4541_v6 = vadd.f32 %v4529_v12, %v4418_v55 }
 0x5fb   :  { %v7482_v32 = vpop.f32.mrf.mxu0 }
 0x5fc   :  { %v7530_v46 = vpop.f32.mrf.mxu1  ;;  %v4662_v36 = vadd.f32 %v4650_v27, %v4541_v6  ;;  %v4183_v27 = vld [vmem:[#allocation2 + $0x18f] sm:$0xff] }
 0x5fd   :  { %v4534_v28 = vpop.f32.mrf.mxu0 }
 0x5fe   :  { %v4878_v40 = vpop.f32.mrf.mxu1  ;;  %v4542_v18 = vadd.f32 %v4534_v28, %v4423_v0 }
 0x5ff   :  { %v7485_v13 = vpop.f32.mrf.mxu0 }
 0x600   :  { %v7533_v56 = vpop.f32.mrf.mxu1  ;;  %v4663_v46 = vadd.f32 %v4655_v14, %v4542_v18 }
 0x601   :  { %v4752_v58 = vpop.f32.mrf.mxu0 }
 0x602   :  { %v4883_v24 = vpop.f32.mrf.mxu1  ;;  %v4776_v31 = vadd.f32 %v4752_v58, %v4659_v3 }
 0x603   :  { %v7511_v2 = vpop.f32.mrf.mxu0 }
 0x604   :  { %v7536_v20 = vpop.f32.mrf.mxu1  ;;  %v4897_v51 = vadd.f32 %v4873_v22, %v4776_v31 }
 0x605   :  { %v4757_v47 = vpop.f32.mrf.mxu0 }
 0x606   :  { %v4888_v10 = vpop.f32.mrf.mxu1  ;;  %v4777_v62 = vadd.f32 %v4757_v47, %v4660_v63 }
 0x607   :  { %v7514_v53 = vpop.f32.mrf.mxu0 }
 0x608   :  { %v7539_v54 = vpop.f32.mrf.mxu1  ;;  %v4898_v16 = vadd.f32 %v4878_v40, %v4777_v62 }
 0x609   :  { %v4762_v60 = vpop.f32.mrf.mxu0 }
 0x60a   :  { %v9735_v45 = vpop.f32.mrf.mxu1  ;;  %v4778_v44 = vadd.f32 %v4762_v60, %v4661_v30 }
 0x60b   :  { %v7517_v33 = vpop.f32.mrf.mxu0 }
 0x60c   :  { %v7542_v61 = vpop.f32.mrf.mxu1  ;;  %v4899_v12 = vadd.f32 %v4883_v24, %v4778_v44  ;;  %v4182_v24 = vld [vmem:[#allocation2 + $0x187] sm:$0xff] }
 0x60d   :  { %v4767_v48 = vpop.f32.mrf.mxu0 }
 0x60e   :  { %v4779_v19 = vadd.f32 %v4767_v48, %v4662_v36 }
 0x60f   :  { %v7520_v29 = vpop.f32.mrf.mxu0 }
 0x610   :  { %v4900_v20 = vadd.f32 %v4888_v10, %v4779_v19  ;;  %v4181_v10 = vld [vmem:[#allocation2 + $0x17f] sm:$0xff] }
 0x611   :  { %v4772_v38 = vpop.f32.mrf.mxu0 }
 0x612   :  { %v4780_v56 = vadd.f32 %v4772_v38, %v4663_v46 }
 0x613   :  { %v7523_v41 = vpop.f32.mrf.mxu0 }
 0x614   :  { %v4901_v49 = vadd.f32 %v9735_v45, %v4780_v56 }
 0x615   :  { %v4990_v21 = vpop.f32.mrf.mxu0 }
 0x616   :  { %v5014_v15 = vadd.f32 %v4990_v21, %v4897_v51 }
 0x617   :  { %v7549_v57 = vpop.f32.mrf.mxu0 }
 0x618   :  { %v5023_v42 = vadd.f32 %v9737_v34, %v5014_v15  ;;  %v4191_v15 = vld [vmem:[#allocation2 + $0x1cf] sm:$0xff] }
 0x619   :  { %v4995_v25 = vpop.f32.mrf.mxu0 }
 0x61a   :  { %v5028_v35 = vmax.f32 %v5023_v42, 0.0  ;;  %v5015_v39 = vadd.f32 %v4995_v25, %v4898_v16  ;;  %v4190_v16 = vld [vmem:[#allocation2 + $0x1c7] sm:$0xff] }
 0x61b   :  { %v7552_v50 = vpop.f32.mrf.mxu0 }
 0x61c   :  { %v5038_v22 = vrot.slane %v5028_v35, 5  ;;  %v5024_v32 = vadd.f32 %v9737_v34, %v5015_v39 }
 0x61d   :  { %v5000_v43 = vpop.f32.mrf.mxu0 }
 0x61e   :  { %v5052_v5 = vsel %vm516_vm5, 0.0, %v5038_v22  ;;  %v5029_v37 = vmax.f32 %v5024_v32, 0.0  ;;  %v5016_v13 = vadd.f32 %v5000_v43, %v4899_v12  ;;  %v4189_v43 = vld [vmem:[#allocation2 + $0x1bf] sm:$0xff] }
 0x61f   :  { %v9744_v40 = vmul.f32 %v5052_v5, %v8397_v7  ;;  %v7555_v28 = vpop.f32.mrf.mxu0 }
 0x620   :  { %v5039_v58 = vrot.slane %v5029_v37, 5  ;;  %v5025_v2 = vadd.f32 %v9737_v34, %v5016_v13  ;;  %v4188_v13 = vld [vmem:[#allocation2 + $0x1b7] sm:$0xff] }
 0x621   :  { %v5005_v47 = vpop.f32.mrf.mxu0  ;;  %7569 = vmatmul.mubr.msk.f32.vlgmr.msra.gmra.mxu1 %vm5059_vm8, %v9744_v40  ;;  %v5372_v48 = vrot.slane %v9744_v40, 2  ;;  %v5258_v32 = vrot.slane %v9744_v40, 1 }
 0x622   :  { %v5040_v14 = vsel %vm516_vm5, %v5038_v22, %v5039_v58  ;;  %v5030_v53 = vmax.f32 %v5025_v2, 0.0  ;;  %v5017_v9 = vadd.f32 %v5005_v47, %v4900_v20  ;;  %7571 = vmatprep.mubr.msk.f32.mxu1 %vm7844_vm0, %v7843_v1  ;;  %7603 = vmatpush3.msra.mxu1 %v4183_v27  ;;  %v4187_v20 = vld [vmem:[#allocation2 + $0x1af] sm:$0xff]  ;;  %v5600_v47 = vrot.slane %v9744_v40, 4 }
 0x623   :  { %v9753_v54 = vmul.f32 %v5040_v14, %v8400_v8  ;;  %v7558_v60 = vpop.f32.mrf.mxu0  ;;  %7604 = vmatprep.subr.mxu1 %v7843_v1 }
 0x624   :  { %v5041_v59 = vrot.slane %v5030_v53, 5  ;;  %v5026_v33 = vadd.f32 %v9737_v34, %v5017_v9  ;;  %7605 = vmatpush3.msra.mxu1 %v4182_v24  ;;  %v4198_v9 = vld [vmem:[#allocation2 + $0x207] sm:$0xff] }
 0x625   :  { %v5010_v61 = vpop.f32.mrf.mxu0  ;;  %7572 = vmatmul.mubr.msk.f32.gmra.mxu1 %vm5059_vm8, %v9753_v54  ;;  %v5373_v11 = vrot.slane %v9753_v54, 2  ;;  %7606 = vmatprep.subr.mxu1 %v7843_v1  ;;  %v5259_v50 = vrot.slane %v9753_v54, 1  ;;  %v5601_v27 = vrot.slane %v9753_v54, 4 }
 0x626   :  { %v5042_v3 = vsel %vm516_vm5, %v5039_v58, %v5041_v59  ;;  %v5031_v29 = vmax.f32 %v5026_v33, 0.0  ;;  %v5018_v23 = vadd.f32 %v5010_v61, %v4901_v49  ;;  %7574 = vmatprep.mubr.msk.f32.mxu1 %vm7844_vm0, %v7843_v1  ;;  %7607 = vmatpush3.msra.mxu1 %v4181_v10  ;;  %v4197_v49 = vld [vmem:[#allocation2 + $0x1ff] sm:$0xff] }
 0x627   :  { %v9767_v45 = vmul.f32 %v5042_v3, %v8599_v17  ;;  %v7561_v31 = vpop.f32.mrf.mxu0  ;;  %v5374_v38 = vsel %vm216_vm2, %v5372_v48, %v5373_v11  ;;  %7644 = vmatprep.subr.mxu1 %v7843_v1  ;;  %v5260_v5 = vsel %vm116_vm1, %v5258_v32, %v5259_v50  ;;  %v5602_v14 = vsel %vm416_vm4, %v5600_v47, %v5601_v27  ;;  %v4196_v3 = vld [vmem:[#allocation2 + $0x1f7] sm:$0xff] }
 0x628   :  { %v5043_v63 = vrot.slane %v5031_v29, 5  ;;  %v5027_v41 = vadd.f32 %v9737_v34, %v5018_v23  ;;  %7630 = vmatmul.mubr.msk.f32.vlgmr.msra.gmra.mxu0 %vm5059_vm8, %v5374_v38  ;;  %v5487_v29 = vrot.slane %v9753_v54, 3  ;;  %v5486_v23 = vrot.slane %v9744_v40, 3  ;;  %v4195_v38 = vld [vmem:[#allocation2 + $0x1ef] sm:$0xff] }
 0x629   :  { %7575 = vmatmul.mubr.msk.f32.gmra.mxu1 %vm5059_vm8, %v9767_v45  ;;  %v9775_v55 = vpop.f32.mrf.mxu0  ;;  %7632 = vmatprep.mubr.msk.f32.mxu0 %vm7844_vm0, %v7843_v1  ;;  %v5375_v62 = vrot.slane %v9767_v45, 2  ;;  %v5261_v37 = vrot.slane %v9767_v45, 1  ;;  %v5603_v53 = vrot.slane %v9767_v45, 4 }
 0x62a   :  { %v5044_v51 = vsel %vm516_vm5, %v5041_v59, %v5043_v63  ;;  %v5032_v21 = vmax.f32 %v5027_v41, 0.0  ;;  %7577 = vmatprep.mubr.msk.f32.mxu1 %vm7844_vm0, %v7843_v1  ;;  %7666 = vmatpush3.msra.mxu0 %v4192_v52  ;;  %v5488_v52 = vsel %vm316_vm3, %v5486_v23, %v5487_v29  ;;  %v4194_v41 = vld [vmem:[#allocation2 + $0x1e7] sm:$0xff] }
 0x62b   :  { %v9784_v34 = vmul.f32 %v5044_v51, %v8631_v26  ;;  %v7589_v6 = vpop.f32.mrf.mxu0  ;;  %v5376_v30 = vsel %vm216_vm2, %v5373_v11, %v5375_v62  ;;  %7667 = vmatprep.subr.mxu0 %v7843_v1  ;;  %v5262_v58 = vsel %vm116_vm1, %v5259_v50, %v5261_v37  ;;  %v5604_v59 = vsel %vm416_vm4, %v5601_v27, %v5603_v53 }
 0x62c   :  { %v5045_v57 = vrot.slane %v5032_v21, 5  ;;  %7633 = vmatmul.mubr.msk.f32.gmra.mxu0 %vm5059_vm8, %v5376_v30  ;;  %v4193_v6 = vld [vmem:[#allocation2 + $0x1df] sm:$0xff]  ;;  %v5828_v30 = vrot.slane %v9744_v40, 6 }
 0x62d   :  { %7578 = vmatmul.mubr.msk.f32.gmra.mxu1 %vm5059_vm8, %v9784_v34  ;;  %v9791_v0 = vpop.f32.mrf.mxu0  ;;  %7635 = vmatprep.mubr.msk.f32.mxu0 %vm7844_vm0, %v7843_v1  ;;  %v5377_v44 = vrot.slane %v9784_v34, 2  ;;  %v5263_v2 = vrot.slane %v9784_v34, 1  ;;  %v5605_v33 = vrot.slane %v9784_v34, 4  ;;  %v5491_v21 = vrot.slane %v9784_v34, 3 }
 0x62e   :  { %v5046_v42 = vsel %vm516_vm5, %v5043_v63, %v5045_v57  ;;  %7580 = vmatprep.mubr.msk.f32.mxu1 %vm7844_vm0, %v7843_v1  ;;  %7668 = vmatpush3.msra.mxu0 %v4191_v15  ;;  %v5489_v63 = vrot.slane %v9767_v45, 3  ;;  %v5831_v57 = vrot.slane %v9767_v45, 6 }
 0x62f   :  { %v5053_v25 = vsel %vm316_vm3, %v5046_v42, 0.0  ;;  %v7592_v18 = vpop.f32.mrf.mxu0  ;;  %v5378_v36 = vsel %vm216_vm2, %v5375_v62, %v5377_v44  ;;  %7669 = vmatprep.subr.mxu0 %v7843_v1  ;;  %v5264_v60 = vsel %vm116_vm1, %v5261_v37, %v5263_v2  ;;  %v5606_v48 = vsel %vm416_vm4, %v5603_v53, %v5605_v33 }
 0x630   :  { %v9803_v35 = vmul.f32 %v5053_v25, %v8636_v4  ;;  %7636 = vmatmul.mubr.msk.f32.gmra.mxu0 %vm5059_vm8, %v5378_v36  ;;  %v5829_v62 = vrot.slane %v9753_v54, 6  ;;  %v5490_v51 = vsel %vm316_vm3, %v5487_v29, %v5489_v63  ;;  %v5833_v25 = vrot.slane %v9784_v34, 6 }
 0x631   :  { %v9806_v39 = vpop.f32.mrf.mxu0  ;;  %7638 = vmatprep.mubr.msk.f32.mxu0 %vm7844_vm0, %v7843_v1  ;;  %7670 = vmatpush3.msra.mxu0 %v4190_v16 }
 0x632   :  { %7581 = vmatmul.mubr.msk.f32.gmra.mxu1 %vm5059_vm8, %v9803_v35  ;;  %v5379_v19 = vrot.slane %v9803_v35, 2  ;;  %7707 = vmatprep.subr.mxu0 %v7843_v1  ;;  %v5265_v10 = vrot.slane %v9803_v35, 1  ;;  %v5607_v11 = vrot.slane %v9803_v35, 4  ;;  %v5830_v15 = vsel %vm616_vm6, %v5828_v30, %v5829_v62 }
 0x633   :  { %v7595_v22 = vpop.f32.mrf.mxu0  ;;  %7608 = vmatprep.mubr.msk.f32.mxu1 %vm7844_vm0, %v7843_v1  ;;  %v5493_v42 = vrot.slane %v9803_v35, 3  ;;  %v5832_v16 = vsel %vm616_vm6, %v5829_v62, %v5831_v57  ;;  %v5834_v36 = vsel %vm616_vm6, %v5831_v57, %v5833_v25  ;;  %v5835_v50 = vrot.slane %v9803_v35, 6 }
 0x634   :  { %v5380_v12 = vsel %vm216_vm2, %v5377_v44, %v5379_v19  ;;  %v5266_v61 = vsel %vm116_vm1, %v5263_v2, %v5265_v10  ;;  %v5608_v31 = vsel %vm416_vm4, %v5605_v33, %v5607_v11  ;;  %v5492_v44 = vsel %vm316_vm3, %v5489_v63, %v5491_v21 }
 0x635   :  { %v9819_v46 = vpop.f32.mrf.mxu0  ;;  %7639 = vmatmul.mubr.msk.f32.gmra.mxu0 %vm5059_vm8, %v5380_v12  ;;  %v5494_v18 = vsel %vm316_vm3, %v5491_v21, %v5493_v42  ;;  %v5714_v22 = vrot.slane %v9744_v40, 5  ;;  %v5836_v32 = vsel %vm616_vm6, %v5833_v25, %v5835_v50  ;;  %vm5983_vm1 = vcmask 326656  }
 0x636   :  { %7609 = vmatmul.mubr.msk.f32.vlgmr.msra.gmra.mxu1 %vm5059_vm8, %v5260_v5  ;;  %7641 = vmatprep.mubr.msk.f32.mxu0 %vm7844_vm0, %v7843_v1  ;;  %v5721_v5 = vrot.slane %v9803_v35, 5 }
 0x637   :  { %v7598_v28 = vpop.f32.mrf.mxu0  ;;  %7611 = vmatprep.mubr.msk.f32.mxu1 %vm7844_vm0, %v7843_v1  ;;  %7645 = vmatpush3.msra.mxu1 %v4189_v43  ;;  %v5717_v43 = vrot.slane %v9767_v45, 5 }
 0x638   :  { %7646 = vmatprep.subr.mxu1 %v7843_v1 }
 0x639   :  { %v9831_v56 = vpop.f32.mrf.mxu0  ;;  %7642 = vmatmul.mubr.msk.f32.gmra.mxu0 %vm5059_vm8, %v5379_v19  ;;  %7647 = vmatpush3.msra.mxu1 %v4188_v13  ;;  %v5715_v19 = vrot.slane %v9753_v54, 5  ;;  %v5719_v54 = vrot.slane %v9784_v34, 5 }
 0x63a   :  { %7612 = vmatmul.mubr.msk.f32.gmra.mxu1 %vm5059_vm8, %v5262_v58  ;;  %7671 = vmatprep.mubr.msk.f32.mxu0 %vm7844_vm0, %v7843_v1 }
 0x63b   :  { %v7601_v24 = vpop.f32.mrf.mxu0  ;;  %7614 = vmatprep.mubr.msk.f32.mxu1 %vm7844_vm0, %v7843_v1  ;;  %7648 = vmatprep.subr.mxu1 %v7843_v1  ;;  %v5716_v12 = vsel %vm516_vm5, %v5714_v22, %v5715_v19  ;;  %v5718_v40 = vsel %vm516_vm5, %v5715_v19, %v5717_v43  ;;  %v5720_v45 = vsel %vm516_vm5, %v5717_v43, %v5719_v54 }
 0x63c   :  { %7649 = vmatpush3.msra.mxu1 %v4187_v20  ;;  %v5722_v37 = vsel %vm516_vm5, %v5719_v54, %v5721_v5 }
 0x63d   :  { %7672 = vmatmul.mubr.msk.f32.vlgmr.msra.gmra.mxu0 %vm5059_vm8, %v5602_v14  ;;  %7686 = vmatprep.subr.mxu1 %v7843_v1 }
 0x63e   :  { %7615 = vmatmul.mubr.msk.f32.gmra.mxu1 %vm5059_vm8, %v5264_v60  ;;  %7674 = vmatprep.mubr.msk.f32.mxu0 %vm7844_vm0, %v7843_v1 }
 0x63f   :  { %7617 = vmatprep.mubr.msk.f32.mxu1 %vm7844_vm0, %v7843_v1  ;;  %7708 = vmatpush3.msra.mxu0 %v4198_v9 }
 0x640   :  { %7709 = vmatprep.subr.mxu0 %v7843_v1 }
 0x641   :  { %7675 = vmatmul.mubr.msk.f32.gmra.mxu0 %vm5059_vm8, %v5604_v59 }
 0x642   :  { %7618 = vmatmul.mubr.msk.f32.gmra.mxu1 %vm5059_vm8, %v5266_v61  ;;  %7677 = vmatprep.mubr.msk.f32.mxu0 %vm7844_vm0, %v7843_v1 }
 0x643   :  { %7620 = vmatprep.mubr.msk.f32.mxu1 %vm7844_vm0, %v7843_v1  ;;  %7710 = vmatpush3.msra.mxu0 %v4197_v49 }
 0x644   :  { %7711 = vmatprep.subr.mxu0 %v7843_v1 }
 0x645   :  { %7678 = vmatmul.mubr.msk.f32.gmra.mxu0 %vm5059_vm8, %v5606_v48 }
 0x646   :  { %7621 = vmatmul.mubr.msk.f32.gmra.mxu1 %vm5059_vm8, %v5265_v10  ;;  %7680 = vmatprep.mubr.msk.f32.mxu0 %vm7844_vm0, %v7843_v1 }
 0x647   :  { %7650 = vmatprep.mubr.msk.f32.mxu1 %vm7844_vm0, %v7843_v1  ;;  %7712 = vmatpush3.msra.mxu0 %v4196_v3 }
 0x648   :  { %7768 = vmatprep.subr.mxu0 %v7843_v1 }
 0x649   :  { %7681 = vmatmul.mubr.msk.f32.gmra.mxu0 %vm5059_vm8, %v5608_v31 }
 0x64a   :  { %7651 = vmatmul.mubr.msk.f32.vlgmr.msra.gmra.mxu1 %vm5059_vm8, %v5488_v52  ;;  %7683 = vmatprep.mubr.msk.f32.mxu0 %vm7844_vm0, %v7843_v1 }
 0x64b   :  { %7653 = vmatprep.mubr.msk.f32.mxu1 %vm7844_vm0, %v7843_v1  ;;  %7687 = vmatpush3.msra.mxu1 %v4195_v38 }
 0x64c   :  { %7688 = vmatprep.subr.mxu1 %v7843_v1 }
 0x64d   :  { %7684 = vmatmul.mubr.msk.f32.gmra.mxu0 %vm5059_vm8, %v5607_v11  ;;  %7689 = vmatpush3.msra.mxu1 %v4194_v41 }
 0x64e   :  { %7654 = vmatmul.mubr.msk.f32.gmra.mxu1 %vm5059_vm8, %v5490_v51  ;;  %7713 = vmatprep.mubr.msk.f32.mxu0 %vm7844_vm0, %v7843_v1 }
 0x64f   :  { %7656 = vmatprep.mubr.msk.f32.mxu1 %vm7844_vm0, %v7843_v1  ;;  %7690 = vmatprep.subr.mxu1 %v7843_v1 }
 0x650   :  { %7691 = vmatpush3.msra.mxu1 %v4193_v6 }
 0x651   :  { %7714 = vmatmul.mubr.msk.f32.vlgmr.msra.gmra.mxu0 %vm5059_vm8, %v5830_v15  ;;  %7728 = vmatprep.subr.mxu1 %v7843_v1 }
 0x652   :  { %7657 = vmatmul.mubr.msk.f32.gmra.mxu1 %vm5059_vm8, %v5492_v44  ;;  %7716 = vmatprep.mubr.msk.f32.mxu0 %vm7844_vm0, %v7843_v1 }
 0x653   :  { %7659 = vmatprep.mubr.msk.f32.mxu1 %vm7844_vm0, %v7843_v1 }
 0x655   :  { %7717 = vmatmul.mubr.msk.f32.gmra.mxu0 %vm5059_vm8, %v5832_v16 }
 0x656   :  { %7660 = vmatmul.mubr.msk.f32.gmra.mxu1 %vm5059_vm8, %v5494_v18  ;;  %7719 = vmatprep.mubr.msk.f32.mxu0 %vm7844_vm0, %v7843_v1 }
 0x657   :  { %7662 = vmatprep.mubr.msk.f32.mxu1 %vm7844_vm0, %v7843_v1 }
 0x659   :  { %7720 = vmatmul.mubr.msk.f32.gmra.mxu0 %vm5059_vm8, %v5834_v36 }
 0x65a   :  { %7663 = vmatmul.mubr.msk.f32.gmra.mxu1 %vm5059_vm8, %v5493_v42  ;;  %7722 = vmatprep.mubr.msk.f32.mxu0 %vm7844_vm0, %v7843_v1 }
 0x65b   :  { %7692 = vmatprep.mubr.msk.f32.mxu1 %vm7844_vm0, %v7843_v1 }
 0x65d   :  { %7723 = vmatmul.mubr.msk.f32.gmra.mxu0 %vm5059_vm8, %v5836_v32 }
 0x65e   :  { %7693 = vmatmul.mubr.msk.f32.vlgmr.msra.gmra.mxu1 %vm5059_vm8, %v5716_v12  ;;  %7725 = vmatprep.mubr.msk.f32.mxu0 %vm7844_vm0, %v7843_v1 }
 0x65f   :  { %7695 = vmatprep.mubr.msk.f32.mxu1 %vm7844_vm0, %v7843_v1 }
 0x661   :  { %7726 = vmatmul.mubr.msk.f32.gmra.mxu0 %vm5059_vm8, %v5835_v50 }
 0x662   :  { %7696 = vmatmul.mubr.msk.f32.gmra.mxu1 %vm5059_vm8, %v5718_v40  ;;  %7774 = vmatprep.mubr.msk.f32.mxu0 %vm7844_vm0, %v7843_v1 }
 0x663   :  { %7698 = vmatprep.mubr.msk.f32.mxu1 %vm7844_vm0, %v7843_v1 }
 0x666   :  { %7699 = vmatmul.mubr.msk.f32.gmra.mxu1 %vm5059_vm8, %v5720_v45 }
 0x667   :  { %7701 = vmatprep.mubr.msk.f32.mxu1 %vm7844_vm0, %v7843_v1 }
 0x66a   :  { %7702 = vmatmul.mubr.msk.f32.gmra.mxu1 %vm5059_vm8, %v5722_v37 }
 0x66b   :  { %7704 = vmatprep.mubr.msk.f32.mxu1 %vm7844_vm0, %v7843_v1 }
 0x66e   :  { %7705 = vmatmul.mubr.msk.f32.gmra.mxu1 %vm5059_vm8, %v5721_v5 }
 0x66f   :  { %7738 = vmatprep.mubr.msk.f32.mxu1 %vm7844_vm0, %v7843_v1 }
 0x6e1   :  { %v5141_v34 = vpop.f32.mrf.mxu1 }
 0x6e2   :  { %v5235_v33 = vadd.f32 %v9775_v55, %v5141_v34 }
 0x6e3   :  { %v7570_v13 = vpop.f32.mrf.mxu1 }
 0x6e5   :  { %v5146_v35 = vpop.f32.mrf.mxu1 }
 0x6e6   :  { %v5240_v29 = vadd.f32 %v9791_v0, %v5146_v35 }
 0x6e7   :  { %v7573_v28 = vpop.f32.mrf.mxu1 }
 0x6e8   :  { %v5457_v27 = vpop.f32.mrf.mxu0 }
 0x6e9   :  { %v5151_v58 = vpop.f32.mrf.mxu1 }
 0x6ea   :  { %v7631_v2 = vpop.f32.mrf.mxu0 }
 0x6eb   :  { %v7576_v20 = vpop.f32.mrf.mxu1  ;;  %v5245_v2 = vadd.f32 %v9806_v39, %v5151_v58 }
 0x6ec   :  { %v5462_v47 = vpop.f32.mrf.mxu0 }
 0x6ed   :  { %v5156_v24 = vpop.f32.mrf.mxu1 }
 0x6ee   :  { %v7634_v14 = vpop.f32.mrf.mxu0 }
 0x6ef   :  { %v7579_v53 = vpop.f32.mrf.mxu1 }
 0x6f0   :  { %v5467_v9 = vpop.f32.mrf.mxu0 }
 0x6f2   :  { %v9956_v60 = vpop.f32.mrf.mxu1  ;;  %v7637_v10 = vpop.f32.mrf.mxu0 }
 0x6f3   :  { %v5250_v10 = vadd.f32 %v9819_v46, %v5156_v24 }
 0x6f4   :  { %v7582_v59 = vpop.f32.mrf.mxu1 }
 0x6f5   :  { %v9959_v49 = vpop.f32.mrf.mxu0 }
 0x6f6   :  { %v5343_v61 = vpop.f32.mrf.mxu1 }
 0x6f7   :  { %v5367_v48 = vadd.f32 %v5343_v61, %v5235_v33  ;;  %v7640_v11 = vpop.f32.mrf.mxu0 }
 0x6f8   :  { %v7610_v3 = vpop.f32.mrf.mxu1 }
 0x6f9   :  { %v9962_v23 = vpop.f32.mrf.mxu0  ;;  %v5481_v31 = vadd.f32 %v5457_v27, %v5367_v48 }
 0x6fa   :  { %v5348_v38 = vpop.f32.mrf.mxu1 }
 0x6fb   :  { %v5368_v52 = vadd.f32 %v5348_v38, %v5240_v29  ;;  %v7643_v63 = vpop.f32.mrf.mxu0 }
 0x6fc   :  { %v7613_v41 = vpop.f32.mrf.mxu1 }
 0x6fd   :  { %v5685_v62 = vpop.f32.mrf.mxu0  ;;  %v5482_v51 = vadd.f32 %v5462_v47, %v5368_v52  ;;  %v6625_v52 = vld [vmem:[#allocation2 + $0x21b] ss:$0 sm:$0xff] }
 0x6fe   :  { %v5353_v21 = vpop.f32.mrf.mxu1 }
 0x6ff   :  { %v7673_v6 = vpop.f32.mrf.mxu0  ;;  %v5369_v14 = vadd.f32 %v5353_v21, %v5245_v2 }
 0x700   :  { %v7616_v55 = vpop.f32.mrf.mxu1 }
 0x701   :  { %v5690_v30 = vpop.f32.mrf.mxu0  ;;  %v5483_v38 = vadd.f32 %v5467_v9, %v5369_v14 }
 0x702   :  { %v5358_v15 = vpop.f32.mrf.mxu1 }
 0x703   :  { %v7676_v57 = vpop.f32.mrf.mxu0  ;;  %v5370_v11 = vadd.f32 %v5358_v15, %v5250_v10 }
 0x704   :  { %v7619_v44 = vpop.f32.mrf.mxu1 }
 0x705   :  { %v5695_v42 = vpop.f32.mrf.mxu0  ;;  %v5484_v46 = vadd.f32 %v9959_v49, %v5370_v11 }
 0x706   :  { %v5363_v16 = vpop.f32.mrf.mxu1 }
 0x707   :  { %v7679_v25 = vpop.f32.mrf.mxu0 }
 0x708   :  { %v7622_v0 = vpop.f32.mrf.mxu1 }
 0x709   :  { %v5700_v18 = vpop.f32.mrf.mxu0 }
 0x70a   :  { %v5571_v36 = vpop.f32.mrf.mxu1 }
 0x70b   :  { %v7682_v50 = vpop.f32.mrf.mxu0  ;;  %v5595_v28 = vadd.f32 %v5571_v36, %v5481_v31  ;;  %v5255_v31 = vadd.f32 %v9831_v56, %v9956_v60 }
 0x70c   :  { %v7652_v19 = vpop.f32.mrf.mxu1 }
 0x70d   :  { %v5705_v22 = vpop.f32.mrf.mxu0  ;;  %v5709_v61 = vadd.f32 %v5685_v62, %v5595_v28  ;;  %v5371_v55 = vadd.f32 %v5363_v16, %v5255_v31 }
 0x70e   :  { %v5576_v32 = vpop.f32.mrf.mxu1 }
 0x70f   :  { %v7685_v12 = vpop.f32.mrf.mxu0  ;;  %v5596_v59 = vadd.f32 %v5576_v32, %v5482_v51  ;;  %v5485_v0 = vadd.f32 %v9962_v23, %v5371_v55  ;;  %v6057_v55 = vld [vmem:[#allocation2 + $0x224] sm:$0xff] }
 0x710   :  { %v7655_v43 = vpop.f32.mrf.mxu1 }
 0x711   :  { %v5913_v40 = vpop.f32.mrf.mxu0  ;;  %v5710_v41 = vadd.f32 %v5690_v30, %v5596_v59 }
 0x712   :  { %v5581_v54 = vpop.f32.mrf.mxu1 }
 0x713   :  { %v7715_v45 = vpop.f32.mrf.mxu0  ;;  %v5597_v21 = vadd.f32 %v5581_v54, %v5483_v38  ;;  %v5982_v38 = vld [vmem:[#allocation2 + $0x21c] sm:$0xff] }
 0x714   :  { %v7658_v5 = vpop.f32.mrf.mxu1 }
 0x715   :  { %v5918_v37 = vpop.f32.mrf.mxu0  ;;  %v5711_v9 = vadd.f32 %v5695_v42, %v5597_v21 }
 0x716   :  { %v5586_v34 = vpop.f32.mrf.mxu1 }
 0x717   :  { %v7718_v13 = vpop.f32.mrf.mxu0  ;;  %v5598_v57 = vadd.f32 %v5586_v34, %v5484_v46  ;;  %v6065_v46 = vld [vmem:[#allocation2 + $0x264] sm:$0xff] }
 0x718   :  { %v7661_v35 = vpop.f32.mrf.mxu1 }
 0x719   :  { %v5923_v27 = vpop.f32.mrf.mxu0  ;;  %v5712_v32 = vadd.f32 %v5700_v18, %v5598_v57 }
 0x71a   :  { %v5591_v20 = vpop.f32.mrf.mxu1 }
 0x71b   :  { %v7721_v47 = vpop.f32.mrf.mxu0  ;;  %v5599_v30 = vadd.f32 %v5591_v20, %v5485_v0 }
 0x71c   :  { %v7664_v53 = vpop.f32.mrf.mxu1 }
 0x71d   :  { %v5928_v33 = vpop.f32.mrf.mxu0  ;;  %v5713_v5 = vadd.f32 %v5705_v22, %v5599_v30  ;;  %v6631_v30 = vld [vmem:[#allocation2 + $0x284] ss:$0 sm:$0xff] }
 0x71e   :  { %v5799_v48 = vpop.f32.mrf.mxu1 }
 0x71f   :  { %v5823_v3 = vadd.f32 %v5799_v48, %v5709_v61  ;;  %v7724_v29 = vpop.f32.mrf.mxu0 }
 0x720   :  { %v7694_v63 = vpop.f32.mrf.mxu1 }
 0x721   :  { %v5937_v39 = vadd.f32 %v5913_v40, %v5823_v3  ;;  %v5933_v58 = vpop.f32.mrf.mxu0  ;;  %v6066_v63 = vld [vmem:[#allocation2 + $0x26c] sm:$0xff] }
 0x722   :  { %v5804_v6 = vpop.f32.mrf.mxu1 }
 0x723   :  { %v5946_v24 = vadd.f32 %v6625_v52, %v5937_v39  ;;  %v5824_v62 = vadd.f32 %v5804_v6, %v5710_v41  ;;  %v7727_v51 = vpop.f32.mrf.mxu0  ;;  %v6059_v41 = vld [vmem:[#allocation2 + $0x234] sm:$0xff]  ;;  %v6058_v6 = vld [vmem:[#allocation2 + $0x22c] sm:$0xff] }
 0x724   :  { %v7697_v15 = vpop.f32.mrf.mxu1 }
 0x725   :  { %v5938_v44 = vadd.f32 %v5918_v37, %v5824_v62  ;;  %v5951_v36 = vmax.f32 %v5946_v24, 0.0  ;;  %v6064_v24 = vld [vmem:[#allocation2 + $0x25c] sm:$0xff]  ;;  %v6063_v62 = vld [vmem:[#allocation2 + $0x254] sm:$0xff] }
 0x726   :  { %v5809_v25 = vpop.f32.mrf.mxu1 }
 0x727   :  { %v5947_v56 = vadd.f32 %v6625_v52, %v5938_v44  ;;  %v5825_v60 = vadd.f32 %v5809_v25, %v5711_v9  ;;  %v5961_v12 = vrot.slane %v5951_v36, 5 }
 0x728   :  { %v7700_v50 = vpop.f32.mrf.mxu1 }
 0x729   :  { %v5952_v19 = vmax.f32 %v5947_v56, 0.0  ;;  %v5939_v40 = vadd.f32 %v5923_v27, %v5825_v60  ;;  %v5975_v3 = vsel %vm516_vm5, 0.0, %v5961_v12 }
 0x72a   :  { %v5814_v16 = vpop.f32.mrf.mxu1 }
 0x72b   :  { %v5962_v49 = vrot.slane %v5952_v19, 5  ;;  %v5826_v43 = vadd.f32 %v5814_v16, %v5712_v32  ;;  %v5948_v13 = vadd.f32 %v6625_v52, %v5939_v40 }
 0x72c   :  { %v7703_v54 = vpop.f32.mrf.mxu1 }
 0x72d   :  { %v5940_v45 = vadd.f32 %v5928_v33, %v5826_v43  ;;  %v5963_v42 = vsel %vm516_vm5, %v5961_v12, %v5962_v49  ;;  %v5953_v47 = vmax.f32 %v5948_v13, 0.0 }
 0x72e   :  { %v5819_v37 = vpop.f32.mrf.mxu1  ;;  %v5978_v29 = vmul.f32 %v5963_v42, %v8400_v8  ;;  %v6068_v8 = vld [vmem:[#allocation2 + $0x27c] sm:$0xff] }
 0x72f   :  { %v5949_v34 = vadd.f32 %v6625_v52, %v5940_v45  ;;  %v5827_v23 = vadd.f32 %v5819_v37, %v5713_v5  ;;  %v5964_v10 = vrot.slane %v5953_v47, 5  ;;  %7769 = vmatpush3.msra.mxu0 %v6068_v8 }
 0x730   :  { %v7706_v35 = vpop.f32.mrf.mxu1  ;;  %7770 = vmatprep.subr.mxu0 %v7843_v1 }
 0x731   :  { %v5941_v28 = vadd.f32 %v5933_v58, %v5827_v23  ;;  %v5954_v2 = vmax.f32 %v5949_v34, 0.0  ;;  %v5965_v61 = vsel %vm516_vm5, %v5962_v49, %v5964_v10 }
 0x732   :  { %v5979_v11 = vmul.f32 %v5965_v61, %v8599_v17  ;;  %v6061_v17 = vld [vmem:[#allocation2 + $0x244] sm:$0xff] }
 0x733   :  { %v5950_v20 = vadd.f32 %v6625_v52, %v5941_v28  ;;  %v5966_v14 = vrot.slane %v5954_v2, 5  ;;  %v6067_v52 = vld [vmem:[#allocation2 + $0x274] sm:$0xff] }
 0x734   :  { %7771 = vmatpush3.msra.mxu0 %v6067_v52 }
 0x735   :  { %v5955_v18 = vmax.f32 %v5950_v20, 0.0  ;;  %v5967_v22 = vsel %vm516_vm5, %v5964_v10, %v5966_v14  ;;  %7772 = vmatprep.subr.mxu0 %v7843_v1 }
 0x736   :  { %v5980_v48 = vmul.f32 %v5967_v22, %v8631_v26  ;;  %v6062_v26 = vld [vmem:[#allocation2 + $0x24c] sm:$0xff]  ;;  %7773 = vmatpush3.msra.mxu0 %v6066_v63 }
 0x737   :  { %v5968_v53 = vrot.slane %v5955_v18, 5 }
 0x739   :  { %v5969_v27 = vsel %vm516_vm5, %v5966_v14, %v5968_v53 }
 0x73a   :  { %v5976_v59 = vsel %vm316_vm3, %v5969_v27, 0.0 }
 0x73b   :  { %v5981_v33 = vmul.f32 %v5976_v59, %v8636_v4  ;;  %v5977_v4 = vmul.f32 %v5975_v3, %v8397_v7  ;;  %v6060_v7 = vld [vmem:[#allocation2 + $0x23c] sm:$0xff] }
 0x73d   :  { %7729 = vmatpush3.msra.mxu1 %v5981_v33 }
 0x73e   :  { %7730 = vmatprep.subr.mxu1 %v7843_v1 }
 0x73f   :  { %7731 = vmatpush3.msra.mxu1 %v5980_v48 }
 0x740   :  { %7732 = vmatprep.subr.mxu1 %v7843_v1 }
 0x741   :  { %7733 = vmatpush3.msra.mxu1 %v5979_v11 }
 0x742   :  { %7734 = vmatprep.subr.mxu1 %v7843_v1 }
 0x743   :  { %7735 = vmatpush3.msra.mxu1 %v5978_v29 }
 0x744   :  { %7736 = vmatprep.subr.mxu1 %v7843_v1 }
 0x745   :  { %7737 = vmatpush3.msra.mxu1 %v5977_v4 }
 0x746   :  { %7739 = vmatmul.mubr.msk.f32.vlgmr.msra.gmra.mxu1 %vm5983_vm1, %v5982_v38  ;;  %7741 = vmatprep.subr.mxu1 %v7843_v1 }
 0x747   :  { %7742 = vmatpush3.msra.mxu1 %v6062_v26  ;;  %7747 = vmatprep.mubr.msk.f32.mxu1 %vm7844_vm0, %v7843_v1 }
 0x748   :  { %7743 = vmatprep.subr.mxu1 %v7843_v1 }
 0x749   :  { %7744 = vmatpush3.msra.mxu1 %v6061_v17 }
 0x74a   :  { %7745 = vmatprep.subr.mxu1 %v7843_v1 }
 0x74b   :  { %7746 = vmatpush3.msra.mxu1 %v6060_v7 }
 0x74c   :  { %7750 = vmatprep.subr.mxu1 %v7843_v1 }
 0x806   :  { %v6053_v31 = vpop.f32.mrf.mxu1 }
 0x807   :  { %v6071_v39 = vrot.slane %v6053_v31, 2  ;;  %v6290_v58 = vrot.slane %v6053_v31, 6  ;;  %v6216_v51 = vrot.slane %v6053_v31, 4 }
 0x808   :  { %v7740_v21 = vpop.f32.mrf.mxu1 }
 0x809   :  { %7748 = vmatmul.mubr.msk.f32.vlgmr.msra.gmra.mxu1 %vm5059_vm8, %v6071_v39  ;;  %7775 = vmatmul.mubr.msk.f32.vlgmr.msra.gmra.mxu0 %vm5059_vm8, %v6290_v58 }
 0x80a   :  { %7751 = vmatpush3.msra.mxu1 %v6059_v41  ;;  %7756 = vmatprep.mubr.msk.f32.mxu1 %vm7844_vm0, %v7843_v1 }
 0x80b   :  { %7752 = vmatprep.subr.mxu1 %v7843_v1 }
 0x80c   :  { %7753 = vmatpush3.msra.mxu1 %v6058_v6 }
 0x80d   :  { %7754 = vmatprep.subr.mxu1 %v7843_v1 }
 0x80e   :  { %7755 = vmatpush3.msra.mxu1 %v6057_v55 }
 0x80f   :  { %7759 = vmatprep.subr.mxu1 %v7843_v1  ;;  %7757 = vmatmul.mubr.msk.f32.vlgmr.msra.gmra.mxu1 %vm5059_vm8, %v6053_v31 }
 0x810   :  { %7760 = vmatpush3.msra.mxu1 %v6065_v46  ;;  %7765 = vmatprep.mubr.msk.f32.mxu1 %vm7844_vm0, %v7843_v1 }
 0x811   :  { %7761 = vmatprep.subr.mxu1 %v7843_v1 }
 0x812   :  { %7762 = vmatpush3.msra.mxu1 %v6064_v24 }
 0x813   :  { %7763 = vmatprep.subr.mxu1 %v7843_v1 }
 0x814   :  { %7764 = vmatpush3.msra.mxu1 %v6063_v62 }
 0x815   :  { %7766 = vmatmul.mubr.msk.f32.vlgmr.msra.gmra.mxu1 %vm5059_vm8, %v6216_v51 }
 0x8c9   :  { %v6140_v15 = vpop.f32.mrf.mxu1  ;;  %v6359_v57 = vpop.f32.mrf.mxu0 }
 0x8cb   :  { %v7749_v44 = vpop.f32.mrf.mxu1  ;;  %v7776_v9 = vpop.f32.mrf.mxu0 }
 0x8cf   :  { %v6212_v25 = vpop.f32.mrf.mxu1 }
 0x8d0   :  { %v6213_v36 = vadd.f32 %v6212_v25, %v6140_v15 }
 0x8d1   :  { %v7758_v0 = vpop.f32.mrf.mxu1 }
 0x8d5   :  { %v6285_v56 = vpop.f32.mrf.mxu1 }
 0x8d6   :  { %v6289_v60 = vadd.f32 %v6285_v56, %v6213_v36 }
 0x8d7   :  { %v7767_v50 = vpop.f32.mrf.mxu1 }
 0x8d8   :  { %v6363_v19 = vadd.f32 %v6359_v57, %v6289_v60 }
 0x8da   :  { %v6368_v32 = vadd.f32 %v6631_v30, %v6363_v19 }
 0x8dc   :  { %6369 = vst [vmem:[#allocation5] sm:$0x3] %v6368_v32 }
 0x8dd   :  { %7827 = shalt.err (!%p7824_p9)
}
 0x8de   :  { %6379 = dma.vmem_to_hbm [thread:$0]  %s6377_s18, 32, %s10011_s2, [#allocation4]  }
 0x8df   :  { %7838 = dma.done.wait [#allocation4], 32  }
 0x8e0   :  { %7839 = vsyncadd [#allocation4], 4294967264 }
 0x8e1   :  { %6383 = vsyncpa [#allocation3], 1 }
 0x8e2   :  { %6384 = vsyncpa [#allocation4], 1 }

</bundles_post_ra>
